<compile_context>
chip_gen: v7x
topology: tpu7x:2x2x1
jax: 0.10.0
libtpu: 0.0.40
codegen_flags: <defaults>
</compile_context>

<pallas_src>
import jax
import jax.numpy as jnp
from jax.experimental import pallas as pl
from jax.experimental.pallas import tpu as pltpu


VOCAB = 64
_VMEM = pl.BlockSpec(memory_space=pltpu.MemorySpace.VMEM)


# ----------------------------------------------------------------------------
# Pallas kernels
# ----------------------------------------------------------------------------

def _gelu(x):
    # tanh-approximate GELU (PyTorch nn.GELU default is erf; tanh approx is
    # used for robust TPU lowering — numerically very close).
    c = jnp.float32(0.7978845608028654)  # sqrt(2/pi)
    return 0.5 * x * (1.0 + jnp.tanh(c * (x + 0.044715 * x * x * x)))


def _encode_sims_kernel(
        # activations
        blip_pix_ref, clip_pix_ref, blip_txt_ref, clip_txt_ref,
        # backbone-stub projections (bf16)
        bvp_ref, cvp_ref,
        # vision co-head (W1 split bf16, b1 f32, W2 bf16, b2 f32)
        vw1a_ref, vw1b_ref, vb1_ref, vw2_ref, vb2_ref,
        # text co-head
        tw1a_ref, tw1b_ref, tb1_ref, tw2_ref, tb2_ref,
        # outputs
        img_out_ref, txt_out_ref, i2t_ref, i2i_ref, t2t_ref):
    f32 = jnp.float32
    bf16 = jnp.bfloat16

    # --- backbone projection stubs (bf16 weights, f32 accumulation) ---------
    blip_v = jnp.dot(blip_pix_ref[...].astype(bf16), bvp_ref[...],
                     preferred_element_type=f32)                    # (B, 256)
    clip_v = jnp.dot(clip_pix_ref[...].astype(bf16), cvp_ref[...],
                     preferred_element_type=f32)                    # (B, 512)

    # --- vision co-head: SeqLinear(768 -> 512 -> 256), GELU between ---------
    # concat([blip, clip], -1) @ W1  ==  blip @ W1[:256] + clip @ W1[256:]
    hv = (jnp.dot(blip_v.astype(bf16), vw1a_ref[...], preferred_element_type=f32)
          + jnp.dot(clip_v.astype(bf16), vw1b_ref[...], preferred_element_type=f32)
          + vb1_ref[...])
    hv = _gelu(hv)
    img = (jnp.dot(hv.astype(bf16), vw2_ref[...], preferred_element_type=f32)
           + vb2_ref[...])                                          # (B, 256)

    # --- text co-head --------------------------------------------------------
    ht = (jnp.dot(blip_txt_ref[...].astype(bf16), tw1a_ref[...],
                  preferred_element_type=f32)
          + jnp.dot(clip_txt_ref[...].astype(bf16), tw1b_ref[...],
                    preferred_element_type=f32)
          + tb1_ref[...])
    ht = _gelu(ht)
    txt = (jnp.dot(ht.astype(bf16), tw2_ref[...], preferred_element_type=f32)
           + tb2_ref[...])                                          # (B, 256)

    img_out_ref[...] = img
    txt_out_ref[...] = txt

    # --- L2 normalize (rsqrt -> EUP) + cosine similarities -------------------
    # F.normalize(p=2, dim=-1, eps=1e-12): clamp the squared norm at 1e-24.
    img_n = img * jax.lax.rsqrt(
        jnp.maximum(jnp.sum(img * img, axis=-1, keepdims=True), 1e-24))
    txt_n = txt * jax.lax.rsqrt(
        jnp.maximum(jnp.sum(txt * txt, axis=-1, keepdims=True), 1e-24))

    # contract last dims of both operands: no materialized transpose.
    nt = (((1,), (1,)), ((), ()))
    i2t_ref[...] = jax.lax.dot_general(img_n, txt_n, nt, preferred_element_type=f32)
    i2i_ref[...] = jax.lax.dot_general(img_n, img_n, nt, preferred_element_type=f32)
    t2t_ref[...] = jax.lax.dot_general(txt_n, txt_n, nt, preferred_element_type=f32)


def encode_and_sims(blip_pix, clip_pix, blip_txt, clip_txt, params):
    """Fused: backbone stubs + co-heads + L2-norm + all similarity matrices."""
    B = blip_pix.shape[0]
    args = (blip_pix, clip_pix, blip_txt, clip_txt,
            params['blip_vision_proj'], params['clip_vision_proj'],
            *params['vision_co_head'], *params['text_co_head'])
    out_shapes = (
        jax.ShapeDtypeStruct((B, 256), jnp.float32),   # image_embeds
        jax.ShapeDtypeStruct((B, 256), jnp.float32),   # text_embeds
        jax.ShapeDtypeStruct((B, B), jnp.float32),     # sims_i2t
        jax.ShapeDtypeStruct((B, B), jnp.float32),     # sims_i2i
        jax.ShapeDtypeStruct((B, B), jnp.float32),     # sims_t2t
    )
    # Whole-array VMEM residency: total weights + activations ~2.5 MB, far
    # under the scoped VMEM limit on every generation (incl. v7x 64 MiB).
    # TODO(synk): at production batch sizes, tile the (B,B) sims with a grid.
    return pl.pallas_call(
        _encode_sims_kernel,
        out_shape=out_shapes,
        in_specs=[_VMEM] * len(args),
        out_specs=(_VMEM,) * len(out_shapes),
    )(*args)


def _disc_bce_kernel(img_ref, cap_ref, w1a_ref, w1b_ref, b1_ref, w2_ref, b2_ref,
                     o_ref):
    """Discriminator (concat -> 512 -> GELU -> 1) + BCE-with-logits, fused.

    TODO(synk): DisModel(dim=256, layer_dims=[512, 1]) architecture assumed:
    concat(img, cap) -> Linear(512,512) -> GELU -> Linear(512,1).
    Dropout is identity at inference time.
    """
    f32 = jnp.float32
    bf16 = jnp.bfloat16
    n = img_ref.shape[0]
    bs = n // 3

    h = (jnp.dot(img_ref[...].astype(bf16), w1a_ref[...], preferred_element_type=f32)
         + jnp.dot(cap_ref[...].astype(bf16), w1b_ref[...], preferred_element_type=f32)
         + b1_ref[...])
    h = _gelu(h)
    # final (512 -> 1) layer as a VPU/XLU reduction instead of an N=1 matmul
    # (avoids wasting MXU columns and a lane-width-1 masked store).
    z = jnp.sum(h * w2_ref[...], axis=-1, keepdims=True) + b2_ref[...]   # (3B, 1)

    # labels: first B rows are positives (1), remaining 2B rows negatives (0).
    row = jax.lax.broadcasted_iota(jnp.int32, (n, 1), 0)
    labels = (row < bs).astype(f32)

    # binary_cross_entropy_with_logits (mean reduction), numerically stable.
    bce = jnp.maximum(z, 0.0) - z * labels + jnp.log1p(jnp.exp(-jnp.abs(z)))
    o_ref[...] = jnp.sum(bce, axis=0, keepdims=True) * (1.0 / n)


def disc_bce_loss(img_all, cap_all, disc_params):
    return pl.pallas_call(
        _disc_bce_kernel,
        out_shape=jax.ShapeDtypeStruct((1, 1), jnp.float32),
        in_specs=[_VMEM] * (2 + len(disc_params)),
        out_specs=_VMEM,
    )(img_all, cap_all, *disc_params)


# ----------------------------------------------------------------------------
# Plain-JAX glue: losses (all inside the jit'd forward)
# ----------------------------------------------------------------------------

def cross_entropy(logits, targets):
    logz = jax.nn.logsumexp(logits, axis=-1)
    gold = jnp.take_along_axis(logits, targets[:, None], axis=-1)[:, 0]
    return jnp.mean(logz - gold)


def margin_loss(sims_i2t, sims_i2i, pos_margin, neg_margin):
    bsize = sims_i2t.shape[0]
    eye = jnp.eye(bsize, dtype=jnp.float32)
    neg_mask = 1.0 - eye
    sign = jnp.where(eye > 0, -1.0, 1.0)
    nm = neg_margin * neg_mask
    pm = pos_margin * eye
    a = sims_i2t - nm
    b = sims_i2i - nm
    a = (a - pm) * sign
    sims = jnp.concatenate([jnp.maximum(a, 0.0), jnp.maximum(b, 0.0)], axis=-1)
    return jnp.mean(jnp.sum(sims * sims, axis=-1), axis=0)


def itc_loss_from_sims(sims_i2t, sims_i2i, sims_t2t, temp, weight_i2t,
                       pos_margin, neg_margin):
    bsize = sims_i2t.shape[0]
    eye_mask = jnp.eye(bsize, dtype=jnp.float32) * 1e9
    sims_t2i = sims_i2t.T
    target = jnp.arange(bsize)

    logits_i2t = jnp.concatenate(
        [sims_i2t / temp, sims_t2t / temp - eye_mask], axis=1)
    logits_t2i = jnp.concatenate(
        [sims_t2i / temp, sims_i2i / temp - eye_mask], axis=1)

    m_loss = (weight_i2t * margin_loss(sims_i2t, sims_t2t - eye_mask,
                                       pos_margin, neg_margin)
              + (1.0 - weight_i2t) * margin_loss(sims_t2i, sims_i2i - eye_mask,
                                                 pos_margin, neg_margin))
    itc = (weight_i2t * cross_entropy(logits_i2t, target)
           + (1.0 - weight_i2t) * cross_entropy(logits_t2i, target))
    loss = itc + m_loss

    acc = jnp.mean((jnp.argmax(sims_i2t, axis=-1) == target).astype(jnp.float32))
    stats = {
        'logits/weight_t2i': 1.0 - weight_i2t,
        'logits/margin_loss': m_loss,
        'logits/itc_loss': itc,
        'logits/min': jnp.min(sims_i2t),
        'logits/mean': jnp.mean(sims_i2t),
        'logits/max': jnp.max(sims_i2t),
        'logits/acc': acc,
    }
    return loss, stats


def itm_loss_fn(imgs, cap, sims_i2t, disc_params, key):
    bs = imgs.shape[0]
    w_i2t = jax.nn.softmax(sims_i2t, axis=1)
    w_t2i = jax.nn.softmax(sims_i2t.T, axis=1)
    eye = jnp.eye(bs, dtype=bool)
    w_i2t = jnp.where(eye, 0.0, w_i2t)
    w_t2i = jnp.where(eye, 0.0, w_t2i)

    # TODO(synk): torch.multinomial(weights, 1) is replaced by a deterministic
    # jax.random.categorical draw with a fixed key (sampling is stochastic in
    # the original).
    k1, k2 = jax.random.split(key)
    neg_idx_t2i = jax.random.categorical(
        k1, jnp.log(jnp.where(w_t2i > 0, w_t2i, 1e-30)), axis=-1)
    neg_idx_i2t = jax.random.categorical(
        k2, jnp.log(jnp.where(w_i2t > 0, w_i2t, 1e-30)), axis=-1)

    img_enc_neg = imgs[neg_idx_t2i]
    cap_enc_neg = cap[neg_idx_i2t]
    cap_enc_all = jnp.concatenate([cap, cap, cap_enc_neg], axis=0)
    img_enc_all = jnp.concatenate([imgs, img_enc_neg, imgs], axis=0)

    return disc_bce_loss(img_enc_all, cap_enc_all, disc_params)[0, 0]


# ----------------------------------------------------------------------------
# Parameter init + forward
# ----------------------------------------------------------------------------

def init_params(key):
    ks = jax.random.split(key, 16)
    s = 0.02

    def w_bf16(k, shape):
        return (jax.random.normal(k, shape, jnp.float32) * s).astype(jnp.bfloat16)

    def w_f32(k, shape):
        return jax.random.normal(k, shape, jnp.float32) * s

    def b(n):
        return jnp.zeros((1, n), jnp.float32)

    params = {
        # TODO(synk): pretrained BLIP/CLIP (+LoRA) vision/text backbones and
        # projection heads are replaced by deterministic linear stubs.
        'blip_vision_proj': w_bf16(ks[0], (3 * 16 * 16, 256)),
        'clip_vision_proj': w_bf16(ks[1], (3 * 16 * 16, 512)),
        'blip_text_embed':  w_f32(ks[2], (VOCAB, 256)),
        'clip_text_embed':  w_f32(ks[3], (VOCAB, 512)),
        # vision_co_head: SeqLinear(768 -> 512 -> 256), W1 pre-split at the
        # 256/512 boundary so the kernel never needs the feature concat.
        'vision_co_head': (w_bf16(ks[4], (256, 512)), w_bf16(ks[5], (512, 512)),
                           b(512),
                           w_bf16(ks[6], (512, 256)), b(256)),
        # text_co_head: SeqLinear(768 -> 512 -> 256), same split.
        'text_co_head':   (w_bf16(ks[7], (256, 512)), w_bf16(ks[8], (512, 512)),
                           b(512),
                           w_bf16(ks[9], (512, 256)), b(256)),
        # discriminator: DisModel(dim=256, layer_dims=[512, 1]); W1 pre-split
        # into img/cap halves, final layer kept as a (1,512) f32 vector for the
        # in-kernel VPU reduction.
        'discriminator':  (w_bf16(ks[10], (256, 512)), w_bf16(ks[11], (256, 512)),
                           b(512),
                           w_f32(ks[12], (1, 512)), jnp.zeros((1, 1), jnp.float32)),
        'temp': jnp.float32(0.07),
        'weight_i2t': jnp.float32(0.5),
        'euclid_pos_margin': jnp.float32(1.0),
        'euclid_img_neg_margin': jnp.float32(0.5),
    }
    return params


def _masked_mean_embed(input_ids, attention_mask, table):
    emb = table[input_ids]                                   # (B, S, D)
    m = attention_mask[..., None].astype(jnp.float32)
    return jnp.sum(emb * m, axis=1) / jnp.maximum(jnp.sum(m, axis=1), 1.0)


def _forward(params,
             blip_input_ids, blip_pixel_values, blip_attention_mask,
             clip_input_ids, clip_pixel_values, clip_attention_mask,
             sample_key):
    B = blip_pixel_values.shape[0]

    # --- backbone stubs (tiny XLA glue, fused under jit) ---------------------
    blip_pix = blip_pixel_values.reshape(B, -1)              # (B, 768)
    clip_pix = clip_pixel_values.reshape(B, -1)              # (B, 768)
    blip_txt = _masked_mean_embed(blip_input_ids, blip_attention_mask,
                                  params['blip_text_embed'])  # (B, 256)
    clip_txt = _masked_mean_embed(clip_input_ids, clip_attention_mask,
                                  params['clip_text_embed'])  # (B, 512)

    # --- one fused Pallas kernel: stubs + co-heads + L2-norm + sims ----------
    (image_embeds, text_embeds,
     sims_i2t, sims_i2i, sims_t2t) = encode_and_sims(
        blip_pix, clip_pix, blip_txt, clip_txt, params)

    # --- ITC loss (JAX reductions on (B, 2B) logits) -------------------------
    itc_loss, stats = itc_loss_from_sims(
        sims_i2t, sims_i2i, sims_t2t,
        params['temp'], params['weight_i2t'],
        params['euclid_pos_margin'], params['euclid_img_neg_margin'])

    # --- ITM loss (original forward passes args as (text, image)) ------------
    itm_loss = itm_loss_fn(text_embeds, image_embeds, sims_i2t,
                           params['discriminator'], sample_key)
    stats['logits/itm_loss'] = itm_loss

    loss = itc_loss + itm_loss
    return loss, stats, itc_loss, itm_loss


forward = jax.jit(_forward)


# ----------------------------------------------------------------------------
# Main
# ----------------------------------------------------------------------------

if __name__ == "__main__":
    key = jax.random.PRNGKey(0)
    ks = jax.random.split(key, 8)

    B, S = 8, 8  # small batch / sequence
    blip_pixel_values = jax.random.normal(ks[0], (B, 3, 16, 16), jnp.float32)  # NCHW
    clip_pixel_values = jax.random.normal(ks[1], (B, 3, 16, 16), jnp.float32)  # NCHW
    blip_input_ids = jax.random.randint(ks[2], (B, S), 0, VOCAB)
    clip_input_ids = jax.random.randint(ks[3], (B, S), 0, VOCAB)
    blip_attention_mask = jnp.ones((B, S), jnp.float32)
    clip_attention_mask = jnp.ones((B, S), jnp.float32)

    params = init_params(ks[4])

    loss, stats, itc_loss, itm_loss = forward(
        params,
        blip_input_ids, blip_pixel_values, blip_attention_mask,
        clip_input_ids, clip_pixel_values, clip_attention_mask,
        ks[5])

    jax.block_until_ready(loss)
    jax.block_until_ready(itc_loss)
    jax.block_until_ready(itm_loss)
    print("KERNEL_OK")
</pallas_src>

<mosaic_0001>
module attributes {stable_mosaic.version = 11 : i64} {
  func.func @_encode_sims_kernel(%arg0: memref<8x768xf32, #tpu.memory_space<vmem>>, %arg1: memref<8x768xf32, #tpu.memory_space<vmem>>, %arg2: memref<8x256xf32, #tpu.memory_space<vmem>>, %arg3: memref<8x512xf32, #tpu.memory_space<vmem>>, %arg4: memref<768x256xbf16, #tpu.memory_space<vmem>>, %arg5: memref<768x512xbf16, #tpu.memory_space<vmem>>, %arg6: memref<256x512xbf16, #tpu.memory_space<vmem>>, %arg7: memref<512x512xbf16, #tpu.memory_space<vmem>>, %arg8: memref<1x512xf32, #tpu.memory_space<vmem>>, %arg9: memref<512x256xbf16, #tpu.memory_space<vmem>>, %arg10: memref<1x256xf32, #tpu.memory_space<vmem>>, %arg11: memref<256x512xbf16, #tpu.memory_space<vmem>>, %arg12: memref<512x512xbf16, #tpu.memory_space<vmem>>, %arg13: memref<1x512xf32, #tpu.memory_space<vmem>>, %arg14: memref<512x256xbf16, #tpu.memory_space<vmem>>, %arg15: memref<1x256xf32, #tpu.memory_space<vmem>>, %arg16: memref<8x256xf32, #tpu.memory_space<vmem>>, %arg17: memref<8x256xf32, #tpu.memory_space<vmem>>, %arg18: memref<8x8xf32, #tpu.memory_space<vmem>>, %arg19: memref<8x8xf32, #tpu.memory_space<vmem>>, %arg20: memref<8x8xf32, #tpu.memory_space<vmem>>) attributes {dimension_semantics = [], scalar_prefetch = 0 : i64, scratch_operands = 0 : i64, tpu.core_type = #tpu.core_type<tc>} {
    %c0 = arith.constant 0 : index
    %c0_0 = arith.constant 0 : index
    %0 = vector.load %arg0[%c0, %c0_0] : memref<8x768xf32, #tpu.memory_space<vmem>>, vector<8x768xf32>
    %1 = arith.truncf %0 : vector<8x768xf32> to vector<8x768xbf16>
    %c0_1 = arith.constant 0 : index
    %c0_2 = arith.constant 0 : index
    %2 = vector.load %arg4[%c0_1, %c0_2] : memref<768x256xbf16, #tpu.memory_space<vmem>>, vector<768x256xbf16>
    %cst = arith.constant dense<0.000000e+00> : vector<8x256xf32>
    %3 = tpu.matmul %1, %2, %cst {dimension_numbers = #tpu.dot_dimension_numbers<[1], [0], [0], [1], [0, 0, 1, 1], [], []>} : vector<8x768xbf16>, vector<768x256xbf16>, vector<8x256xf32> -> vector<8x256xf32>
    %c0_3 = arith.constant 0 : index
    %c0_4 = arith.constant 0 : index
    %4 = vector.load %arg1[%c0_3, %c0_4] : memref<8x768xf32, #tpu.memory_space<vmem>>, vector<8x768xf32>
    %5 = arith.truncf %4 : vector<8x768xf32> to vector<8x768xbf16>
    %c0_5 = arith.constant 0 : index
    %c0_6 = arith.constant 0 : index
    %6 = vector.load %arg5[%c0_5, %c0_6] : memref<768x512xbf16, #tpu.memory_space<vmem>>, vector<768x512xbf16>
    %cst_7 = arith.constant dense<0.000000e+00> : vector<8x512xf32>
    %7 = tpu.matmul %5, %6, %cst_7 {dimension_numbers = #tpu.dot_dimension_numbers<[1], [0], [0], [1], [0, 0, 1, 1], [], []>} : vector<8x768xbf16>, vector<768x512xbf16>, vector<8x512xf32> -> vector<8x512xf32>
    %8 = arith.truncf %3 : vector<8x256xf32> to vector<8x256xbf16>
    %c0_8 = arith.constant 0 : index
    %c0_9 = arith.constant 0 : index
    %9 = vector.load %arg6[%c0_8, %c0_9] : memref<256x512xbf16, #tpu.memory_space<vmem>>, vector<256x512xbf16>
    %cst_10 = arith.constant dense<0.000000e+00> : vector<8x512xf32>
    %10 = tpu.matmul %8, %9, %cst_10 {dimension_numbers = #tpu.dot_dimension_numbers<[1], [0], [0], [1], [0, 0, 1, 1], [], []>} : vector<8x256xbf16>, vector<256x512xbf16>, vector<8x512xf32> -> vector<8x512xf32>
    %11 = arith.truncf %7 : vector<8x512xf32> to vector<8x512xbf16>
    %c0_11 = arith.constant 0 : index
    %c0_12 = arith.constant 0 : index
    %12 = vector.load %arg7[%c0_11, %c0_12] : memref<512x512xbf16, #tpu.memory_space<vmem>>, vector<512x512xbf16>
    %cst_13 = arith.constant dense<0.000000e+00> : vector<8x512xf32>
    %13 = tpu.matmul %11, %12, %cst_13 {dimension_numbers = #tpu.dot_dimension_numbers<[1], [0], [0], [1], [0, 0, 1, 1], [], []>} : vector<8x512xbf16>, vector<512x512xbf16>, vector<8x512xf32> -> vector<8x512xf32>
    %14 = arith.addf %10, %13 : vector<8x512xf32>
    %c0_14 = arith.constant 0 : index
    %c0_15 = arith.constant 0 : index
    %15 = vector.load %arg8[%c0_14, %c0_15] : memref<1x512xf32, #tpu.memory_space<vmem>>, vector<1x512xf32>
    %16 = vector.broadcast %15 : vector<1x512xf32> to vector<8x512xf32>
    %17 = arith.addf %14, %16 : vector<8x512xf32>
    %cst_16 = arith.constant 5.000000e-01 : f32
    %18 = vector.broadcast %cst_16 : f32 to vector<8x512xf32>
    %19 = arith.mulf %18, %17 : vector<8x512xf32>
    %cst_17 = arith.constant 4.471500e-02 : f32
    %20 = vector.broadcast %cst_17 : f32 to vector<8x512xf32>
    %21 = arith.mulf %20, %17 : vector<8x512xf32>
    %22 = arith.mulf %21, %17 : vector<8x512xf32>
    %23 = arith.mulf %22, %17 : vector<8x512xf32>
    %24 = arith.addf %17, %23 : vector<8x512xf32>
    %cst_18 = arith.constant 0.797884583 : f32
    %25 = vector.broadcast %cst_18 : f32 to vector<8x512xf32>
    %26 = arith.mulf %25, %24 : vector<8x512xf32>
    %27 = math.tanh %26 : vector<8x512xf32>
    %cst_19 = arith.constant 1.000000e+00 : f32
    %28 = vector.broadcast %cst_19 : f32 to vector<8x512xf32>
    %29 = arith.addf %28, %27 : vector<8x512xf32>
    %30 = arith.mulf %19, %29 : vector<8x512xf32>
    %31 = arith.truncf %30 : vector<8x512xf32> to vector<8x512xbf16>
    %c0_20 = arith.constant 0 : index
    %c0_21 = arith.constant 0 : index
    %32 = vector.load %arg9[%c0_20, %c0_21] : memref<512x256xbf16, #tpu.memory_space<vmem>>, vector<512x256xbf16>
    %cst_22 = arith.constant dense<0.000000e+00> : vector<8x256xf32>
    %33 = tpu.matmul %31, %32, %cst_22 {dimension_numbers = #tpu.dot_dimension_numbers<[1], [0], [0], [1], [0, 0, 1, 1], [], []>} : vector<8x512xbf16>, vector<512x256xbf16>, vector<8x256xf32> -> vector<8x256xf32>
    %c0_23 = arith.constant 0 : index
    %c0_24 = arith.constant 0 : index
    %34 = vector.load %arg10[%c0_23, %c0_24] : memref<1x256xf32, #tpu.memory_space<vmem>>, vector<1x256xf32>
    %35 = vector.broadcast %34 : vector<1x256xf32> to vector<8x256xf32>
    %36 = arith.addf %33, %35 : vector<8x256xf32>
    %c0_25 = arith.constant 0 : index
    %c0_26 = arith.constant 0 : index
    %37 = vector.load %arg2[%c0_25, %c0_26] : memref<8x256xf32, #tpu.memory_space<vmem>>, vector<8x256xf32>
    %38 = arith.truncf %37 : vector<8x256xf32> to vector<8x256xbf16>
    %c0_27 = arith.constant 0 : index
    %c0_28 = arith.constant 0 : index
    %39 = vector.load %arg11[%c0_27, %c0_28] : memref<256x512xbf16, #tpu.memory_space<vmem>>, vector<256x512xbf16>
    %cst_29 = arith.constant dense<0.000000e+00> : vector<8x512xf32>
    %40 = tpu.matmul %38, %39, %cst_29 {dimension_numbers = #tpu.dot_dimension_numbers<[1], [0], [0], [1], [0, 0, 1, 1], [], []>} : vector<8x256xbf16>, vector<256x512xbf16>, vector<8x512xf32> -> vector<8x512xf32>
    %c0_30 = arith.constant 0 : index
    %c0_31 = arith.constant 0 : index
    %41 = vector.load %arg3[%c0_30, %c0_31] : memref<8x512xf32, #tpu.memory_space<vmem>>, vector<8x512xf32>
    %42 = arith.truncf %41 : vector<8x512xf32> to vector<8x512xbf16>
    %c0_32 = arith.constant 0 : index
    %c0_33 = arith.constant 0 : index
    %43 = vector.load %arg12[%c0_32, %c0_33] : memref<512x512xbf16, #tpu.memory_space<vmem>>, vector<512x512xbf16>
    %cst_34 = arith.constant dense<0.000000e+00> : vector<8x512xf32>
    %44 = tpu.matmul %42, %43, %cst_34 {dimension_numbers = #tpu.dot_dimension_numbers<[1], [0], [0], [1], [0, 0, 1, 1], [], []>} : vector<8x512xbf16>, vector<512x512xbf16>, vector<8x512xf32> -> vector<8x512xf32>
    %45 = arith.addf %40, %44 : vector<8x512xf32>
    %c0_35 = arith.constant 0 : index
    %c0_36 = arith.constant 0 : index
    %46 = vector.load %arg13[%c0_35, %c0_36] : memref<1x512xf32, #tpu.memory_space<vmem>>, vector<1x512xf32>
    %47 = vector.broadcast %46 : vector<1x512xf32> to vector<8x512xf32>
    %48 = arith.addf %45, %47 : vector<8x512xf32>
    %cst_37 = arith.constant 5.000000e-01 : f32
    %49 = vector.broadcast %cst_37 : f32 to vector<8x512xf32>
    %50 = arith.mulf %49, %48 : vector<8x512xf32>
    %cst_38 = arith.constant 4.471500e-02 : f32
    %51 = vector.broadcast %cst_38 : f32 to vector<8x512xf32>
    %52 = arith.mulf %51, %48 : vector<8x512xf32>
    %53 = arith.mulf %52, %48 : vector<8x512xf32>
    %54 = arith.mulf %53, %48 : vector<8x512xf32>
    %55 = arith.addf %48, %54 : vector<8x512xf32>
    %cst_39 = arith.constant 0.797884583 : f32
    %56 = vector.broadcast %cst_39 : f32 to vector<8x512xf32>
    %57 = arith.mulf %56, %55 : vector<8x512xf32>
    %58 = math.tanh %57 : vector<8x512xf32>
    %cst_40 = arith.constant 1.000000e+00 : f32
    %59 = vector.broadcast %cst_40 : f32 to vector<8x512xf32>
    %60 = arith.addf %59, %58 : vector<8x512xf32>
    %61 = arith.mulf %50, %60 : vector<8x512xf32>
    %62 = arith.truncf %61 : vector<8x512xf32> to vector<8x512xbf16>
    %c0_41 = arith.constant 0 : index
    %c0_42 = arith.constant 0 : index
    %63 = vector.load %arg14[%c0_41, %c0_42] : memref<512x256xbf16, #tpu.memory_space<vmem>>, vector<512x256xbf16>
    %cst_43 = arith.constant dense<0.000000e+00> : vector<8x256xf32>
    %64 = tpu.matmul %62, %63, %cst_43 {dimension_numbers = #tpu.dot_dimension_numbers<[1], [0], [0], [1], [0, 0, 1, 1], [], []>} : vector<8x512xbf16>, vector<512x256xbf16>, vector<8x256xf32> -> vector<8x256xf32>
    %c0_44 = arith.constant 0 : index
    %c0_45 = arith.constant 0 : index
    %65 = vector.load %arg15[%c0_44, %c0_45] : memref<1x256xf32, #tpu.memory_space<vmem>>, vector<1x256xf32>
    %66 = vector.broadcast %65 : vector<1x256xf32> to vector<8x256xf32>
    %67 = arith.addf %64, %66 : vector<8x256xf32>
    %c0_46 = arith.constant 0 : index
    %c0_47 = arith.constant 0 : index
    %68 = vector.load %arg16[%c0_46, %c0_47] : memref<8x256xf32, #tpu.memory_space<vmem>>, vector<8x256xf32>
    tpu.vector_store %arg16[%c0_46, %c0_47], %36 {strides = array<i32>} : memref<8x256xf32, #tpu.memory_space<vmem>>, vector<8x256xf32>,
    %c0_48 = arith.constant 0 : index
    %c0_49 = arith.constant 0 : index
    %69 = vector.load %arg17[%c0_48, %c0_49] : memref<8x256xf32, #tpu.memory_space<vmem>>, vector<8x256xf32>
    tpu.vector_store %arg17[%c0_48, %c0_49], %67 {strides = array<i32>} : memref<8x256xf32, #tpu.memory_space<vmem>>, vector<8x256xf32>,
    %70 = arith.mulf %36, %36 : vector<8x256xf32>
    %cst_50 = arith.constant dense<0.000000e+00> : vector<8xf32>
    %71 = vector.multi_reduction <add>, %70, %cst_50 [1] : vector<8x256xf32> to vector<8xf32>
    %72 = vector.shape_cast %71 : vector<8xf32> to vector<8x1xf32>
    %cst_51 = arith.constant 1.000000e-24 : f32
    %73 = vector.broadcast %cst_51 : f32 to vector<8x1xf32>
    %74 = arith.maximumf %72, %73 : vector<8x1xf32>
    %75 = math.rsqrt %74 : vector<8x1xf32>
    %76 = vector.broadcast %75 : vector<8x1xf32> to vector<8x256xf32>
    %77 = arith.mulf %36, %76 : vector<8x256xf32>
    %78 = arith.mulf %67, %67 : vector<8x256xf32>
    %cst_52 = arith.constant dense<0.000000e+00> : vector<8xf32>
    %79 = vector.multi_reduction <add>, %78, %cst_52 [1] : vector<8x256xf32> to vector<8xf32>
    %80 = vector.shape_cast %79 : vector<8xf32> to vector<8x1xf32>
    %cst_53 = arith.constant 1.000000e-24 : f32
    %81 = vector.broadcast %cst_53 : f32 to vector<8x1xf32>
    %82 = arith.maximumf %80, %81 : vector<8x1xf32>
    %83 = math.rsqrt %82 : vector<8x1xf32>
    %84 = vector.broadcast %83 : vector<8x1xf32> to vector<8x256xf32>
    %85 = arith.mulf %67, %84 : vector<8x256xf32>
    %cst_54 = arith.constant dense<0.000000e+00> : vector<8x8xf32>
    %86 = tpu.matmul %77, %85, %cst_54 {dimension_numbers = #tpu.dot_dimension_numbers<[1], [1], [0], [0], [0, 0, 1, 0], [], []>} : vector<8x256xf32>, vector<8x256xf32>, vector<8x8xf32> -> vector<8x8xf32>
    %c0_55 = arith.constant 0 : index
    %c0_56 = arith.constant 0 : index
    %87 = vector.load %arg18[%c0_55, %c0_56] : memref<8x8xf32, #tpu.memory_space<vmem>>, vector<8x8xf32>
    tpu.vector_store %arg18[%c0_55, %c0_56], %86 {strides = array<i32>} : memref<8x8xf32, #tpu.memory_space<vmem>>, vector<8x8xf32>,
    %cst_57 = arith.constant dense<0.000000e+00> : vector<8x8xf32>
    %88 = tpu.matmul %77, %77, %cst_57 {dimension_numbers = #tpu.dot_dimension_numbers<[1], [1], [0], [0], [0, 0, 1, 0], [], []>} : vector<8x256xf32>, vector<8x256xf32>, vector<8x8xf32> -> vector<8x8xf32>
    %c0_58 = arith.constant 0 : index
    %c0_59 = arith.constant 0 : index
    %89 = vector.load %arg19[%c0_58, %c0_59] : memref<8x8xf32, #tpu.memory_space<vmem>>, vector<8x8xf32>
    tpu.vector_store %arg19[%c0_58, %c0_59], %88 {strides = array<i32>} : memref<8x8xf32, #tpu.memory_space<vmem>>, vector<8x8xf32>,
    %cst_60 = arith.constant dense<0.000000e+00> : vector<8x8xf32>
    %90 = tpu.matmul %85, %85, %cst_60 {dimension_numbers = #tpu.dot_dimension_numbers<[1], [1], [0], [0], [0, 0, 1, 0], [], []>} : vector<8x256xf32>, vector<8x256xf32>, vector<8x8xf32> -> vector<8x8xf32>
    %c0_61 = arith.constant 0 : index
    %c0_62 = arith.constant 0 : index
    %91 = vector.load %arg20[%c0_61, %c0_62] : memref<8x8xf32, #tpu.memory_space<vmem>>, vector<8x8xf32>
    tpu.vector_store %arg20[%c0_61, %c0_62], %90 {strides = array<i32>} : memref<8x8xf32, #tpu.memory_space<vmem>>, vector<8x8xf32>,
    return
  }
}

module attributes {stable_mosaic.version = 11 : i64} {
  func.func @_disc_bce_kernel(%arg0: memref<24x256xf32, #tpu.memory_space<vmem>>, %arg1: memref<24x256xf32, #tpu.memory_space<vmem>>, %arg2: memref<256x512xbf16, #tpu.memory_space<vmem>>, %arg3: memref<256x512xbf16, #tpu.memory_space<vmem>>, %arg4: memref<1x512xf32, #tpu.memory_space<vmem>>, %arg5: memref<1x512xf32, #tpu.memory_space<vmem>>, %arg6: memref<1x1xf32, #tpu.memory_space<vmem>>, %arg7: memref<1x1xf32, #tpu.memory_space<vmem>>) attributes {dimension_semantics = [], scalar_prefetch = 0 : i64, scratch_operands = 0 : i64, tpu.core_type = #tpu.core_type<tc>} {
    %c0 = arith.constant 0 : index
    %c0_0 = arith.constant 0 : index
    %0 = vector.load %arg0[%c0, %c0_0] : memref<24x256xf32, #tpu.memory_space<vmem>>, vector<24x256xf32>
    %1 = arith.truncf %0 : vector<24x256xf32> to vector<24x256xbf16>
    %c0_1 = arith.constant 0 : index
    %c0_2 = arith.constant 0 : index
    %2 = vector.load %arg2[%c0_1, %c0_2] : memref<256x512xbf16, #tpu.memory_space<vmem>>, vector<256x512xbf16>
    %cst = arith.constant dense<0.000000e+00> : vector<24x512xf32>
    %3 = tpu.matmul %1, %2, %cst {dimension_numbers = #tpu.dot_dimension_numbers<[1], [0], [0], [1], [0, 0, 1, 1], [], []>} : vector<24x256xbf16>, vector<256x512xbf16>, vector<24x512xf32> -> vector<24x512xf32>
    %c0_3 = arith.constant 0 : index
    %c0_4 = arith.constant 0 : index
    %4 = vector.load %arg1[%c0_3, %c0_4] : memref<24x256xf32, #tpu.memory_space<vmem>>, vector<24x256xf32>
    %5 = arith.truncf %4 : vector<24x256xf32> to vector<24x256xbf16>
    %c0_5 = arith.constant 0 : index
    %c0_6 = arith.constant 0 : index
    %6 = vector.load %arg3[%c0_5, %c0_6] : memref<256x512xbf16, #tpu.memory_space<vmem>>, vector<256x512xbf16>
    %cst_7 = arith.constant dense<0.000000e+00> : vector<24x512xf32>
    %7 = tpu.matmul %5, %6, %cst_7 {dimension_numbers = #tpu.dot_dimension_numbers<[1], [0], [0], [1], [0, 0, 1, 1], [], []>} : vector<24x256xbf16>, vector<256x512xbf16>, vector<24x512xf32> -> vector<24x512xf32>
    %8 = arith.addf %3, %7 : vector<24x512xf32>
    %c0_8 = arith.constant 0 : index
    %c0_9 = arith.constant 0 : index
    %9 = vector.load %arg4[%c0_8, %c0_9] : memref<1x512xf32, #tpu.memory_space<vmem>>, vector<1x512xf32>
    %10 = vector.broadcast %9 : vector<1x512xf32> to vector<24x512xf32>
    %11 = arith.addf %8, %10 : vector<24x512xf32>
    %cst_10 = arith.constant 5.000000e-01 : f32
    %12 = vector.broadcast %cst_10 : f32 to vector<24x512xf32>
    %13 = arith.mulf %12, %11 : vector<24x512xf32>
    %cst_11 = arith.constant 4.471500e-02 : f32
    %14 = vector.broadcast %cst_11 : f32 to vector<24x512xf32>
    %15 = arith.mulf %14, %11 : vector<24x512xf32>
    %16 = arith.mulf %15, %11 : vector<24x512xf32>
    %17 = arith.mulf %16, %11 : vector<24x512xf32>
    %18 = arith.addf %11, %17 : vector<24x512xf32>
    %cst_12 = arith.constant 0.797884583 : f32
    %19 = vector.broadcast %cst_12 : f32 to vector<24x512xf32>
    %20 = arith.mulf %19, %18 : vector<24x512xf32>
    %21 = math.tanh %20 : vector<24x512xf32>
    %cst_13 = arith.constant 1.000000e+00 : f32
    %22 = vector.broadcast %cst_13 : f32 to vector<24x512xf32>
    %23 = arith.addf %22, %21 : vector<24x512xf32>
    %24 = arith.mulf %13, %23 : vector<24x512xf32>
    %c0_14 = arith.constant 0 : index
    %c0_15 = arith.constant 0 : index
    %25 = vector.load %arg5[%c0_14, %c0_15] : memref<1x512xf32, #tpu.memory_space<vmem>>, vector<1x512xf32>
    %26 = vector.broadcast %25 : vector<1x512xf32> to vector<24x512xf32>
    %27 = arith.mulf %24, %26 : vector<24x512xf32>
    %cst_16 = arith.constant dense<0.000000e+00> : vector<24xf32>
    %28 = vector.multi_reduction <add>, %27, %cst_16 [1] : vector<24x512xf32> to vector<24xf32>
    %29 = vector.shape_cast %28 : vector<24xf32> to vector<24x1xf32>
    %c0_17 = arith.constant 0 : index
    %c0_18 = arith.constant 0 : index
    %30 = vector.load %arg6[%c0_17, %c0_18] : memref<1x1xf32, #tpu.memory_space<vmem>>, vector<1x1xf32>
    %31 = vector.broadcast %30 : vector<1x1xf32> to vector<24x1xf32>
    %32 = arith.addf %29, %31 : vector<24x1xf32>
    %33 = tpu.iota {dimensions = array<i32: 0>} : vector<24x1xi32>
    %c8_i32 = arith.constant 8 : i32
    %34 = vector.broadcast %c8_i32 : i32 to vector<24x1xi32>
    %35 = arith.cmpi slt, %33, %34 : vector<24x1xi32>
    %36 = arith.extui %35 : vector<24x1xi1> to vector<24x1xi32>
    %37 = arith.sitofp %36 : vector<24x1xi32> to vector<24x1xf32>
    %cst_19 = arith.constant 0.000000e+00 : f32
    %38 = vector.broadcast %cst_19 : f32 to vector<24x1xf32>
    %39 = arith.maximumf %32, %38 : vector<24x1xf32>
    %40 = arith.mulf %32, %37 : vector<24x1xf32>
    %41 = arith.subf %39, %40 : vector<24x1xf32>
    %42 = math.absf %32 : vector<24x1xf32>
    %cst_20 = arith.constant 0.000000e+00 : f32
    %43 = vector.broadcast %cst_20 : f32 to vector<24x1xf32>
    %44 = arith.subf %43, %42 : vector<24x1xf32>
    %45 = math.exp %44 : vector<24x1xf32>
    %46 = math.log1p %45 : vector<24x1xf32>
    %47 = arith.addf %41, %46 : vector<24x1xf32>
    %cst_21 = arith.constant dense<0.000000e+00> : vector<1xf32>
    %48 = vector.multi_reduction <add>, %47, %cst_21 [0] : vector<24x1xf32> to vector<1xf32>
    %49 = vector.shape_cast %48 : vector<1xf32> to vector<1x1xf32>
    %cst_22 = arith.constant 0.0416666679 : f32
    %50 = vector.broadcast %cst_22 : f32 to vector<1x1xf32>
    %51 = arith.mulf %49, %50 : vector<1x1xf32>
    %c0_23 = arith.constant 0 : index
    %c0_24 = arith.constant 0 : index
    %52 = vector.load %arg7[%c0_23, %c0_24] : memref<1x1xf32, #tpu.memory_space<vmem>>, vector<1x1xf32>
    tpu.vector_store %arg7[%c0_23, %c0_24], %51 {strides = array<i32>} : memref<1x1xf32, #tpu.memory_space<vmem>>, vector<1x1xf32>,
    return
  }
}

</mosaic_0001>

<bundles_post_ra>
// kernel: _forward.3
= control target key start
LH: loop header
LB: loop body
LE: loop exit
PB: predicated region body
PF: predicated region fallthrough
CT: control target
= control target key end

     0   :  { %s2304_s0 = inlined_call_operand.vmem [shape: f32[24,256], index: 0, kind: input, shape index: {}]   ;;  %s2305_s1 = inlined_call_operand.vmem [shape: f32[24,256], index: 1, kind: input, shape index: {}]   ;;  %s2306_s2 = inlined_call_operand.vmem [shape: bf16[256,512], index: 2, kind: input, shape index: {}]   ;;  %s2307_s3 = inlined_call_operand.vmem [shape: bf16[256,512], index: 3, kind: input, shape index: {}]   ;;  %s2308_s4 = inlined_call_operand.vmem [shape: f32[1,512], index: 4, kind: input, shape index: {}]   ;;  %s2309_s5 = inlined_call_operand.vmem [shape: f32[1,512], index: 5, kind: input, shape index: {}]   ;;  %s2310_s6 = inlined_call_operand.<no memory space> [shape: f32[1,1], index: 6, kind: input, shape index: {}]   ;;  %s2311_s7 = inlined_call_operand.hbm [shape: f32[1,1], index: 7, kind: output, shape index: {}]  }
   0x1   :  { %v12_v0 = vstv %s2310_s6 }
   0x2   :  { %13 = vst [vmem:[#allocation2] sm:$0x1] %v12_v0 }
   0x3   :  { %v1453_v1 = vld [vmem:[%s2307_s3 + $0x4] ss:$16 sps:$4 sm:$0xff]   ;;  %v1455_v2 = vld [vmem:[%s2307_s3 + $0xc] ss:$16 sps:$4 sm:$0xff]   ;;  %v1457_v3 = vld [vmem:[%s2307_s3] ss:$16 sps:$4 sm:$0xff]  }
   0x4   :  { %497 = vmatprep.subr.bf16.mxu0 %v1453_v1  ;;  %v1458_v4 = vld [vmem:[%s2307_s3 + $0x8] ss:$16 sps:$4 sm:$0xff]   ;;  %548 = vmatprep.subr.bf16.mxu1 %v1455_v2  ;;  %v1459_v5 = vld [vmem:[%s2307_s3 + $0x24] ss:$16 sps:$4 sm:$0xff]   ;;  %v1461_v6 = vld [vmem:[%s2307_s3 + $0x2c] ss:$16 sps:$4 sm:$0xff]  }
   0x5   :  { %498 = vmatpush1.bf16.msra.mxu0 %v1457_v3  ;;  %549 = vmatpush1.bf16.msra.mxu1 %v1458_v4  ;;  %v1463_v7 = vld [vmem:[%s2307_s3 + $0x20] ss:$16 sps:$4 sm:$0xff]   ;;  %v1464_v8 = vld [vmem:[%s2307_s3 + $0x28] ss:$16 sps:$4 sm:$0xff]   ;;  %v1465_v9 = vld [vmem:[%s2307_s3 + $0x44] ss:$16 sps:$4 sm:$0xff]  }
   0x6   :  { %499 = vmatprep.subr.bf16.mxu0 %v1459_v5  ;;  %550 = vmatprep.subr.bf16.mxu1 %v1461_v6  ;;  %v1467_v10 = vld [vmem:[%s2307_s3 + $0x4c] ss:$16 sps:$4 sm:$0xff]   ;;  %v1469_v11 = vld [vmem:[%s2307_s3 + $0x40] ss:$16 sps:$4 sm:$0xff]   ;;  %v1470_v12 = vld [vmem:[%s2307_s3 + $0x48] ss:$16 sps:$4 sm:$0xff]  }
   0x7   :  { %v1471_v13 = vld [vmem:[%s2307_s3 + $0x64] ss:$16 sps:$4 sm:$0xff]   ;;  %v1473_v14 = vld [vmem:[%s2307_s3 + $0x6c] ss:$16 sps:$4 sm:$0xff]   ;;  %v1475_v15 = vld [vmem:[%s2307_s3 + $0x60] ss:$16 sps:$4 sm:$0xff]  }
   0x8   :  { %v1476_v16 = vld [vmem:[%s2307_s3 + $0x68] ss:$16 sps:$4 sm:$0xff]   ;;  %v1477_v17 = vld [vmem:[%s2307_s3 + $0x84] ss:$16 sps:$4 sm:$0xff]   ;;  %v1479_v18 = vld [vmem:[%s2307_s3 + $0x8c] ss:$16 sps:$4 sm:$0xff]  }
   0x9   :  { %500 = vmatpush1.bf16.msra.mxu0 %v1463_v7  ;;  %551 = vmatpush1.bf16.msra.mxu1 %v1464_v8  ;;  %v1481_v19 = vld [vmem:[%s2307_s3 + $0x80] ss:$16 sps:$4 sm:$0xff]   ;;  %v1482_v20 = vld [vmem:[%s2307_s3 + $0x88] ss:$16 sps:$4 sm:$0xff]   ;;  %v1483_v21 = vld [vmem:[%s2307_s3 + $0xa4] ss:$16 sps:$4 sm:$0xff]  }
   0xa   :  { %501 = vmatprep.subr.bf16.mxu0 %v1465_v9  ;;  %552 = vmatprep.subr.bf16.mxu1 %v1467_v10  ;;  %v1485_v22 = vld [vmem:[%s2307_s3 + $0xac] ss:$16 sps:$4 sm:$0xff]   ;;  %v1487_v23 = vld [vmem:[%s2307_s3 + $0xa0] ss:$16 sps:$4 sm:$0xff]   ;;  %v1488_v24 = vld [vmem:[%s2307_s3 + $0xa8] ss:$16 sps:$4 sm:$0xff]  }
   0xb   :  { %v1489_v25 = vld [vmem:[%s2307_s3 + $0xc4] ss:$16 sps:$4 sm:$0xff]   ;;  %v1491_v26 = vld [vmem:[%s2307_s3 + $0xcc] ss:$16 sps:$4 sm:$0xff]   ;;  %v1493_v27 = vld [vmem:[%s2307_s3 + $0xc0] ss:$16 sps:$4 sm:$0xff]  }
   0xc   :  { %v1494_v28 = vld [vmem:[%s2307_s3 + $0xc8] ss:$16 sps:$4 sm:$0xff]   ;;  %v1495_v29 = vld [vmem:[%s2307_s3 + $0xe4] ss:$16 sps:$4 sm:$0xff]   ;;  %v1497_v30 = vld [vmem:[%s2307_s3 + $0xec] ss:$16 sps:$4 sm:$0xff]  }
   0xd   :  { %502 = vmatpush1.bf16.msra.mxu0 %v1469_v11  ;;  %553 = vmatpush1.bf16.msra.mxu1 %v1470_v12  ;;  %v1499_v31 = vld [vmem:[%s2307_s3 + $0xe0] ss:$16 sps:$4 sm:$0xff]   ;;  %v1500_v32 = vld [vmem:[%s2307_s3 + $0xe8] ss:$16 sps:$4 sm:$0xff]   ;;  %v1501_v33 = vld [vmem:[%s2307_s3 + $0x104] ss:$16 sps:$4 sm:$0xff]  }
   0xe   :  { %503 = vmatprep.subr.bf16.mxu0 %v1471_v13  ;;  %554 = vmatprep.subr.bf16.mxu1 %v1473_v14  ;;  %v1503_v34 = vld [vmem:[%s2307_s3 + $0x10c] ss:$16 sps:$4 sm:$0xff]   ;;  %v1505_v35 = vld [vmem:[%s2307_s3 + $0x100] ss:$16 sps:$4 sm:$0xff]   ;;  %v1506_v36 = vld [vmem:[%s2307_s3 + $0x108] ss:$16 sps:$4 sm:$0xff]  }
   0xf   :  { %v1507_v37 = vld [vmem:[%s2307_s3 + $0x124] ss:$16 sps:$4 sm:$0xff]   ;;  %v1509_v38 = vld [vmem:[%s2307_s3 + $0x12c] ss:$16 sps:$4 sm:$0xff]   ;;  %v1511_v39 = vld [vmem:[%s2307_s3 + $0x120] ss:$16 sps:$4 sm:$0xff]  }
  0x10   :  { %v1512_v40 = vld [vmem:[%s2307_s3 + $0x128] ss:$16 sps:$4 sm:$0xff]   ;;  %v1513_v41 = vld [vmem:[%s2307_s3 + $0x144] ss:$16 sps:$4 sm:$0xff]   ;;  %v1515_v42 = vld [vmem:[%s2307_s3 + $0x14c] ss:$16 sps:$4 sm:$0xff]  }
  0x11   :  { %504 = vmatpush1.bf16.msra.mxu0 %v1475_v15  ;;  %555 = vmatpush1.bf16.msra.mxu1 %v1476_v16  ;;  %v1517_v43 = vld [vmem:[%s2307_s3 + $0x140] ss:$16 sps:$4 sm:$0xff]   ;;  %v1518_v44 = vld [vmem:[%s2307_s3 + $0x148] ss:$16 sps:$4 sm:$0xff]   ;;  %v1519_v45 = vld [vmem:[%s2307_s3 + $0x164] ss:$16 sps:$4 sm:$0xff]  }
  0x12   :  { %505 = vmatprep.subr.bf16.mxu0 %v1477_v17  ;;  %556 = vmatprep.subr.bf16.mxu1 %v1479_v18  ;;  %v1521_v46 = vld [vmem:[%s2307_s3 + $0x16c] ss:$16 sps:$4 sm:$0xff]   ;;  %v1523_v49 = vld [vmem:[%s2307_s3 + $0x160] ss:$16 sps:$4 sm:$0xff]   ;;  %v1524_v50 = vld [vmem:[%s2307_s3 + $0x168] ss:$16 sps:$4 sm:$0xff]  }
  0x13   :  { %v104_v47 = vld [vmem:[%s2305_s1 + $0x8] sm:$0xff]  ;;  %v106_v48 = vld [vmem:[%s2305_s1 + $0x18] sm:$0xff]  ;;  %v1525_v52 = vld [vmem:[%s2307_s3 + $0x184] ss:$16 sps:$4 sm:$0xff]  }
  0x14   :  { %v110_v51 = vpack.c.bf16 %v106_v48, %v104_v47  ;;  %v1527_v53 = vld [vmem:[%s2307_s3 + $0x18c] ss:$16 sps:$4 sm:$0xff]   ;;  %v1529_v54 = vld [vmem:[%s2307_s3 + $0x180] ss:$16 sps:$4 sm:$0xff]   ;;  %v1530_v55 = vld [vmem:[%s2307_s3 + $0x188] ss:$16 sps:$4 sm:$0xff]  }
  0x15   :  { %506 = vmatpush1.bf16.msra.mxu0 %v1481_v19  ;;  %557 = vmatpush1.bf16.msra.mxu1 %v1482_v20  ;;  %v1531_v56 = vld [vmem:[%s2307_s3 + $0x1a4] ss:$16 sps:$4 sm:$0xff]   ;;  %v1533_v57 = vld [vmem:[%s2307_s3 + $0x1ac] ss:$16 sps:$4 sm:$0xff]   ;;  %v1535_v58 = vld [vmem:[%s2307_s3 + $0x1a0] ss:$16 sps:$4 sm:$0xff]  }
  0x16   :  { %507 = vmatprep.subr.bf16.mxu0 %v1483_v21  ;;  %558 = vmatprep.subr.bf16.mxu1 %v1485_v22  ;;  %v1536_v59 = vld [vmem:[%s2307_s3 + $0x1a8] ss:$16 sps:$4 sm:$0xff]   ;;  %v1537_v60 = vld [vmem:[%s2307_s3 + $0x1c4] ss:$16 sps:$4 sm:$0xff]   ;;  %v1539_v61 = vld [vmem:[%s2307_s3 + $0x1cc] ss:$16 sps:$4 sm:$0xff]  }
  0x17   :  { %529 = vmatprep.mubr.bf16.mxu0 %v110_v51  ;;  %580 = vmatprep.mubr.bf16.mxu1 %v110_v51  ;;  %v1541_v62 = vld [vmem:[%s2307_s3 + $0x1c0] ss:$16 sps:$4 sm:$0xff]   ;;  %v1542_v63 = vld [vmem:[%s2307_s3 + $0x1c8] ss:$16 sps:$4 sm:$0xff]   ;;  %v1543_v0 = vld [vmem:[%s2307_s3 + $0x1e4] ss:$16 sps:$4 sm:$0xff]  }
  0x18   :  { %v1545_v1 = vld [vmem:[%s2307_s3 + $0x1ec] ss:$16 sps:$4 sm:$0xff]   ;;  %v1547_v2 = vld [vmem:[%s2307_s3 + $0x1e0] ss:$16 sps:$4 sm:$0xff]   ;;  %v1548_v3 = vld [vmem:[%s2307_s3 + $0x1e8] ss:$16 sps:$4 sm:$0xff]  }
  0x19   :  { %508 = vmatpush1.bf16.msra.mxu0 %v1487_v23  ;;  %559 = vmatpush1.bf16.msra.mxu1 %v1488_v24  ;;  %v1551_v4 = vld [vmem:[%s2306_s2 + $0x4] ss:$16 sps:$4 sm:$0xff]   ;;  %v1554_v7 = vld [vmem:[%s2306_s2 + $0xc] ss:$16 sps:$4 sm:$0xff]   ;;  %v1549_v8 = vld [vmem:[%s2306_s2] ss:$16 sps:$4 sm:$0xff]  }
  0x1a   :  { %509 = vmatprep.subr.bf16.mxu0 %v1489_v25  ;;  %560 = vmatprep.subr.bf16.mxu1 %v1491_v26  ;;  %v103_v5 = vld [vmem:[%s2305_s1] sm:$0xff]  ;;  %v105_v6 = vld [vmem:[%s2305_s1 + $0x10] sm:$0xff]  ;;  %v1552_v9 = vld [vmem:[%s2306_s2 + $0x8] ss:$16 sps:$4 sm:$0xff]  }
  0x1b   :  { %v109_v10 = vpack.c.bf16 %v105_v6, %v103_v5  ;;  %v1557_v11 = vld [vmem:[%s2306_s2 + $0x24] ss:$16 sps:$4 sm:$0xff]   ;;  %v1560_v12 = vld [vmem:[%s2306_s2 + $0x2c] ss:$16 sps:$4 sm:$0xff]   ;;  %v1555_v13 = vld [vmem:[%s2306_s2 + $0x20] ss:$16 sps:$4 sm:$0xff]  }
  0x1c   :  { %v1558_v14 = vld [vmem:[%s2306_s2 + $0x28] ss:$16 sps:$4 sm:$0xff]   ;;  %v1563_v15 = vld [vmem:[%s2306_s2 + $0x44] ss:$16 sps:$4 sm:$0xff]   ;;  %v1566_v16 = vld [vmem:[%s2306_s2 + $0x4c] ss:$16 sps:$4 sm:$0xff]  }
  0x1d   :  { %510 = vmatpush1.bf16.msra.mxu0 %v1493_v27  ;;  %561 = vmatpush1.bf16.msra.mxu1 %v1494_v28  ;;  %v1561_v17 = vld [vmem:[%s2306_s2 + $0x40] ss:$16 sps:$4 sm:$0xff]   ;;  %v1564_v18 = vld [vmem:[%s2306_s2 + $0x48] ss:$16 sps:$4 sm:$0xff]   ;;  %v1569_v19 = vld [vmem:[%s2306_s2 + $0x64] ss:$16 sps:$4 sm:$0xff]  }
  0x1e   :  { %511 = vmatprep.subr.bf16.mxu0 %v1495_v29  ;;  %562 = vmatprep.subr.bf16.mxu1 %v1497_v30  ;;  %v1572_v20 = vld [vmem:[%s2306_s2 + $0x6c] ss:$16 sps:$4 sm:$0xff]   ;;  %v1567_v21 = vld [vmem:[%s2306_s2 + $0x60] ss:$16 sps:$4 sm:$0xff]   ;;  %v1570_v22 = vld [vmem:[%s2306_s2 + $0x68] ss:$16 sps:$4 sm:$0xff]  }
  0x1f   :  { %v1575_v23 = vld [vmem:[%s2306_s2 + $0x84] ss:$16 sps:$4 sm:$0xff]   ;;  %v1578_v24 = vld [vmem:[%s2306_s2 + $0x8c] ss:$16 sps:$4 sm:$0xff]   ;;  %v1573_v26 = vld [vmem:[%s2306_s2 + $0x80] ss:$16 sps:$4 sm:$0xff]  }
  0x20   :  { %v108_v25 = vld [vmem:[%s2305_s1 + $0x28] sm:$0xff]  ;;  %v1581_v29 = vld [vmem:[%s2306_s2 + $0xa4] ss:$16 sps:$4 sm:$0xff]  }
  0x21   :  { %512 = vmatpush1.bf16.msra.mxu0 %v1499_v31  ;;  %563 = vmatpush1.bf16.msra.mxu1 %v1500_v32  ;;  %v112_v27 = vpack.c.bf16 %v108_v25, %v108_v25  ;;  %v1576_v28 = vld [vmem:[%s2306_s2 + $0x88] ss:$16 sps:$4 sm:$0xff]   ;;  %v1584_v30 = vld [vmem:[%s2306_s2 + $0xac] ss:$16 sps:$4 sm:$0xff]   ;;  %v107_v31 = vld [vmem:[%s2305_s1 + $0x20] sm:$0xff] }
  0x22   :  { %513 = vmatprep.subr.bf16.mxu0 %v1501_v33  ;;  %564 = vmatprep.subr.bf16.mxu1 %v1503_v34  ;;  %v111_v32 = vpack.c.bf16 %v107_v31, %v107_v31  ;;  %v1579_v33 = vld [vmem:[%s2306_s2 + $0xa0] ss:$16 sps:$4 sm:$0xff]   ;;  %v1582_v34 = vld [vmem:[%s2306_s2 + $0xa8] ss:$16 sps:$4 sm:$0xff]  }
  0x25   :  { %514 = vmatpush1.bf16.msra.mxu0 %v1505_v35  ;;  %565 = vmatpush1.bf16.msra.mxu1 %v1506_v36  ;;  %v1587_v35 = vld [vmem:[%s2306_s2 + $0xc4] ss:$16 sps:$4 sm:$0xff]   ;;  %v1590_v36 = vld [vmem:[%s2306_s2 + $0xcc] ss:$16 sps:$4 sm:$0xff]  }
  0x26   :  { %515 = vmatprep.subr.bf16.mxu0 %v1507_v37  ;;  %566 = vmatprep.subr.bf16.mxu1 %v1509_v38  ;;  %v30_v37 = vld [vmem:[%s2304_s0 + $0x8] sm:$0xff]  ;;  %v32_v38 = vld [vmem:[%s2304_s0 + $0x18] sm:$0xff] }
  0x29   :  { %516 = vmatpush1.bf16.msra.mxu0 %v1511_v39  ;;  %567 = vmatpush1.bf16.msra.mxu1 %v1512_v40  ;;  %v1585_v39 = vld [vmem:[%s2306_s2 + $0xc0] ss:$16 sps:$4 sm:$0xff]   ;;  %v1588_v40 = vld [vmem:[%s2306_s2 + $0xc8] ss:$16 sps:$4 sm:$0xff]  }
  0x2a   :  { %517 = vmatprep.subr.bf16.mxu0 %v1513_v41  ;;  %568 = vmatprep.subr.bf16.mxu1 %v1515_v42  ;;  %v36_v41 = vpack.c.bf16 %v32_v38, %v30_v37  ;;  %v1593_v42 = vld [vmem:[%s2306_s2 + $0xe4] ss:$16 sps:$4 sm:$0xff]  }
  0x2d   :  { %518 = vmatpush1.bf16.msra.mxu0 %v1517_v43  ;;  %569 = vmatpush1.bf16.msra.mxu1 %v1518_v44  ;;  %v1596_v43 = vld [vmem:[%s2306_s2 + $0xec] ss:$16 sps:$4 sm:$0xff]  }
  0x2e   :  { %519 = vmatprep.subr.bf16.mxu0 %v1519_v45  ;;  %570 = vmatprep.subr.bf16.mxu1 %v1521_v46 }
  0x31   :  { %520 = vmatpush1.bf16.msra.mxu0 %v1523_v49  ;;  %571 = vmatpush1.bf16.msra.mxu1 %v1524_v50 }
  0x32   :  { %521 = vmatprep.subr.bf16.mxu0 %v1525_v52  ;;  %572 = vmatprep.subr.bf16.mxu1 %v1527_v53 }
  0x35   :  { %522 = vmatpush1.bf16.msra.mxu0 %v1529_v54  ;;  %573 = vmatpush1.bf16.msra.mxu1 %v1530_v55 }
  0x36   :  { %523 = vmatprep.subr.bf16.mxu0 %v1531_v56  ;;  %574 = vmatprep.subr.bf16.mxu1 %v1533_v57 }
  0x39   :  { %524 = vmatpush1.bf16.msra.mxu0 %v1535_v58  ;;  %575 = vmatpush1.bf16.msra.mxu1 %v1536_v59 }
  0x3a   :  { %525 = vmatprep.subr.bf16.mxu0 %v1537_v60  ;;  %576 = vmatprep.subr.bf16.mxu1 %v1539_v61 }
  0x3d   :  { %526 = vmatpush1.bf16.msra.mxu0 %v1541_v62  ;;  %577 = vmatpush1.bf16.msra.mxu1 %v1542_v63 }
  0x3e   :  { %527 = vmatprep.subr.bf16.mxu0 %v1543_v0  ;;  %578 = vmatprep.subr.bf16.mxu1 %v1545_v1 }
  0x41   :  { %528 = vmatpush1.bf16.msra.mxu0 %v1547_v2  ;;  %579 = vmatpush1.bf16.msra.mxu1 %v1548_v3 }
  0x42   :  { %919 = vmatprep.subr.bf16.mxu0 %v1551_v4  ;;  %970 = vmatprep.subr.bf16.mxu1 %v1554_v7 }
  0x44   :  { %530 = vmatmul.mubr.bf16.vlgmr.msra.gmra.mrb[0].mxu0 %v109_v10  ;;  %581 = vmatmul.mubr.bf16.vlgmr.msra.gmra.mrb[0].mxu1 %v109_v10 }
  0x45   :  { %920 = vmatpush1.bf16.msra.mxu0 %v1549_v8  ;;  %971 = vmatpush1.bf16.msra.mxu1 %v1552_v9 }
  0x46   :  { %921 = vmatprep.subr.bf16.mxu0 %v1557_v11  ;;  %972 = vmatprep.subr.bf16.mxu1 %v1560_v12 }
  0x47   :  { %539 = vmatprep.mubr.bf16.mxu0 %v112_v27  ;;  %590 = vmatprep.mubr.bf16.mxu1 %v112_v27 }
  0x49   :  { %922 = vmatpush1.bf16.msra.mxu0 %v1555_v13  ;;  %973 = vmatpush1.bf16.msra.mxu1 %v1558_v14 }
  0x4a   :  { %923 = vmatprep.subr.bf16.mxu0 %v1563_v15  ;;  %974 = vmatprep.subr.bf16.mxu1 %v1566_v16 }
  0x4c   :  { %540 = vmatmul.mubr.bf16.gmra.mrb[4].mxu0 %v111_v32  ;;  %591 = vmatmul.mubr.bf16.gmra.mrb[4].mxu1 %v111_v32 }
  0x4d   :  { %924 = vmatpush1.bf16.msra.mxu0 %v1561_v17  ;;  %975 = vmatpush1.bf16.msra.mxu1 %v1564_v18 }
  0x4e   :  { %925 = vmatprep.subr.bf16.mxu0 %v1569_v19  ;;  %976 = vmatprep.subr.bf16.mxu1 %v1572_v20 }
  0x51   :  { %926 = vmatpush1.bf16.msra.mxu0 %v1567_v21  ;;  %977 = vmatpush1.bf16.msra.mxu1 %v1570_v22 }
  0x52   :  { %927 = vmatprep.subr.bf16.mxu0 %v1575_v23  ;;  %978 = vmatprep.subr.bf16.mxu1 %v1578_v24 }
  0x55   :  { %928 = vmatpush1.bf16.msra.mxu0 %v1573_v26  ;;  %979 = vmatpush1.bf16.msra.mxu1 %v1576_v28 }
  0x56   :  { %929 = vmatprep.subr.bf16.mxu0 %v1581_v29  ;;  %980 = vmatprep.subr.bf16.mxu1 %v1584_v30 }
  0x59   :  { %930 = vmatpush1.bf16.msra.mxu0 %v1579_v33  ;;  %981 = vmatpush1.bf16.msra.mxu1 %v1582_v34 }
  0x5a   :  { %931 = vmatprep.subr.bf16.mxu0 %v1587_v35  ;;  %982 = vmatprep.subr.bf16.mxu1 %v1590_v36 }
  0x5b   :  { %14 = vsyncpa [#allocation4], 0  ;;  %951 = vmatprep.mubr.bf16.mxu0 %v36_v41  ;;  %1002 = vmatprep.mubr.bf16.mxu1 %v36_v41  ;;  %v1591_v44 = vld [vmem:[%s2306_s2 + $0xe0] ss:$16 sps:$4 sm:$0xff]   ;;  %v1594_v45 = vld [vmem:[%s2306_s2 + $0xe8] ss:$16 sps:$4 sm:$0xff]   ;;  %v1023_v29 = vlaneseq }
  0x5c   :  { %v1599_v46 = vld [vmem:[%s2306_s2 + $0x104] ss:$16 sps:$4 sm:$0xff]   ;;  %v1602_v47 = vld [vmem:[%s2306_s2 + $0x10c] ss:$16 sps:$4 sm:$0xff]   ;;  %v1597_v48 = vld [vmem:[%s2306_s2 + $0x100] ss:$16 sps:$4 sm:$0xff]  }
  0x5d   :  { %932 = vmatpush1.bf16.msra.mxu0 %v1585_v39  ;;  %983 = vmatpush1.bf16.msra.mxu1 %v1588_v40  ;;  %v1600_v49 = vld [vmem:[%s2306_s2 + $0x108] ss:$16 sps:$4 sm:$0xff]   ;;  %v1605_v50 = vld [vmem:[%s2306_s2 + $0x124] ss:$16 sps:$4 sm:$0xff]   ;;  %v1608_v51 = vld [vmem:[%s2306_s2 + $0x12c] ss:$16 sps:$4 sm:$0xff]  }
  0x5e   :  { %933 = vmatprep.subr.bf16.mxu0 %v1593_v42  ;;  %984 = vmatprep.subr.bf16.mxu1 %v1596_v43  ;;  %v1603_v52 = vld [vmem:[%s2306_s2 + $0x120] ss:$16 sps:$4 sm:$0xff]   ;;  %v1606_v53 = vld [vmem:[%s2306_s2 + $0x128] ss:$16 sps:$4 sm:$0xff]   ;;  %v1611_v54 = vld [vmem:[%s2306_s2 + $0x144] ss:$16 sps:$4 sm:$0xff]  }
  0x5f   :  { %v1614_v55 = vld [vmem:[%s2306_s2 + $0x14c] ss:$16 sps:$4 sm:$0xff]   ;;  %v1609_v56 = vld [vmem:[%s2306_s2 + $0x140] ss:$16 sps:$4 sm:$0xff]   ;;  %v1612_v57 = vld [vmem:[%s2306_s2 + $0x148] ss:$16 sps:$4 sm:$0xff]  }
  0x60   :  { %v1617_v58 = vld [vmem:[%s2306_s2 + $0x164] ss:$16 sps:$4 sm:$0xff]   ;;  %v1620_v59 = vld [vmem:[%s2306_s2 + $0x16c] ss:$16 sps:$4 sm:$0xff]   ;;  %v1615_v60 = vld [vmem:[%s2306_s2 + $0x160] ss:$16 sps:$4 sm:$0xff]  }
  0x61   :  { %934 = vmatpush1.bf16.msra.mxu0 %v1591_v44  ;;  %985 = vmatpush1.bf16.msra.mxu1 %v1594_v45  ;;  %v1618_v61 = vld [vmem:[%s2306_s2 + $0x168] ss:$16 sps:$4 sm:$0xff]   ;;  %v1623_v62 = vld [vmem:[%s2306_s2 + $0x184] ss:$16 sps:$4 sm:$0xff]   ;;  %v1626_v63 = vld [vmem:[%s2306_s2 + $0x18c] ss:$16 sps:$4 sm:$0xff]  }
  0x62   :  { %935 = vmatprep.subr.bf16.mxu0 %v1599_v46  ;;  %986 = vmatprep.subr.bf16.mxu1 %v1602_v47  ;;  %v1621_v0 = vld [vmem:[%s2306_s2 + $0x180] ss:$16 sps:$4 sm:$0xff]   ;;  %v1624_v1 = vld [vmem:[%s2306_s2 + $0x188] ss:$16 sps:$4 sm:$0xff]   ;;  %v1629_v2 = vld [vmem:[%s2306_s2 + $0x1a4] ss:$16 sps:$4 sm:$0xff]  }
  0x63   :  { %v1632_v3 = vld [vmem:[%s2306_s2 + $0x1ac] ss:$16 sps:$4 sm:$0xff]   ;;  %v1627_v4 = vld [vmem:[%s2306_s2 + $0x1a0] ss:$16 sps:$4 sm:$0xff]   ;;  %v1630_v5 = vld [vmem:[%s2306_s2 + $0x1a8] ss:$16 sps:$4 sm:$0xff]  }
  0x64   :  { %v1635_v6 = vld [vmem:[%s2306_s2 + $0x1c4] ss:$16 sps:$4 sm:$0xff]   ;;  %v1638_v7 = vld [vmem:[%s2306_s2 + $0x1cc] ss:$16 sps:$4 sm:$0xff]   ;;  %v1633_v8 = vld [vmem:[%s2306_s2 + $0x1c0] ss:$16 sps:$4 sm:$0xff]  }
  0x65   :  { %936 = vmatpush1.bf16.msra.mxu0 %v1597_v48  ;;  %987 = vmatpush1.bf16.msra.mxu1 %v1600_v49  ;;  %v1636_v9 = vld [vmem:[%s2306_s2 + $0x1c8] ss:$16 sps:$4 sm:$0xff]   ;;  %v1641_v10 = vld [vmem:[%s2306_s2 + $0x1e4] ss:$16 sps:$4 sm:$0xff]   ;;  %v1644_v11 = vld [vmem:[%s2306_s2 + $0x1ec] ss:$16 sps:$4 sm:$0xff]  }
  0x66   :  { %937 = vmatprep.subr.bf16.mxu0 %v1605_v50  ;;  %988 = vmatprep.subr.bf16.mxu1 %v1608_v51  ;;  %v1639_v12 = vld [vmem:[%s2306_s2 + $0x1e0] ss:$16 sps:$4 sm:$0xff]   ;;  %v1642_v13 = vld [vmem:[%s2306_s2 + $0x1e8] ss:$16 sps:$4 sm:$0xff]   ;;  %v2173_v30 = vshrl.u32 %v1023_v29, 7  ;;  %vm1286_vm2 = vcmask 7168  }
  0x67   :  { %v29_v14 = vld [vmem:[%s2304_s0] sm:$0xff]  ;;  %v31_v15 = vld [vmem:[%s2304_s0 + $0x10] sm:$0xff]  ;;  %v34_v16 = vld [vmem:[%s2304_s0 + $0x28] sm:$0xff]  ;;  %vm1299_vm4 = vcmask 0  }
  0x68   :  { %v35_v17 = vpack.c.bf16 %v31_v15, %v29_v14  ;;  %v38_v18 = vpack.c.bf16 %v34_v16, %v34_v16  ;;  %v33_v19 = vld [vmem:[%s2304_s0 + $0x20] sm:$0xff]  ;;  %v1025_v31 = vsub.s32 0, %v2173_v30  ;;  %v1033_v32 = vsub.s32 2, %v2173_v30 }
  0x69   :  { %938 = vmatpush1.bf16.msra.mxu0 %v1603_v52  ;;  %989 = vmatpush1.bf16.msra.mxu1 %v1606_v53  ;;  %v37_v20 = vpack.c.bf16 %v33_v19, %v33_v19  ;;  %v1021_v33 = vld [vmem:[%s2308_s4] sm:$0xf]  ;;  %v1029_v34 = vsub.s32 1, %v2173_v30  ;;  %v1037_v35 = vsub.s32 3, %v2173_v30 }
  0x6a   :  { %939 = vmatprep.subr.bf16.mxu0 %v1611_v54  ;;  %990 = vmatprep.subr.bf16.mxu1 %v1614_v55  ;;  %v1026_v36 = vrot.slane %v1021_v33, %v1025_v31  ;;  %v1034_v37 = vrot.slane %v1021_v33, %v1033_v32 }
  0x6b   :  { %v1030_v38 = vrot.slane %v1021_v33, %v1029_v34  ;;  %v1038_v39 = vrot.slane %v1021_v33, %v1037_v35 }
  0x6d   :  { %940 = vmatpush1.bf16.msra.mxu0 %v1609_v56  ;;  %991 = vmatpush1.bf16.msra.mxu1 %v1612_v57 }
  0x6e   :  { %941 = vmatprep.subr.bf16.mxu0 %v1617_v58  ;;  %992 = vmatprep.subr.bf16.mxu1 %v1620_v59 }
  0x71   :  { %942 = vmatpush1.bf16.msra.mxu0 %v1615_v60  ;;  %993 = vmatpush1.bf16.msra.mxu1 %v1618_v61 }
  0x72   :  { %943 = vmatprep.subr.bf16.mxu0 %v1623_v62  ;;  %994 = vmatprep.subr.bf16.mxu1 %v1626_v63 }
  0x75   :  { %944 = vmatpush1.bf16.msra.mxu0 %v1621_v0  ;;  %995 = vmatpush1.bf16.msra.mxu1 %v1624_v1 }
  0x76   :  { %945 = vmatprep.subr.bf16.mxu0 %v1629_v2  ;;  %996 = vmatprep.subr.bf16.mxu1 %v1632_v3 }
  0x79   :  { %946 = vmatpush1.bf16.msra.mxu0 %v1627_v4  ;;  %997 = vmatpush1.bf16.msra.mxu1 %v1630_v5 }
  0x7a   :  { %947 = vmatprep.subr.bf16.mxu0 %v1635_v6  ;;  %998 = vmatprep.subr.bf16.mxu1 %v1638_v7 }
  0x7d   :  { %948 = vmatpush1.bf16.msra.mxu0 %v1633_v8  ;;  %999 = vmatpush1.bf16.msra.mxu1 %v1636_v9 }
  0x7e   :  { %949 = vmatprep.subr.bf16.mxu0 %v1641_v10  ;;  %1000 = vmatprep.subr.bf16.mxu1 %v1644_v11 }
  0x81   :  { %950 = vmatpush1.bf16.msra.mxu0 %v1639_v12  ;;  %1001 = vmatpush1.bf16.msra.mxu1 %v1642_v13 }
  0x84   :  { %952 = vmatmul.mubr.bf16.vlgmr.msra.gmra.mrb[0].mxu0 %v35_v17  ;;  %1003 = vmatmul.mubr.bf16.vlgmr.msra.gmra.mrb[0].mxu1 %v35_v17 }
  0x85   :  { %961 = vmatprep.mubr.bf16.mxu0 %v38_v18  ;;  %1012 = vmatprep.mubr.bf16.mxu1 %v38_v18 }
  0x8c   :  { %962 = vmatmul.mubr.bf16.gmra.mrb[8].mxu0 %v37_v20  ;;  %1013 = vmatmul.mubr.bf16.gmra.mrb[8].mxu1 %v37_v20 }
 0x11f   :  { %v541_v21 = vpop.f32.mrb[4].mxu0  ;;  %v592_v22 = vpop.f32.mrb[4].mxu1 }
 0x120   :  { %v2169_v23 = vpop.f32.mrb[5].mxu0  ;;  %v2171_v24 = vpop.f32.mrb[5].mxu1 }
 0x121   :  { %v545_v25 = vpop.f32.mrb[6].mxu0  ;;  %v596_v26 = vpop.f32.mrb[6].mxu1 }
 0x122   :  { %v546_v27 = vpop.f32.mrb[7].mxu0  ;;  %v597_v28 = vpop.f32.mrb[7].mxu1 }
 0x157   :  { %v953_v40 = vpop.f32.mrb[0].mxu0  ;;  %v1004_v41 = vpop.f32.mrb[0].mxu1 }
 0x158   :  { %v2190_v42 = vadd.f32 %v1026_v36, %v953_v40  ;;  %v2192_v43 = vadd.f32 %v1034_v37, %v1004_v41  ;;  %v955_v44 = vpop.f32.mrb[1].mxu0  ;;  %v1006_v45 = vpop.f32.mrb[1].mxu1 }
 0x159   :  { %v2194_v46 = vadd.f32 %v1030_v38, %v955_v44  ;;  %v2196_v47 = vadd.f32 %v1038_v39, %v1006_v45  ;;  %v957_v48 = vpop.f32.mrb[2].mxu0  ;;  %v1008_v49 = vpop.f32.mrb[2].mxu1 }
 0x15a   :  { %v1067_v50 = vmul.f32 0.044715, %v2190_v42  ;;  %v1069_v51 = vmul.f32 0.044715, %v2192_v43  ;;  %v2200_v52 = vadd.f32 %v1026_v36, %v957_v48  ;;  %v2202_v53 = vadd.f32 %v1034_v37, %v1008_v49  ;;  %v959_v54 = vpop.f32.mrb[3].mxu0  ;;  %v1010_v55 = vpop.f32.mrb[3].mxu1 }
 0x15b   :  { %v1068_v56 = vmul.f32 0.044715, %v2194_v46  ;;  %v2205_v57 = vadd.f32 %v1030_v38, %v959_v54  ;;  %v2207_v58 = vadd.f32 %v1038_v39, %v1010_v55  ;;  %v1070_v60 = vmul.f32 0.044715, %v2196_v47 }
 0x15c   :  { %v1079_v59 = vmul.f32 %v1067_v50, %v2190_v42  ;;  %v1071_v61 = vmul.f32 0.044715, %v2200_v52  ;;  %v1073_v62 = vmul.f32 0.044715, %v2202_v53  ;;  %v1081_v63 = vmul.f32 %v1069_v51, %v2192_v43 }
 0x15d   :  { %v1080_v0 = vmul.f32 %v1068_v56, %v2194_v46  ;;  %v1072_v1 = vmul.f32 0.044715, %v2205_v57  ;;  %v1074_v3 = vmul.f32 0.044715, %v2207_v58  ;;  %v1082_v9 = vmul.f32 %v1070_v60, %v2196_v47 }
 0x15e   :  { %v1083_v2 = vmul.f32 %v1071_v61, %v2200_v52  ;;  %v1085_v4 = vmul.f32 %v1073_v62, %v2202_v53  ;;  %v1091_v8 = vmul.f32 %v1079_v59, %v2190_v42  ;;  %v1093_v14 = vmul.f32 %v1081_v63, %v2192_v43 }
 0x15f   :  { %v1084_v5 = vmul.f32 %v1072_v1, %v2205_v57  ;;  %v963_v6 = vpop.f32.mrb[8].mxu0  ;;  %v1014_v7 = vpop.f32.mrb[8].mxu1  ;;  %v1092_v15 = vmul.f32 %v1080_v0, %v2194_v46  ;;  %v1086_v25 = vmul.f32 %v1074_v3, %v2207_v58 }
 0x160   :  { %v1095_v10 = vmul.f32 %v1083_v2, %v2200_v52  ;;  %v964_v11 = vadd.f32 %v963_v6, %v541_v21  ;;  %v965_v12 = vpop.f32.mrb[9].mxu0  ;;  %v1016_v13 = vpop.f32.mrb[9].mxu1  ;;  %v1015_v17 = vadd.f32 %v1014_v7, %v592_v22  ;;  %v1097_v29 = vmul.f32 %v1085_v4, %v2202_v53 }
 0x161   :  { %v1096_v16 = vmul.f32 %v1084_v5, %v2205_v57  ;;  %v967_v18 = vpop.f32.mrb[10].mxu0  ;;  %v1018_v19 = vpop.f32.mrb[10].mxu1  ;;  %v966_v27 = vadd.f32 %v965_v12, %v2169_v23  ;;  %v1017_v22 = vadd.f32 %v1016_v13, %v2171_v24  ;;  %v1103_v41 = vadd.f32 %v1091_v8, %v2190_v42  ;;  %v1163_v12 = vld [vmem:[%s2309_s5] sm:$0xf]  ;;  %s1705_s5 = smov [#allocation3]  }
 0x162   :  { %v1107_v20 = vadd.f32 %v1095_v10, %v2200_v52  ;;  %v2228_v26 = vadd.f32 %v1026_v36, %v964_v11  ;;  %v968_v21 = vpop.f32.mrb[11].mxu0  ;;  %v1019_v28 = vpop.f32.mrb[11].mxu1  ;;  %v2233_v40 = vadd.f32 %v1034_v37, %v1015_v17  ;;  %v1104_v36 = vadd.f32 %v1092_v15, %v2194_v46  ;;  %s1307_s10 = sshll.u32 %s1705_s5, 4  ;;  %s1308_s10 = int_to_ptr.vmem [resolvable:$true] %s1307_s10 }
 0x163   :  { %v1108_v33 = vadd.f32 %v1096_v16, %v2205_v57  ;;  %v2238_v48 = vadd.f32 %v1030_v38, %v966_v27  ;;  %v2242_v50 = vadd.f32 %v1038_v39, %v1017_v22  ;;  %v1094_v24 = vmul.f32 %v1082_v9, %v2196_v47  ;;  %s1681_s6 = scalar_lea.vmem %s1308_s10, 16  ;;  %s1685_s11 = scalar_lea.vmem %s1308_s10, 32 }
 0x164   :  { %v1119_v44 = vmul.f32 0.7978846, %v1107_v20  ;;  %v1075_v45 = vmul.f32 0.044715, %v2228_v26  ;;  %v1077_v49 = vmul.f32 0.044715, %v2233_v40  ;;  %v1109_v54 = vadd.f32 %v1097_v29, %v2202_v53  ;;  %p1682_p0 = scmp.ne.s32.totalorder %s1308_s10, %s1681_s6  ;;  %p1686_p1 = scmp.lt.s32.totalorder %s1308_s10, %s1308_s10 }
 0x165   :  { %v1120_v23 = vmul.f32 0.7978846, %v1108_v33  ;;  %v1076_v51 = vmul.f32 0.044715, %v2238_v48  ;;  %v1098_v38 = vmul.f32 %v1086_v25, %v2207_v58  ;;  %v1105_v55 = vadd.f32 %v1093_v14, %v2192_v43  ;;  %p1687_p2 = scmp.lt.s32.totalorder %s1685_s11, %s1681_s6 }
 0x166   :  { %1645 = vtanh.f32 %v1119_v44  ;;  %v1087_v37 = vmul.f32 %v1075_v45, %v2228_v26  ;;  %v1106_v59 = vadd.f32 %v1094_v24, %v2196_v47  ;;  %v1115_v39 = vmul.f32 0.7978846, %v1103_v41 }
 0x167   :  { %1647 = vtanh.f32 %v1120_v23  ;;  %v1088_v56 = vmul.f32 %v1076_v51, %v2238_v48  ;;  %v1089_v60 = vmul.f32 %v1077_v49, %v2233_v40  ;;  %v1078_v61 = vmul.f32 0.044715, %v2242_v50  ;;  %p1688_p3 = por %p1687_p2, %p1686_p1 }
 0x168   :  { %v1116_v62 = vmul.f32 0.7978846, %v1104_v36  ;;  %v1117_v63 = vmul.f32 0.7978846, %v1105_v55  ;;  %v1099_v0 = vmul.f32 %v1087_v37, %v2228_v26  ;;  %v1118_v2 = vmul.f32 0.7978846, %v1106_v59 }
 0x169   :  { %v1100_v1 = vmul.f32 %v1088_v56, %v2238_v48  ;;  %1649 = vtanh.f32 %v1115_v39  ;;  %v1110_v3 = vadd.f32 %v1098_v38, %v2207_v58  ;;  %v1121_v4 = vmul.f32 0.7978846, %v1109_v54  ;;  %p1689_p4 = pnand %p1688_p3, %p1682_p0 }
 0x16a   :  { %1651 = vtanh.f32 %v1116_v62  ;;  %v1090_v6 = vmul.f32 %v1078_v61, %v2242_v50  ;;  %v1101_v7 = vmul.f32 %v1089_v60, %v2233_v40  ;;  %v1111_v8 = vadd.f32 %v1099_v0, %v2228_v26 }
 0x16b   :  { %1653 = vtanh.f32 %v1117_v63  ;;  %v1122_v5 = vmul.f32 0.7978846, %v1110_v3  ;;  %v1112_v9 = vadd.f32 %v1100_v1, %v2238_v48  ;;  %v1059_v17 = vmul.f32 0.5, %v2200_v52 }
 0x16c   :  { %1655 = vtanh.f32 %v1118_v2  ;;  %v1102_v10 = vmul.f32 %v1090_v6, %v2242_v50  ;;  %v1113_v13 = vadd.f32 %v1101_v7, %v2233_v40  ;;  %v1123_v14 = vmul.f32 0.7978846, %v1111_v8 }
 0x16d   :  { %1657 = vtanh.f32 %v1121_v4  ;;  %v1124_v15 = vmul.f32 0.7978846, %v1112_v9  ;;  %v1060_v20 = vmul.f32 0.5, %v2205_v57  ;;  %v2271_v21 = vrot.slane %v1163_v12, %v1025_v31 }
 0x16e   :  { %1659 = vtanh.f32 %v1122_v5  ;;  %v1114_v19 = vadd.f32 %v1102_v10, %v2242_v50  ;;  %v1125_v27 = vmul.f32 0.7978846, %v1113_v13  ;;  %v1172_v22 = vrot.slane %v1163_v12, %v1029_v34 }
 0x16f   :  { %1661 = vtanh.f32 %v1123_v14  ;;  %v1055_v44 = vmul.f32 0.5, %v2190_v42  ;;  %v1056_v31 = vmul.f32 0.5, %v2194_v46  ;;  %v1176_v49 = vrot.slane %v1163_v12, %v1033_v32 }
 0x170   :  { %v1646_v11 = vpop.eup %1645  ;;  %v1126_v29 = vmul.f32 0.7978846, %v1114_v19  ;;  %1663 = vtanh.f32 %v1124_v15  ;;  %v1057_v34 = vmul.f32 0.5, %v2192_v43  ;;  %v1180_v42 = vrot.slane %v1163_v12, %v1037_v35 }
 0x171   :  { %v1648_v16 = vpop.eup %1647  ;;  %v1143_v18 = vadd.f32 1.0, %v1646_v11  ;;  %1665 = vtanh.f32 %v1125_v27  ;;  %v1058_v55 = vmul.f32 0.5, %v2196_v47  ;;  %v1061_v32 = vmul.f32 0.5, %v2202_v53 }
 0x172   :  { %v1144_v25 = vadd.f32 1.0, %v1648_v16  ;;  %1667 = vtanh.f32 %v1126_v29  ;;  %v1062_v0 = vmul.f32 0.5, %v2207_v58  ;;  %v1063_v6 = vmul.f32 0.5, %v2228_v26 }
 0x173   :  { %v1155_v28 = vmul.f32 %v1143_v18, %v1059_v17  ;;  %v1650_v33 = vpop.eup %1649  ;;  %v1064_v7 = vmul.f32 0.5, %v2238_v48  ;;  %v1065_v11 = vmul.f32 0.5, %v2233_v40  ;;  %v1066_v18 = vmul.f32 0.5, %v2242_v50 }
 0x174   :  { %v1156_v52 = vmul.f32 %v1144_v25, %v1060_v20  ;;  %v1652_v41 = vpop.eup %1651  ;;  %v1139_v57 = vadd.f32 1.0, %v1650_v33 }
 0x175   :  { %v1189_v45 = vmul.f32 %v2271_v21, %v1155_v28  ;;  %v1654_v36 = vpop.eup %1653  ;;  %v1140_v23 = vadd.f32 1.0, %v1652_v41 }
 0x176   :  { %v1190_v37 = vmul.f32 %v1172_v22, %v1156_v52  ;;  %v1656_v51 = vpop.eup %1655  ;;  %v1141_v24 = vadd.f32 1.0, %v1654_v36  ;;  %v1151_v54 = vmul.f32 %v1139_v57, %v1055_v44  ;;  %v1443_v44 = vld [vmem:[#allocation2] ss:$0 sm:$0xff] }
 0x177   :  { %v1658_v38 = vpop.eup %1657  ;;  %v1142_v56 = vadd.f32 1.0, %v1656_v51  ;;  %v1152_v59 = vmul.f32 %v1140_v23, %v1056_v31 }
 0x178   :  { %v1202_v39 = vadd.f32 %v1190_v37, %v1189_v45  ;;  %v1660_v46 = vpop.eup %1659  ;;  %v1153_v60 = vmul.f32 %v1141_v24, %v1057_v34  ;;  %v1185_v61 = vmul.f32 %v2271_v21, %v1151_v54  ;;  %v1145_v62 = vadd.f32 1.0, %v1658_v38 }
 0x179   :  { %v1154_v63 = vmul.f32 %v1142_v56, %v1058_v55  ;;  %v1186_v43 = vmul.f32 %v1172_v22, %v1152_v59  ;;  %v1146_v1 = vadd.f32 1.0, %v1660_v46  ;;  %v1662_v35 = vpop.eup %1661 }
 0x17a   :  { %v1157_v30 = vmul.f32 %v1145_v62, %v1061_v32  ;;  %v1187_v2 = vmul.f32 %v1176_v49, %v1153_v60  ;;  %v1664_v4 = vpop.eup %1663  ;;  %v1147_v8 = vadd.f32 1.0, %v1662_v35 }
 0x17b   :  { %v1197_v3 = vadd.f32 %v1186_v43, %v1185_v61  ;;  %v1158_v47 = vmul.f32 %v1146_v1, %v1062_v0  ;;  %v1666_v9 = vpop.eup %1665  ;;  %v1188_v53 = vmul.f32 %v1180_v42, %v1154_v63  ;;  %v1148_v12 = vadd.f32 1.0, %v1664_v4 }
 0x17c   :  { %v1191_v5 = vmul.f32 %v1176_v49, %v1157_v30  ;;  %v1668_v58 = vpop.eup %1667  ;;  %v1149_v15 = vadd.f32 1.0, %v1666_v9  ;;  %v1159_v16 = vmul.f32 %v1147_v8, %v1063_v6 }
 0x17d   :  { %v1198_v10 = vadd.f32 %v1197_v3, %v1187_v2  ;;  %v1192_v13 = vmul.f32 %v1180_v42, %v1158_v47  ;;  %v1150_v19 = vadd.f32 1.0, %v1668_v58  ;;  %v1160_v20 = vmul.f32 %v1148_v12, %v1064_v7 }
 0x17e   :  { %v1203_v14 = vadd.f32 %v1202_v39, %v1191_v5  ;;  %v1161_v25 = vmul.f32 %v1149_v15, %v1065_v11  ;;  %v1193_v48 = vmul.f32 %v2271_v21, %v1159_v16 }
 0x17f   :  { %v1199_v17 = vadd.f32 %v1198_v10, %v1188_v53  ;;  %v1162_v27 = vmul.f32 %v1150_v19, %v1066_v18  ;;  %v1194_v28 = vmul.f32 %v1172_v22, %v1160_v20 }
 0x180   :  { %v1204_v26 = vadd.f32 %v1203_v14, %v1192_v13  ;;  %v1195_v29 = vmul.f32 %v1176_v49, %v1161_v25 }
 0x181   :  { %1200 = vadd.xlane.f32.xlu0 %v1199_v17  ;;  %v1207_v40 = vadd.f32 %v1194_v28, %v1193_v48  ;;  %v1196_v33 = vmul.f32 %v1180_v42, %v1162_v27 }
 0x183   :  { %v1208_v52 = vadd.f32 %v1207_v40, %v1195_v29 }
 0x185   :  { %1205 = vadd.xlane.f32.xlu0 %v1204_v26  ;;  %v1209_v41 = vadd.f32 %v1208_v52, %v1196_v33 }
 0x187   :  { %1210 = vadd.xlane.f32.xlu1 %v1209_v41 }
 0x20e   :  { %v1201_v57 = vpop.xlane.xlu0 %1200 }
 0x20f   :  { %v1219_v45 = vadd.f32 %v1443_v44, %v1201_v57 }
 0x211   :  { %v1244_v50 = vand.u32 2147483647, %v1219_v45  ;;  %v1235_v63 = vmax.f32 %v1219_v45, 0.0 }
 0x212   :  { %v1206_v36 = vpop.xlane.xlu0 %1205 }
 0x213   :  { %v1247_v31 = vsub.f32 0.0, %v1244_v50  ;;  %v1220_v23 = vadd.f32 %v1443_v44, %v1206_v36  ;;  %v1241_v5 = vsub.f32 %v1235_v63, %v1219_v45 }
 0x214   :  { %v1211_v21 = vpop.xlane.xlu1 %1210 }
 0x215   :  { %v1250_v37 = vmul.f32 1.442695, %v1247_v31  ;;  %v1245_v51 = vand.u32 2147483647, %v1220_v23  ;;  %v1221_v22 = vadd.f32 %v1443_v44, %v1211_v21  ;;  %v1236_v0 = vmax.f32 %v1220_v23, 0.0 }
 0x216   :  { %v1239_v1 = vmul.f32 0.0, %v1220_v23 }
 0x217   :  { %1669 = vpow2.f32 %v1250_v37  ;;  %v1248_v34 = vsub.f32 0.0, %v1245_v51  ;;  %v1246_v24 = vand.u32 2147483647, %v1221_v22  ;;  %v1237_v10 = vmax.f32 %v1221_v22, 0.0 }
 0x218   :  { %v1242_v6 = vsub.f32 %v1236_v0, %v1239_v1  ;;  %v1240_v11 = vmul.f32 0.0, %v1221_v22 }
 0x219   :  { %v1252_v49 = vmul.f32 1.442695, %v1248_v34  ;;  %v1249_v54 = vsub.f32 0.0, %v1246_v24 }
 0x21a   :  { %v1243_v19 = vsub.f32 %v1237_v10, %v1240_v11 }
 0x21b   :  { %1671 = vpow2.f32 %v1252_v49  ;;  %v1254_v42 = vmul.f32 1.442695, %v1249_v54 }
 0x21d   :  { %1673 = vpow2.f32 %v1254_v42 }
 0x221   :  { %v1670_v38 = vpop.eup %1669 }
 0x222   :  { %v1256_v55 = vadd.f32 1.0, %v1670_v38  ;;  %v1259_v46 = vmul.f32 -0.5, %v1670_v38  ;;  %v1262_v43 = vand.u32 2147483647, %v1670_v38 }
 0x224   :  { %1675 = vlog2.f32 %v1256_v55  ;;  %v1260_v32 = vadd.f32 1.0, %v1259_v46  ;;  %vm1263_vm0 = vcmp.lt.f32.partialorder %v1262_v43, 0.0004427343 }
 0x225   :  { %v1672_v56 = vpop.eup %1671 }
 0x226   :  { %v1265_v59 = vadd.f32 1.0, %v1672_v56  ;;  %v1268_v61 = vmul.f32 -0.5, %v1672_v56  ;;  %v1271_v3 = vand.u32 2147483647, %v1672_v56  ;;  %v1261_v47 = vmul.f32 %v1670_v38, %v1260_v32 }
 0x227   :  { %v1674_v39 = vpop.eup %1673 }
 0x228   :  { %1677 = vlog2.f32 %v1265_v59  ;;  %v1274_v60 = vadd.f32 1.0, %v1674_v39  ;;  %v1269_v35 = vadd.f32 1.0, %v1268_v61  ;;  %v1277_v2 = vmul.f32 -0.5, %v1674_v39 }
 0x229   :  { %vm1272_vm1 = vcmp.lt.f32.partialorder %v1271_v3, 0.0004427343  ;;  %v1280_v12 = vand.u32 2147483647, %v1674_v39 }
 0x22a   :  { %1679 = vlog2.f32 %v1274_v60  ;;  %v1270_v9 = vmul.f32 %v1672_v56, %v1269_v35  ;;  %v1278_v53 = vadd.f32 1.0, %v1277_v2 }
 0x22b   :  { %vm1281_vm3 = vcmp.lt.f32.partialorder %v1280_v12, 0.0004427343 }
 0x22c   :  { %v1279_v17 = vmul.f32 %v1674_v39, %v1278_v53 }
 0x22e   :  { %v1676_v62 = vpop.eup %1675 }
 0x22f   :  { %v1258_v30 = vmul.f32 0.6931472, %v1676_v62 }
 0x231   :  { %v1264_v7 = vsel %vm1263_vm0, %v1261_v47, %v1258_v30 }
 0x232   :  { %v1678_v4 = vpop.eup %1677  ;;  %v1283_v14 = vadd.f32 %v1264_v7, %v1241_v5 }
 0x233   :  { %v1267_v8 = vmul.f32 0.6931472, %v1678_v4 }
 0x234   :  { %v1680_v13 = vpop.eup %1679  ;;  %v1287_v26 = vsel %vm1286_vm2, %v1283_v14, 0.0 }
 0x235   :  { %v1273_v58 = vsel %vm1272_vm1, %v1270_v9, %v1267_v8  ;;  %v1276_v16 = vmul.f32 0.6931472, %v1680_v13 }
 0x236   :  { %v1284_v15 = vadd.f32 %v1273_v58, %v1242_v6 }
 0x237   :  { %v1282_v20 = vsel %vm1281_vm3, %v1279_v17, %v1276_v16 }
 0x238   :  { %v1288_v18 = vsel %vm1286_vm2, %v1284_v15, 0.0  ;;  %v1285_v25 = vadd.f32 %v1282_v20, %v1243_v19 }
 0x239   :  { %v1289_v48 = vadd.f32 %v1288_v18, %v1287_v26 }
 0x23a   :  { %v1290_v27 = vsel %vm1286_vm2, %v1285_v25, 0.0 }
 0x23b   :  { %v1291_v28 = vadd.f32 %v1290_v27, %v1289_v48 }
 0x23d   :  { %v1292_v29 = vrot.slane %v1291_v28, 4 }
 0x23f   :  { %v1293_v40 = vadd.f32 %v1292_v29, %v1291_v28 }
 0x241   :  { %v1294_v33 = vrot.slane %v1293_v40, 2 }
 0x243   :  { %v1295_v52 = vadd.f32 %v1294_v33, %v1293_v40 }
 0x245   :  { %v1296_v41 = vrot.slane %v1295_v52, 1 }
 0x247   :  { %v1297_v44 = vadd.f32 %v1296_v41, %v1295_v52 }
 0x249   :  { %v1298_v57 = vmul.f32 0.041666668, %v1297_v44 }
 0x24b   :  { %1300 = vst.msk [vmem:[#allocation3] sm:$0x1] %vm1299_vm4, %v1298_v57 }
 0x24c   :  { %1692 = shalt.err (!%p1689_p4)
}
 0x24d   :  { %s1693_s14 = scalar_lea.hbm %s2311_s7, 16 }
 0x24e   :  { %p1694_p5 = scmp.ne.s32.totalorder %s2311_s7, %s1693_s14  ;;  %p1697_p6 = scmp.lt.u32.totalorder %s1693_s14, %s2311_s7 }
 0x250   :  { %p1699_p7 = pnand %p1697_p6, %p1694_p5 }
 0x252   :  { %1702 = shalt.err (!%p1699_p7)
}
 0x253   :  { %1310 = dma.vmem_to_hbm [thread:$0]  %s1308_s10, 16, %s2311_s7, [#allocation4]  }
 0x254   :  { %1703 = dma.done.wait [#allocation4], 16  }
 0x255   :  { %1704 = vsyncadd [#allocation4], 4294967280 }
 0x256   :  { %1314 = vsyncpa [#allocation4], 1 }

// kernel: _forward.2
= control target key start
LH: loop header
LB: loop body
LE: loop exit
PB: predicated region body
PF: predicated region fallthrough
CT: control target
= control target key end

     0   :  { %s10744_s0 = inlined_call_operand.vmem [shape: f32[8,768], index: 0, kind: input, shape index: {}]   ;;  %s10745_s1 = inlined_call_operand.vmem [shape: f32[8,768], index: 1, kind: input, shape index: {}]   ;;  %s10746_s2 = inlined_call_operand.vmem [shape: f32[8,256], index: 2, kind: input, shape index: {}]   ;;  %s10747_s3 = inlined_call_operand.vmem [shape: f32[8,512], index: 3, kind: input, shape index: {}]   ;;  %s10748_s4 = inlined_call_operand.vmem [shape: bf16[768,256], index: 4, kind: input, shape index: {}]   ;;  %s10749_s5 = inlined_call_operand.vmem [shape: bf16[768,512], index: 5, kind: input, shape index: {}]   ;;  %s10750_s6 = inlined_call_operand.vmem [shape: bf16[256,512], index: 6, kind: input, shape index: {}]   ;;  %s10751_s7 = inlined_call_operand.vmem [shape: bf16[512,512], index: 7, kind: input, shape index: {}]   ;;  %s10752_s8 = inlined_call_operand.vmem [shape: f32[1,512], index: 8, kind: input, shape index: {}]   ;;  %s10753_s9 = inlined_call_operand.hbm [shape: bf16[512,256], index: 9, kind: input, shape index: {}]   ;;  %s10754_s10 = inlined_call_operand.vmem [shape: f32[1,256], index: 10, kind: input, shape index: {}]   ;;  %s10755_s11 = inlined_call_operand.hbm [shape: bf16[256,512], index: 11, kind: input, shape index: {}]   ;;  %s10756_s12 = inlined_call_operand.vmem [shape: bf16[512,512], index: 12, kind: input, shape index: {}]   ;;  %s10757_s13 = inlined_call_operand.vmem [shape: f32[1,512], index: 13, kind: input, shape index: {}]   ;;  %s10758_s14 = inlined_call_operand.hbm [shape: bf16[512,256], index: 14, kind: input, shape index: {}]   ;;  %s10759_s15 = inlined_call_operand.vmem [shape: f32[1,256], index: 15, kind: input, shape index: {}]   ;;  %s10760_s16 = inlined_call_operand.vmem [shape: f32[8,256], index: 16, kind: output, shape index: {0}]   ;;  %s10761_s17 = inlined_call_operand.vmem [shape: f32[8,256], index: 17, kind: output, shape index: {1}]   ;;  %s10762_s18 = inlined_call_operand.vmem [shape: f32[8,8], index: 18, kind: output, shape index: {2}]   ;;  %s10763_s19 = inlined_call_operand.vmem [shape: f32[8,8], index: 19, kind: output, shape index: {3}]   ;;  %s10764_s20 = inlined_call_operand.vmem [shape: f32[8,8], index: 20, kind: output, shape index: {4}]  }
   0x1   :  { %10770 = sst [smem:[#allocation9_spill]] %s10744_s0 }
   0x2   :  { %10771 = sst [smem:[#allocation10_spill]] %s10745_s1 }
   0x3   :  { %10772 = sst [smem:[#allocation11_spill]] %s10746_s2 }
   0x4   :  { %10773 = sst [smem:[#allocation12_spill]] %s10747_s3 }
   0x5   :  { %10774 = sst [smem:[#allocation13_spill]] %s10748_s4 }
   0x6   :  { %26 = vsyncpa [#allocation3], 0 }
   0x7   :  { %27 = vsyncpa [#allocation5], 0  ;;  %s8513_s1 = smov [#allocation4]   ;;  %s8443_s2 = scalar_lea.hbm %s10755_s11, 8192 }
   0x8   :  { %s65_s22 = sshll.u32 %s8513_s1, 4  ;;  %p8444_p0 = scmp.ne.s32.totalorder %s10755_s11, %s8443_s2  ;;  %s66_s22 = int_to_ptr.vmem [resolvable:$true] %s65_s22 }
   0x9   :  { %p8447_p1 = scmp.lt.u32.totalorder %s8443_s2, %s10755_s11 }
   0xb   :  { %p8449_p2 = pnand %p8447_p1, %p8444_p0 }
   0xd   :  { %8452 = shalt.err (!%p8449_p2)
}
   0xe   :  { %s8453_s28 = scalar_lea.vmem %s66_s22, 8192  ;;  %p8458_p4 = scmp.lt.s32.totalorder %s66_s22, %s66_s22 }
   0xf   :  { %p8454_p3 = scmp.ne.s32.totalorder %s66_s22, %s8453_s28  ;;  %p8459_p5 = scmp.lt.s32.totalorder %s8453_s28, %s8453_s28 }
  0x11   :  { %p8460_p6 = por %p8459_p5, %p8458_p4 }
  0x13   :  { %p8461_p7 = pnand %p8460_p6, %p8454_p3 }
  0x15   :  { %8464 = shalt.err (!%p8461_p7)
}
  0x16   :  { %s8514_s4 = smov 256   ;;  %s8515_s29 = smov 16  }
  0x17   :  { %71 = dma.hbm_to_vmem [thread:$0]  %s10755_s11, 8192, %s66_s22, [#allocation5], %s8514_s4, %s8514_s4, %s8515_s29  }
  0x18   :  { %s8516_s21 = smov [#allocation2]   ;;  %s8465_s2 = scalar_lea.hbm %s10753_s9, 8192 }
  0x19   :  { %s51_s1 = sshll.u32 %s8516_s21, 4  ;;  %p8466_p8 = scmp.ne.s32.totalorder %s10753_s9, %s8465_s2  ;;  %s52_s1 = int_to_ptr.vmem [resolvable:$true] %s51_s1 }
  0x1a   :  { %p8469_p9 = scmp.lt.u32.totalorder %s8465_s2, %s10753_s9 }
  0x1c   :  { %p8471_p10 = pnand %p8469_p9, %p8466_p8 }
  0x1e   :  { %8474 = shalt.err (!%p8471_p10)
}
  0x1f   :  { %s8475_s28 = scalar_lea.vmem %s52_s1, 8192  ;;  %p8480_p12 = scmp.lt.s32.totalorder %s52_s1, %s52_s1 }
  0x20   :  { %p8476_p11 = scmp.ne.s32.totalorder %s52_s1, %s8475_s28  ;;  %p8481_p13 = scmp.lt.s32.totalorder %s8475_s28, %s8475_s28 }
  0x22   :  { %p8482_p0 = por %p8481_p13, %p8480_p12 }
  0x24   :  { %p8483_p1 = pnand %p8482_p0, %p8476_p11 }
  0x26   :  { %8486 = shalt.err (!%p8483_p1)
}
  0x27   :  { %s8517_s11 = smov 128   ;;  %s8518_s22 = smov 8  }
  0x28   :  { %57 = dma.hbm_to_vmem [thread:$0]  %s10753_s9, 8192, %s52_s1, [#allocation3], %s8517_s11, %s8517_s11, %s8518_s22  }
  0x29   :  { %s8519_s30 = smov [#allocation6]   ;;  %s8487_s24 = scalar_lea.hbm %s10758_s14, 8192 }
  0x2a   :  { %s81_s0 = sshll.u32 %s8519_s30, 4  ;;  %p8488_p2 = scmp.ne.s32.totalorder %s10758_s14, %s8487_s24  ;;  %s82_s0 = int_to_ptr.vmem [resolvable:$true] %s81_s0 }
  0x2b   :  { %p8491_p3 = scmp.lt.u32.totalorder %s8487_s24, %s10758_s14 }
  0x2d   :  { %p8493_p4 = pnand %p8491_p3, %p8488_p2 }
  0x2f   :  { %8496 = shalt.err (!%p8493_p4)
}
  0x30   :  { %s8497_s27 = scalar_lea.vmem %s82_s0, 8192  ;;  %p8502_p6 = scmp.lt.s32.totalorder %s82_s0, %s82_s0 }
  0x31   :  { %p8498_p5 = scmp.ne.s32.totalorder %s82_s0, %s8497_s27  ;;  %p8503_p7 = scmp.lt.s32.totalorder %s8497_s27, %s8497_s27 }
  0x33   :  { %p8504_p8 = por %p8503_p7, %p8502_p6 }
  0x35   :  { %p8505_p9 = pnand %p8504_p8, %p8498_p5 }
  0x37   :  { %8508 = shalt.err (!%p8505_p9)
}
  0x38   :  { %87 = dma.hbm_to_vmem [thread:$0]  %s10758_s14, 8192, %s82_s0, [#allocation5], %s8517_s11, %s8517_s11, %s8518_s22  }
  0x39   :  { %8509 = dma.done.wait [#allocation3], 8192  }
  0x3a   :  { %8510 = vsyncadd [#allocation3], 4294959104 }
  0x3b   :  { %8511 = dma.done.wait [#allocation5], 16384  }
  0x3c   :  { %8512 = vsyncadd [#allocation5], 4294950912  ;;  %s10775_s29 = sld [smem:[#allocation13_spill]]  ;;  %v7225_v1 = vld [vmem:[%s10749_s5 + $0x4] ss:$16 sps:$4 sm:$0xff]   ;;  %s10776_s11 = sld [smem:[#allocation9_spill]] }
  0x3d   :  { %v7228_v3 = vld [vmem:[%s10749_s5] ss:$16 sps:$4 sm:$0xff]   ;;  %1974 = vmatprep.subr.bf16.mxu1 %v7225_v1  ;;  %v7231_v5 = vld [vmem:[%s10749_s5 + $0x24] ss:$16 sps:$4 sm:$0xff]   ;;  %s10777_s1 = sld [smem:[#allocation10_spill]]  ;;  %s10778_s27 = sld [smem:[#allocation12_spill]] }
  0x3e   :  { %1975 = vmatpush1.bf16.msra.mxu1 %v7228_v3  ;;  %v7234_v7 = vld [vmem:[%s10749_s5 + $0x20] ss:$16 sps:$4 sm:$0xff]   ;;  %v7237_v9 = vld [vmem:[%s10749_s5 + $0x44] ss:$16 sps:$4 sm:$0xff]   ;;  %vm6214_vm0 = vcmask 64512  }
  0x3f   :  { %1976 = vmatprep.subr.bf16.mxu1 %v7231_v5  ;;  %v7240_v11 = vld [vmem:[%s10749_s5 + $0x40] ss:$16 sps:$4 sm:$0xff]   ;;  %v7243_v13 = vld [vmem:[%s10749_s5 + $0x64] ss:$16 sps:$4 sm:$0xff]  }
  0x40   :  { %v7246_v15 = vld [vmem:[%s10749_s5 + $0x60] ss:$16 sps:$4 sm:$0xff]   ;;  %v7249_v17 = vld [vmem:[%s10749_s5 + $0x84] ss:$16 sps:$4 sm:$0xff]  }
  0x41   :  { %v7252_v19 = vld [vmem:[%s10749_s5 + $0x80] ss:$16 sps:$4 sm:$0xff]   ;;  %v7255_v21 = vld [vmem:[%s10749_s5 + $0xa4] ss:$16 sps:$4 sm:$0xff]  }
  0x42   :  { %v7223_v0 = vld [vmem:[%s10775_s29 + $0x4] ss:$8 sps:$4 sm:$0xff]   ;;  %v7227_v2 = vld [vmem:[%s10775_s29] ss:$8 sps:$4 sm:$0xff]   ;;  %v7229_v4 = vld [vmem:[%s10775_s29 + $0x14] ss:$8 sps:$4 sm:$0xff]   ;;  %1977 = vmatpush1.bf16.msra.mxu1 %v7234_v7 }
  0x43   :  { %687 = vmatprep.subr.bf16.mxu0 %v7223_v0  ;;  %v7233_v6 = vld [vmem:[%s10775_s29 + $0x10] ss:$8 sps:$4 sm:$0xff]   ;;  %v7235_v8 = vld [vmem:[%s10775_s29 + $0x24] ss:$8 sps:$4 sm:$0xff]   ;;  %v7239_v10 = vld [vmem:[%s10775_s29 + $0x20] ss:$8 sps:$4 sm:$0xff]   ;;  %1978 = vmatprep.subr.bf16.mxu1 %v7237_v9 }
  0x44   :  { %688 = vmatpush1.bf16.msra.mxu0 %v7227_v2  ;;  %v7241_v12 = vld [vmem:[%s10775_s29 + $0x34] ss:$8 sps:$4 sm:$0xff]   ;;  %v7245_v14 = vld [vmem:[%s10775_s29 + $0x30] ss:$8 sps:$4 sm:$0xff]   ;;  %v7247_v16 = vld [vmem:[%s10775_s29 + $0x44] ss:$8 sps:$4 sm:$0xff]  }
  0x45   :  { %689 = vmatprep.subr.bf16.mxu0 %v7229_v4  ;;  %v7251_v18 = vld [vmem:[%s10775_s29 + $0x40] ss:$8 sps:$4 sm:$0xff]   ;;  %v7253_v20 = vld [vmem:[%s10775_s29 + $0x54] ss:$8 sps:$4 sm:$0xff]   ;;  %v7257_v22 = vld [vmem:[%s10775_s29 + $0x50] ss:$8 sps:$4 sm:$0xff]  }
  0x46   :  { %1979 = vmatpush1.bf16.msra.mxu1 %v7240_v11  ;;  %v7258_v23 = vld [vmem:[%s10749_s5 + $0xa0] ss:$16 sps:$4 sm:$0xff]   ;;  %v7259_v24 = vld [vmem:[%s10775_s29 + $0x64] ss:$8 sps:$4 sm:$0xff]   ;;  %v7265_v28 = vld [vmem:[%s10775_s29 + $0x74] ss:$8 sps:$4 sm:$0xff]  }
  0x47   :  { %1980 = vmatprep.subr.bf16.mxu1 %v7243_v13  ;;  %v7261_v25 = vld [vmem:[%s10749_s5 + $0xc4] ss:$16 sps:$4 sm:$0xff]   ;;  %v7263_v26 = vld [vmem:[%s10775_s29 + $0x60] ss:$8 sps:$4 sm:$0xff]   ;;  %v7269_v30 = vld [vmem:[%s10775_s29 + $0x70] ss:$8 sps:$4 sm:$0xff]  }
  0x48   :  { %690 = vmatpush1.bf16.msra.mxu0 %v7233_v6  ;;  %v7264_v27 = vld [vmem:[%s10749_s5 + $0xc0] ss:$16 sps:$4 sm:$0xff]   ;;  %v7267_v29 = vld [vmem:[%s10749_s5 + $0xe4] ss:$16 sps:$4 sm:$0xff]   ;;  %v100_v46 = vld [vmem:[%s10776_s11 + $0x8] sm:$0xff] }
  0x49   :  { %691 = vmatprep.subr.bf16.mxu0 %v7235_v8  ;;  %v7270_v31 = vld [vmem:[%s10749_s5 + $0xe0] ss:$16 sps:$4 sm:$0xff]   ;;  %v7271_v32 = vld [vmem:[%s10775_s29 + $0x84] ss:$8 sps:$4 sm:$0xff]   ;;  %v7277_v36 = vld [vmem:[%s10775_s29 + $0x94] ss:$8 sps:$4 sm:$0xff]   ;;  %v106_v48 = vpack.c.bf16 %v100_v46, %v100_v46 }
  0x4a   :  { %1981 = vmatpush1.bf16.msra.mxu1 %v7246_v15  ;;  %v7273_v33 = vld [vmem:[%s10749_s5 + $0x104] ss:$16 sps:$4 sm:$0xff]   ;;  %v7275_v34 = vld [vmem:[%s10775_s29 + $0x80] ss:$8 sps:$4 sm:$0xff]   ;;  %v7281_v38 = vld [vmem:[%s10775_s29 + $0x90] ss:$8 sps:$4 sm:$0xff]  }
  0x4b   :  { %1982 = vmatprep.subr.bf16.mxu1 %v7249_v17  ;;  %v7276_v35 = vld [vmem:[%s10749_s5 + $0x100] ss:$16 sps:$4 sm:$0xff]   ;;  %v7279_v37 = vld [vmem:[%s10749_s5 + $0x124] ss:$16 sps:$4 sm:$0xff]   ;;  %v811_v50 = vld [vmem:[%s10777_s1 + $0x8] sm:$0xff]  ;;  %719 = vmatprep.mubr.bf16.mxu0 %v106_v48 }
  0x4c   :  { %692 = vmatpush1.bf16.msra.mxu0 %v7239_v10  ;;  %v7282_v39 = vld [vmem:[%s10749_s5 + $0x120] ss:$16 sps:$4 sm:$0xff]   ;;  %v7283_v40 = vld [vmem:[%s10775_s29 + $0xa4] ss:$8 sps:$4 sm:$0xff]   ;;  %v7289_v44 = vld [vmem:[%s10775_s29 + $0xb4] ss:$8 sps:$4 sm:$0xff]   ;;  %v8817_v53 = vpack.c.bf16 %v811_v50, %v811_v50 }
  0x4d   :  { %693 = vmatprep.subr.bf16.mxu0 %v7241_v12  ;;  %v7285_v41 = vld [vmem:[%s10749_s5 + $0x144] ss:$16 sps:$4 sm:$0xff]   ;;  %v7287_v42 = vld [vmem:[%s10775_s29 + $0xa0] ss:$8 sps:$4 sm:$0xff]   ;;  %v7293_v47 = vld [vmem:[%s10775_s29 + $0xb0] ss:$8 sps:$4 sm:$0xff]  }
  0x4e   :  { %1983 = vmatpush1.bf16.msra.mxu1 %v7252_v19  ;;  %v7288_v43 = vld [vmem:[%s10749_s5 + $0x140] ss:$16 sps:$4 sm:$0xff]   ;;  %v7291_v45 = vld [vmem:[%s10749_s5 + $0x164] ss:$16 sps:$4 sm:$0xff]   ;;  %2006 = vmatprep.mubr.bf16.mxu1 %v8817_v53 }
  0x4f   :  { %1984 = vmatprep.subr.bf16.mxu1 %v7255_v21  ;;  %v7294_v49 = vld [vmem:[%s10749_s5 + $0x160] ss:$16 sps:$4 sm:$0xff]   ;;  %v7295_v51 = vld [vmem:[%s10775_s29 + $0xc4] ss:$8 sps:$4 sm:$0xff]   ;;  %v7301_v56 = vld [vmem:[%s10775_s29 + $0xd4] ss:$8 sps:$4 sm:$0xff]  }
  0x50   :  { %694 = vmatpush1.bf16.msra.mxu0 %v7245_v14  ;;  %v7297_v52 = vld [vmem:[%s10749_s5 + $0x184] ss:$16 sps:$4 sm:$0xff]   ;;  %v7299_v54 = vld [vmem:[%s10775_s29 + $0xc0] ss:$8 sps:$4 sm:$0xff]   ;;  %v7305_v58 = vld [vmem:[%s10775_s29 + $0xd0] ss:$8 sps:$4 sm:$0xff]  }
  0x51   :  { %695 = vmatprep.subr.bf16.mxu0 %v7247_v16  ;;  %v7300_v55 = vld [vmem:[%s10749_s5 + $0x180] ss:$16 sps:$4 sm:$0xff]   ;;  %v7303_v57 = vld [vmem:[%s10749_s5 + $0x1a4] ss:$16 sps:$4 sm:$0xff]  }
  0x52   :  { %1985 = vmatpush1.bf16.msra.mxu1 %v7258_v23  ;;  %v7306_v59 = vld [vmem:[%s10749_s5 + $0x1a0] ss:$16 sps:$4 sm:$0xff]   ;;  %v7307_v60 = vld [vmem:[%s10775_s29 + $0xe4] ss:$8 sps:$4 sm:$0xff]   ;;  %v7313_v0 = vld [vmem:[%s10775_s29 + $0xf4] ss:$8 sps:$4 sm:$0xff]  }
  0x53   :  { %1986 = vmatprep.subr.bf16.mxu1 %v7261_v25  ;;  %v7309_v61 = vld [vmem:[%s10749_s5 + $0x1c4] ss:$16 sps:$4 sm:$0xff]   ;;  %v7311_v62 = vld [vmem:[%s10775_s29 + $0xe0] ss:$8 sps:$4 sm:$0xff]   ;;  %v7317_v2 = vld [vmem:[%s10775_s29 + $0xf0] ss:$8 sps:$4 sm:$0xff]  }
  0x54   :  { %696 = vmatpush1.bf16.msra.mxu0 %v7251_v18  ;;  %v7312_v63 = vld [vmem:[%s10749_s5 + $0x1c0] ss:$16 sps:$4 sm:$0xff]   ;;  %v7315_v1 = vld [vmem:[%s10749_s5 + $0x1e4] ss:$16 sps:$4 sm:$0xff]  }
  0x55   :  { %697 = vmatprep.subr.bf16.mxu0 %v7253_v20  ;;  %v7318_v3 = vld [vmem:[%s10749_s5 + $0x1e0] ss:$16 sps:$4 sm:$0xff]   ;;  %v7321_v4 = vld [vmem:[%s10775_s29 + $0x104] ss:$8 sps:$4 sm:$0xff]   ;;  %v7327_v12 = vld [vmem:[%s10775_s29 + $0x114] ss:$8 sps:$4 sm:$0xff]  }
  0x56   :  { %1987 = vmatpush1.bf16.msra.mxu1 %v7264_v27  ;;  %v99_v5 = vld [vmem:[%s10776_s11] sm:$0xff]  ;;  %v7325_v14 = vld [vmem:[%s10775_s29 + $0x110] ss:$8 sps:$4 sm:$0xff]   ;;  %v7339_v20 = vld [vmem:[%s10775_s29 + $0x134] ss:$8 sps:$4 sm:$0xff]  }
  0x57   :  { %1988 = vmatprep.subr.bf16.mxu1 %v7267_v29  ;;  %v810_v6 = vld [vmem:[%s10777_s1] sm:$0xff]  ;;  %v105_v10 = vpack.c.bf16 %v99_v5, %v99_v5  ;;  %v7375_v48 = vld [vmem:[%s10775_s29 + $0x194] ss:$8 sps:$4 sm:$0xff]   ;;  %v7373_v50 = vld [vmem:[%s10775_s29 + $0x190] ss:$8 sps:$4 sm:$0xff]  }
  0x58   :  { %698 = vmatpush1.bf16.msra.mxu0 %v7257_v22  ;;  %v7324_v7 = vld [vmem:[%s10749_s5 + $0x204] ss:$16 sps:$4 sm:$0xff]   ;;  %v7319_v8 = vld [vmem:[%s10775_s29 + $0x100] ss:$8 sps:$4 sm:$0xff]   ;;  %v8880_v11 = vpack.c.bf16 %v810_v6, %v810_v6  ;;  %v7337_v22 = vld [vmem:[%s10775_s29 + $0x130] ss:$8 sps:$4 sm:$0xff]  }
  0x59   :  { %699 = vmatprep.subr.bf16.mxu0 %v7259_v24  ;;  %v7322_v9 = vld [vmem:[%s10749_s5 + $0x200] ss:$16 sps:$4 sm:$0xff]   ;;  %v7330_v13 = vld [vmem:[%s10749_s5 + $0x224] ss:$16 sps:$4 sm:$0xff]  }
  0x5a   :  { %1989 = vmatpush1.bf16.msra.mxu1 %v7270_v31  ;;  %v7328_v15 = vld [vmem:[%s10749_s5 + $0x220] ss:$16 sps:$4 sm:$0xff]   ;;  %v7333_v16 = vld [vmem:[%s10775_s29 + $0x124] ss:$8 sps:$4 sm:$0xff]  }
  0x5b   :  { %1990 = vmatprep.subr.bf16.mxu1 %v7273_v33  ;;  %v7336_v17 = vld [vmem:[%s10749_s5 + $0x244] ss:$16 sps:$4 sm:$0xff]   ;;  %v7331_v18 = vld [vmem:[%s10775_s29 + $0x120] ss:$8 sps:$4 sm:$0xff]  }
  0x5c   :  { %700 = vmatpush1.bf16.msra.mxu0 %v7263_v26  ;;  %v7334_v19 = vld [vmem:[%s10749_s5 + $0x240] ss:$16 sps:$4 sm:$0xff]   ;;  %v7342_v21 = vld [vmem:[%s10749_s5 + $0x264] ss:$16 sps:$4 sm:$0xff]  }
  0x5d   :  { %701 = vmatprep.subr.bf16.mxu0 %v7265_v28  ;;  %v7340_v23 = vld [vmem:[%s10749_s5 + $0x260] ss:$16 sps:$4 sm:$0xff]   ;;  %v7345_v24 = vld [vmem:[%s10775_s29 + $0x144] ss:$8 sps:$4 sm:$0xff]   ;;  %v7351_v28 = vld [vmem:[%s10775_s29 + $0x154] ss:$8 sps:$4 sm:$0xff]  }
  0x5e   :  { %1991 = vmatpush1.bf16.msra.mxu1 %v7276_v35  ;;  %v7348_v25 = vld [vmem:[%s10749_s5 + $0x284] ss:$16 sps:$4 sm:$0xff]   ;;  %v7343_v26 = vld [vmem:[%s10775_s29 + $0x140] ss:$8 sps:$4 sm:$0xff]  }
  0x5f   :  { %1992 = vmatprep.subr.bf16.mxu1 %v7279_v37  ;;  %v7346_v27 = vld [vmem:[%s10749_s5 + $0x280] ss:$16 sps:$4 sm:$0xff]   ;;  %v7354_v29 = vld [vmem:[%s10749_s5 + $0x2a4] ss:$16 sps:$4 sm:$0xff]  }
  0x60   :  { %702 = vmatpush1.bf16.msra.mxu0 %v7269_v30  ;;  %v7349_v30 = vld [vmem:[%s10775_s29 + $0x150] ss:$8 sps:$4 sm:$0xff]   ;;  %v7360_v33 = vld [vmem:[%s10749_s5 + $0x2c4] ss:$16 sps:$4 sm:$0xff]   ;;  %v7355_v35 = vld [vmem:[%s10775_s29 + $0x160] ss:$8 sps:$4 sm:$0xff]  }
  0x61   :  { %703 = vmatprep.subr.bf16.mxu0 %v7271_v32  ;;  %v7352_v31 = vld [vmem:[%s10749_s5 + $0x2a0] ss:$16 sps:$4 sm:$0xff]   ;;  %v7357_v32 = vld [vmem:[%s10775_s29 + $0x164] ss:$8 sps:$4 sm:$0xff]  }
  0x62   :  { %1993 = vmatpush1.bf16.msra.mxu1 %v7282_v39  ;;  %v7358_v37 = vld [vmem:[%s10749_s5 + $0x2c0] ss:$16 sps:$4 sm:$0xff]   ;;  %v7363_v39 = vld [vmem:[%s10775_s29 + $0x174] ss:$8 sps:$4 sm:$0xff]   ;;  %v7405_v5 = vld [vmem:[%s10775_s29 + $0x1e4] ss:$8 sps:$4 sm:$0xff]  }
  0x63   :  { %1994 = vmatprep.subr.bf16.mxu1 %v7285_v41  ;;  %v7367_v46 = vld [vmem:[%s10775_s29 + $0x180] ss:$8 sps:$4 sm:$0xff]   ;;  %v7408_v6 = vld [vmem:[%s10749_s5 + $0x3c4] ss:$16 sps:$4 sm:$0xff]  }
  0x64   :  { %704 = vmatpush1.bf16.msra.mxu0 %v7275_v34  ;;  %v102_v34 = vld [vmem:[%s10776_s11 + $0x18] sm:$0xff] }
  0x65   :  { %705 = vmatprep.subr.bf16.mxu0 %v7277_v36  ;;  %v108_v36 = vpack.c.bf16 %v102_v34, %v102_v34  ;;  %v7435_v34 = vld [vmem:[%s10775_s29 + $0x234] ss:$8 sps:$4 sm:$0xff]  }
  0x66   :  { %1995 = vmatpush1.bf16.msra.mxu1 %v7288_v43  ;;  %v7364_v43 = vld [vmem:[%s10749_s5 + $0x2e0] ss:$16 sps:$4 sm:$0xff]  }
  0x67   :  { %1996 = vmatprep.subr.bf16.mxu1 %v7291_v45  ;;  %v7372_v45 = vld [vmem:[%s10749_s5 + $0x304] ss:$16 sps:$4 sm:$0xff]  }
  0x68   :  { %706 = vmatpush1.bf16.msra.mxu0 %v7281_v38  ;;  %v813_v38 = vld [vmem:[%s10777_s1 + $0x18] sm:$0xff] }
  0x69   :  { %707 = vmatprep.subr.bf16.mxu0 %v7283_v40  ;;  %v7366_v40 = vld [vmem:[%s10749_s5 + $0x2e4] ss:$16 sps:$4 sm:$0xff]   ;;  %v8967_v41 = vpack.c.bf16 %v813_v38, %v813_v38 }
  0x6a   :  { %1997 = vmatpush1.bf16.msra.mxu1 %v7294_v49  ;;  %v7378_v49 = vld [vmem:[%s10749_s5 + $0x324] ss:$16 sps:$4 sm:$0xff]  }
  0x6b   :  { %1998 = vmatprep.subr.bf16.mxu1 %v7297_v52  ;;  %v7381_v52 = vld [vmem:[%s10775_s29 + $0x1a4] ss:$8 sps:$4 sm:$0xff]  }
  0x6c   :  { %708 = vmatpush1.bf16.msra.mxu0 %v7287_v42  ;;  %v7361_v42 = vld [vmem:[%s10775_s29 + $0x170] ss:$8 sps:$4 sm:$0xff]   ;;  %v7441_v38 = vld [vmem:[%s10775_s29 + $0x244] ss:$8 sps:$4 sm:$0xff]  }
  0x6d   :  { %709 = vmatprep.subr.bf16.mxu0 %v7289_v44  ;;  %v7369_v44 = vld [vmem:[%s10775_s29 + $0x184] ss:$8 sps:$4 sm:$0xff]  }
  0x6e   :  { %1999 = vmatpush1.bf16.msra.mxu1 %v7300_v55  ;;  %v7379_v55 = vld [vmem:[%s10775_s29 + $0x1a0] ss:$8 sps:$4 sm:$0xff]  }
  0x6f   :  { %2000 = vmatprep.subr.bf16.mxu1 %v7303_v57  ;;  %v7387_v57 = vld [vmem:[%s10775_s29 + $0x1b4] ss:$8 sps:$4 sm:$0xff]  }
  0x70   :  { %710 = vmatpush1.bf16.msra.mxu0 %v7293_v47  ;;  %v7370_v47 = vld [vmem:[%s10749_s5 + $0x300] ss:$16 sps:$4 sm:$0xff]  }
  0x71   :  { %711 = vmatprep.subr.bf16.mxu0 %v7295_v51  ;;  %v7376_v51 = vld [vmem:[%s10749_s5 + $0x320] ss:$16 sps:$4 sm:$0xff]  }
  0x72   :  { %2001 = vmatpush1.bf16.msra.mxu1 %v7306_v59  ;;  %v7385_v59 = vld [vmem:[%s10775_s29 + $0x1b0] ss:$8 sps:$4 sm:$0xff]  }
  0x73   :  { %2002 = vmatprep.subr.bf16.mxu1 %v7309_v61  ;;  %v7393_v61 = vld [vmem:[%s10775_s29 + $0x1c4] ss:$8 sps:$4 sm:$0xff]  }
  0x74   :  { %712 = vmatpush1.bf16.msra.mxu0 %v7299_v54  ;;  %v7384_v54 = vld [vmem:[%s10749_s5 + $0x344] ss:$16 sps:$4 sm:$0xff]  }
  0x75   :  { %713 = vmatprep.subr.bf16.mxu0 %v7301_v56  ;;  %v7382_v56 = vld [vmem:[%s10749_s5 + $0x340] ss:$16 sps:$4 sm:$0xff]  }
  0x76   :  { %2003 = vmatpush1.bf16.msra.mxu1 %v7312_v63  ;;  %v7391_v63 = vld [vmem:[%s10775_s29 + $0x1c0] ss:$8 sps:$4 sm:$0xff]  }
  0x77   :  { %2004 = vmatprep.subr.bf16.mxu1 %v7315_v1  ;;  %v7399_v1 = vld [vmem:[%s10775_s29 + $0x1d4] ss:$8 sps:$4 sm:$0xff]  }
  0x78   :  { %714 = vmatpush1.bf16.msra.mxu0 %v7305_v58  ;;  %v7390_v58 = vld [vmem:[%s10749_s5 + $0x364] ss:$16 sps:$4 sm:$0xff]  }
  0x79   :  { %715 = vmatprep.subr.bf16.mxu0 %v7307_v60  ;;  %v7388_v60 = vld [vmem:[%s10749_s5 + $0x360] ss:$16 sps:$4 sm:$0xff]  }
  0x7a   :  { %2005 = vmatpush1.bf16.msra.mxu1 %v7318_v3  ;;  %v7397_v3 = vld [vmem:[%s10775_s29 + $0x1d0] ss:$8 sps:$4 sm:$0xff]  }
  0x7b   :  { %2015 = vmatprep.subr.bf16.mxu1 %v7324_v7  ;;  %v7403_v7 = vld [vmem:[%s10775_s29 + $0x1e0] ss:$8 sps:$4 sm:$0xff]  }
  0x7c   :  { %716 = vmatpush1.bf16.msra.mxu0 %v7311_v62  ;;  %v7396_v62 = vld [vmem:[%s10749_s5 + $0x384] ss:$16 sps:$4 sm:$0xff]  }
  0x7d   :  { %717 = vmatprep.subr.bf16.mxu0 %v7313_v0  ;;  %2007 = vmatmul.mubr.bf16.vlgmr.msra.gmra.mrb[0].mxu1 %v8880_v11  ;;  %v7394_v0 = vld [vmem:[%s10749_s5 + $0x380] ss:$16 sps:$4 sm:$0xff]  }
  0x7e   :  { %2016 = vmatpush1.bf16.msra.mxu1 %v7322_v9  ;;  %2047 = vmatprep.mubr.bf16.mxu1 %v8967_v41  ;;  %v7411_v9 = vld [vmem:[%s10775_s29 + $0x1f4] ss:$8 sps:$4 sm:$0xff]  }
  0x7f   :  { %2017 = vmatprep.subr.bf16.mxu1 %v7330_v13  ;;  %v7412_v13 = vld [vmem:[%s10749_s5 + $0x3e0] ss:$16 sps:$4 sm:$0xff]  }
  0x80   :  { %718 = vmatpush1.bf16.msra.mxu0 %v7317_v2  ;;  %v7402_v2 = vld [vmem:[%s10749_s5 + $0x3a4] ss:$16 sps:$4 sm:$0xff]  }
  0x81   :  { %728 = vmatprep.subr.bf16.mxu0 %v7321_v4  ;;  %v7400_v4 = vld [vmem:[%s10749_s5 + $0x3a0] ss:$16 sps:$4 sm:$0xff]  }
  0x82   :  { %2018 = vmatpush1.bf16.msra.mxu1 %v7328_v15  ;;  %v101_v15 = vld [vmem:[%s10776_s11 + $0x10] sm:$0xff] }
  0x83   :  { %720 = vmatmul.mubr.bf16.vlgmr.msra.gmra.mrb[0].mxu0 %v105_v10  ;;  %2019 = vmatprep.subr.bf16.mxu1 %v7336_v17  ;;  %v7414_v10 = vld [vmem:[%s10749_s5 + $0x3e4] ss:$16 sps:$4 sm:$0xff]  }
  0x84   :  { %729 = vmatpush1.bf16.msra.mxu0 %v7319_v8  ;;  %760 = vmatprep.mubr.bf16.mxu0 %v108_v36  ;;  %v7406_v8 = vld [vmem:[%s10749_s5 + $0x3c0] ss:$16 sps:$4 sm:$0xff]   ;;  %v7420_v17 = vld [vmem:[%s10749_s5 + $0x404] ss:$16 sps:$4 sm:$0xff]  }
  0x85   :  { %730 = vmatprep.subr.bf16.mxu0 %v7327_v12  ;;  %v7409_v12 = vld [vmem:[%s10775_s29 + $0x1f0] ss:$8 sps:$4 sm:$0xff]  }
  0x86   :  { %2020 = vmatpush1.bf16.msra.mxu1 %v7334_v19  ;;  %v7418_v19 = vld [vmem:[%s10749_s5 + $0x400] ss:$16 sps:$4 sm:$0xff]  }
  0x87   :  { %2021 = vmatprep.subr.bf16.mxu1 %v7342_v21  ;;  %v7433_v36 = vld [vmem:[%s10775_s29 + $0x230] ss:$8 sps:$4 sm:$0xff]  }
  0x88   :  { %731 = vmatpush1.bf16.msra.mxu0 %v7325_v14  ;;  %v7417_v14 = vld [vmem:[%s10775_s29 + $0x204] ss:$8 sps:$4 sm:$0xff]  }
  0x89   :  { %732 = vmatprep.subr.bf16.mxu0 %v7333_v16  ;;  %v812_v16 = vld [vmem:[%s10777_s1 + $0x10] sm:$0xff] }
  0x8a   :  { %2022 = vmatpush1.bf16.msra.mxu1 %v7340_v23  ;;  %v9090_v21 = vpack.c.bf16 %v812_v16, %v812_v16  ;;  %v7426_v23 = vld [vmem:[%s10749_s5 + $0x424] ss:$16 sps:$4 sm:$0xff]   ;;  %v7496_v16 = vld [vmem:[%s10749_s5 + $0x5a0] ss:$16 sps:$4 sm:$0xff]  }
  0x8b   :  { %2023 = vmatprep.subr.bf16.mxu1 %v7348_v25  ;;  %v7421_v25 = vld [vmem:[%s10775_s29 + $0x210] ss:$8 sps:$4 sm:$0xff]  }
  0x8c   :  { %733 = vmatpush1.bf16.msra.mxu0 %v7331_v18  ;;  %v7415_v18 = vld [vmem:[%s10775_s29 + $0x200] ss:$8 sps:$4 sm:$0xff]  }
  0x8d   :  { %734 = vmatprep.subr.bf16.mxu0 %v7339_v20  ;;  %v107_v20 = vpack.c.bf16 %v101_v15, %v101_v15  ;;  %v7493_v15 = vld [vmem:[%s10775_s29 + $0x2d0] ss:$8 sps:$4 sm:$0xff]  }
  0x8e   :  { %2024 = vmatpush1.bf16.msra.mxu1 %v7346_v27 }
  0x8f   :  { %2025 = vmatprep.subr.bf16.mxu1 %v7354_v29  ;;  %v7429_v29 = vld [vmem:[%s10775_s29 + $0x224] ss:$8 sps:$4 sm:$0xff]  }
  0x90   :  { %735 = vmatpush1.bf16.msra.mxu0 %v7337_v22  ;;  %v7423_v22 = vld [vmem:[%s10775_s29 + $0x214] ss:$8 sps:$4 sm:$0xff]  }
  0x91   :  { %736 = vmatprep.subr.bf16.mxu0 %v7345_v24  ;;  %v104_v24 = vld [vmem:[%s10776_s11 + $0x28] sm:$0xff] }
  0x92   :  { %2026 = vmatpush1.bf16.msra.mxu1 %v7352_v31  ;;  %v110_v27 = vpack.c.bf16 %v104_v24, %v104_v24  ;;  %v7432_v31 = vld [vmem:[%s10749_s5 + $0x444] ss:$16 sps:$4 sm:$0xff]   ;;  %v7505_v24 = vld [vmem:[%s10775_s29 + $0x2f0] ss:$8 sps:$4 sm:$0xff]  }
  0x93   :  { %2027 = vmatprep.subr.bf16.mxu1 %v7360_v33  ;;  %v7430_v33 = vld [vmem:[%s10749_s5 + $0x440] ss:$16 sps:$4 sm:$0xff]  }
  0x94   :  { %737 = vmatpush1.bf16.msra.mxu0 %v7343_v26  ;;  %v7424_v26 = vld [vmem:[%s10749_s5 + $0x420] ss:$16 sps:$4 sm:$0xff]  }
  0x95   :  { %738 = vmatprep.subr.bf16.mxu0 %v7351_v28  ;;  %v815_v28 = vld [vmem:[%s10777_s1 + $0x28] sm:$0xff] }
  0x96   :  { %2028 = vmatpush1.bf16.msra.mxu1 %v7358_v37  ;;  %v7436_v37 = vld [vmem:[%s10749_s5 + $0x460] ss:$16 sps:$4 sm:$0xff]  }
  0x97   :  { %2029 = vmatprep.subr.bf16.mxu1 %v7366_v40  ;;  %v7439_v40 = vld [vmem:[%s10775_s29 + $0x240] ss:$8 sps:$4 sm:$0xff]  }
  0x98   :  { %739 = vmatpush1.bf16.msra.mxu0 %v7349_v30  ;;  %v9114_v30 = vpack.c.bf16 %v815_v28, %v815_v28  ;;  %v7513_v28 = vld [vmem:[%s10749_s5 + $0xc] ss:$16 sps:$4 sm:$0xff]  }
  0x99   :  { %740 = vmatprep.subr.bf16.mxu0 %v7357_v32  ;;  %v7427_v32 = vld [vmem:[%s10775_s29 + $0x220] ss:$8 sps:$4 sm:$0xff]  }
  0x9a   :  { %2030 = vmatpush1.bf16.msra.mxu1 %v7364_v43  ;;  %v7447_v43 = vld [vmem:[%s10775_s29 + $0x254] ss:$8 sps:$4 sm:$0xff]  }
  0x9b   :  { %2031 = vmatprep.subr.bf16.mxu1 %v7372_v45  ;;  %v7445_v45 = vld [vmem:[%s10775_s29 + $0x250] ss:$8 sps:$4 sm:$0xff]  }
  0x9c   :  { %741 = vmatpush1.bf16.msra.mxu0 %v7355_v35  ;;  %v7438_v35 = vld [vmem:[%s10749_s5 + $0x464] ss:$16 sps:$4 sm:$0xff]  }
  0x9d   :  { %742 = vmatprep.subr.bf16.mxu0 %v7363_v39  ;;  %v7444_v39 = vld [vmem:[%s10749_s5 + $0x484] ss:$16 sps:$4 sm:$0xff]  }
  0x9e   :  { %2032 = vmatpush1.bf16.msra.mxu1 %v7370_v47  ;;  %v7453_v47 = vld [vmem:[%s10775_s29 + $0x264] ss:$8 sps:$4 sm:$0xff]  }
  0x9f   :  { %2033 = vmatprep.subr.bf16.mxu1 %v7378_v49  ;;  %v7451_v49 = vld [vmem:[%s10775_s29 + $0x260] ss:$8 sps:$4 sm:$0xff]  }
  0xa0   :  { %743 = vmatpush1.bf16.msra.mxu0 %v7361_v42  ;;  %v7442_v42 = vld [vmem:[%s10749_s5 + $0x480] ss:$16 sps:$4 sm:$0xff]  }
  0xa1   :  { %744 = vmatprep.subr.bf16.mxu0 %v7369_v44  ;;  %v7450_v44 = vld [vmem:[%s10749_s5 + $0x4a4] ss:$16 sps:$4 sm:$0xff]  }
  0xa2   :  { %2034 = vmatpush1.bf16.msra.mxu1 %v7376_v51  ;;  %v7459_v51 = vld [vmem:[%s10775_s29 + $0x274] ss:$8 sps:$4 sm:$0xff]  }
  0xa3   :  { %2035 = vmatprep.subr.bf16.mxu1 %v7384_v54  ;;  %v7457_v54 = vld [vmem:[%s10775_s29 + $0x270] ss:$8 sps:$4 sm:$0xff]  }
  0xa4   :  { %745 = vmatpush1.bf16.msra.mxu0 %v7367_v46  ;;  %v7448_v46 = vld [vmem:[%s10749_s5 + $0x4a0] ss:$16 sps:$4 sm:$0xff]  }
  0xa5   :  { %746 = vmatprep.subr.bf16.mxu0 %v7375_v48  ;;  %v7456_v48 = vld [vmem:[%s10749_s5 + $0x4c4] ss:$16 sps:$4 sm:$0xff]  }
  0xa6   :  { %2036 = vmatpush1.bf16.msra.mxu1 %v7382_v56  ;;  %v7465_v56 = vld [vmem:[%s10775_s29 + $0x284] ss:$8 sps:$4 sm:$0xff]  }
  0xa7   :  { %2037 = vmatprep.subr.bf16.mxu1 %v7390_v58  ;;  %v7463_v58 = vld [vmem:[%s10775_s29 + $0x280] ss:$8 sps:$4 sm:$0xff]  }
  0xa8   :  { %747 = vmatpush1.bf16.msra.mxu0 %v7373_v50  ;;  %v7454_v50 = vld [vmem:[%s10749_s5 + $0x4c0] ss:$16 sps:$4 sm:$0xff]  }
  0xa9   :  { %748 = vmatprep.subr.bf16.mxu0 %v7381_v52  ;;  %v7462_v52 = vld [vmem:[%s10749_s5 + $0x4e4] ss:$16 sps:$4 sm:$0xff]  }
  0xaa   :  { %2038 = vmatpush1.bf16.msra.mxu1 %v7388_v60  ;;  %v7471_v60 = vld [vmem:[%s10775_s29 + $0x294] ss:$8 sps:$4 sm:$0xff]  }
  0xab   :  { %2039 = vmatprep.subr.bf16.mxu1 %v7396_v62  ;;  %v7469_v62 = vld [vmem:[%s10775_s29 + $0x290] ss:$8 sps:$4 sm:$0xff]  }
  0xac   :  { %749 = vmatpush1.bf16.msra.mxu0 %v7379_v55  ;;  %v7460_v55 = vld [vmem:[%s10749_s5 + $0x4e0] ss:$16 sps:$4 sm:$0xff]  }
  0xad   :  { %750 = vmatprep.subr.bf16.mxu0 %v7387_v57  ;;  %v7468_v57 = vld [vmem:[%s10749_s5 + $0x504] ss:$16 sps:$4 sm:$0xff]  }
  0xae   :  { %2040 = vmatpush1.bf16.msra.mxu1 %v7394_v0  ;;  %v7477_v0 = vld [vmem:[%s10775_s29 + $0x2a4] ss:$8 sps:$4 sm:$0xff]  }
  0xaf   :  { %2041 = vmatprep.subr.bf16.mxu1 %v7402_v2  ;;  %v7475_v2 = vld [vmem:[%s10775_s29 + $0x2a0] ss:$8 sps:$4 sm:$0xff]  }
  0xb0   :  { %751 = vmatpush1.bf16.msra.mxu0 %v7385_v59  ;;  %v7466_v59 = vld [vmem:[%s10749_s5 + $0x500] ss:$16 sps:$4 sm:$0xff]  }
  0xb1   :  { %752 = vmatprep.subr.bf16.mxu0 %v7393_v61  ;;  %v7474_v61 = vld [vmem:[%s10749_s5 + $0x524] ss:$16 sps:$4 sm:$0xff]  }
  0xb2   :  { %2042 = vmatpush1.bf16.msra.mxu1 %v7400_v4  ;;  %v7483_v4 = vld [vmem:[%s10775_s29 + $0x2b4] ss:$8 sps:$4 sm:$0xff]  }
  0xb3   :  { %2043 = vmatprep.subr.bf16.mxu1 %v7408_v6  ;;  %v7481_v6 = vld [vmem:[%s10775_s29 + $0x2b0] ss:$8 sps:$4 sm:$0xff]  }
  0xb4   :  { %753 = vmatpush1.bf16.msra.mxu0 %v7391_v63  ;;  %v7472_v63 = vld [vmem:[%s10749_s5 + $0x520] ss:$16 sps:$4 sm:$0xff]  }
  0xb5   :  { %754 = vmatprep.subr.bf16.mxu0 %v7399_v1  ;;  %v7480_v1 = vld [vmem:[%s10749_s5 + $0x544] ss:$16 sps:$4 sm:$0xff]  }
  0xb6   :  { %2044 = vmatpush1.bf16.msra.mxu1 %v7406_v8  ;;  %v7489_v8 = vld [vmem:[%s10775_s29 + $0x2c4] ss:$8 sps:$4 sm:$0xff]  }
  0xb7   :  { %2045 = vmatprep.subr.bf16.mxu1 %v7414_v10  ;;  %v7487_v10 = vld [vmem:[%s10775_s29 + $0x2c0] ss:$8 sps:$4 sm:$0xff]  }
  0xb8   :  { %755 = vmatpush1.bf16.msra.mxu0 %v7397_v3  ;;  %v7478_v3 = vld [vmem:[%s10749_s5 + $0x540] ss:$16 sps:$4 sm:$0xff]  }
  0xb9   :  { %756 = vmatprep.subr.bf16.mxu0 %v7405_v5  ;;  %v7486_v5 = vld [vmem:[%s10749_s5 + $0x564] ss:$16 sps:$4 sm:$0xff]  }
  0xba   :  { %2046 = vmatpush1.bf16.msra.mxu1 %v7412_v13  ;;  %v7495_v13 = vld [vmem:[%s10775_s29 + $0x2d4] ss:$8 sps:$4 sm:$0xff]  }
  0xbb   :  { %2056 = vmatprep.subr.bf16.mxu1 %v7420_v17  ;;  %v7501_v17 = vld [vmem:[%s10775_s29 + $0x2e4] ss:$8 sps:$4 sm:$0xff]  }
  0xbc   :  { %757 = vmatpush1.bf16.msra.mxu0 %v7403_v7  ;;  %v7484_v7 = vld [vmem:[%s10749_s5 + $0x560] ss:$16 sps:$4 sm:$0xff]  }
  0xbd   :  { %758 = vmatprep.subr.bf16.mxu0 %v7411_v9  ;;  %2048 = vmatmul.mubr.bf16.vlgmr.msra.gmra.mrb[0].mxu1 %v9090_v21  ;;  %v7492_v9 = vld [vmem:[%s10749_s5 + $0x584] ss:$16 sps:$4 sm:$0xff]  }
  0xbe   :  { %2057 = vmatpush1.bf16.msra.mxu1 %v7418_v19  ;;  %2088 = vmatprep.mubr.bf16.mxu1 %v9114_v30  ;;  %v7499_v19 = vld [vmem:[%s10775_s29 + $0x2e0] ss:$8 sps:$4 sm:$0xff]  }
  0xbf   :  { %2058 = vmatprep.subr.bf16.mxu1 %v7426_v23  ;;  %v7510_v23 = vld [vmem:[%s10749_s5 + $0x5e4] ss:$16 sps:$4 sm:$0xff]  }
  0xc0   :  { %759 = vmatpush1.bf16.msra.mxu0 %v7409_v12  ;;  %v7490_v12 = vld [vmem:[%s10749_s5 + $0x580] ss:$16 sps:$4 sm:$0xff]  }
  0xc1   :  { %769 = vmatprep.subr.bf16.mxu0 %v7417_v14  ;;  %v7498_v14 = vld [vmem:[%s10749_s5 + $0x5a4] ss:$16 sps:$4 sm:$0xff]  }
  0xc2   :  { %2059 = vmatpush1.bf16.msra.mxu1 %v7424_v26  ;;  %v103_v26 = vld [vmem:[%s10776_s11 + $0x20] sm:$0xff] }
  0xc3   :  { %761 = vmatmul.mubr.bf16.vlgmr.msra.gmra.mrb[0].mxu0 %v107_v20  ;;  %2060 = vmatprep.subr.bf16.mxu1 %v7432_v31  ;;  %v7502_v20 = vld [vmem:[%s10749_s5 + $0x5c0] ss:$16 sps:$4 sm:$0xff]  }
  0xc4   :  { %770 = vmatpush1.bf16.msra.mxu0 %v7415_v18  ;;  %801 = vmatprep.mubr.bf16.mxu0 %v110_v27  ;;  %v7504_v18 = vld [vmem:[%s10749_s5 + $0x5c4] ss:$16 sps:$4 sm:$0xff]  }
  0xc5   :  { %771 = vmatprep.subr.bf16.mxu0 %v7423_v22  ;;  %v7507_v22 = vld [vmem:[%s10775_s29 + $0x2f4] ss:$8 sps:$4 sm:$0xff]   ;;  %v814_v27 = vld [vmem:[%s10777_s1 + $0x20] sm:$0xff] }
  0xc6   :  { %2061 = vmatpush1.bf16.msra.mxu1 %v7430_v33  ;;  %v9291_v31 = vpack.c.bf16 %v814_v27, %v814_v27  ;;  %v7516_v33 = vld [vmem:[%s10749_s5 + $0x2c] ss:$16 sps:$4 sm:$0xff]   ;;  %v7690_v27 = vld [vmem:[%s10751_s7 + $0x164] ss:$16 sps:$4 sm:$0xff]  }
  0xc7   :  { %2062 = vmatprep.subr.bf16.mxu1 %v7438_v35  ;;  %v7519_v35 = vld [vmem:[%s10749_s5 + $0x4c] ss:$16 sps:$4 sm:$0xff]  }
  0xc8   :  { %772 = vmatpush1.bf16.msra.mxu0 %v7421_v25  ;;  %v7508_v25 = vld [vmem:[%s10749_s5 + $0x5e0] ss:$16 sps:$4 sm:$0xff]  }
  0xc9   :  { %773 = vmatprep.subr.bf16.mxu0 %v7429_v29  ;;  %v109_v29 = vpack.c.bf16 %v103_v26, %v103_v26  ;;  %v7685_v26 = vld [vmem:[%s10751_s7 + $0x140] ss:$16 sps:$4 sm:$0xff]  }
  0xca   :  { %2063 = vmatpush1.bf16.msra.mxu1 %v7436_v37  ;;  %v7522_v37 = vld [vmem:[%s10749_s5 + $0x6c] ss:$16 sps:$4 sm:$0xff]  }
  0xcb   :  { %2064 = vmatprep.subr.bf16.mxu1 %v7444_v39  ;;  %v7523_v39 = vld [vmem:[%s10749_s5 + $0x88] ss:$16 sps:$4 sm:$0xff]  }
  0xcc   :  { %774 = vmatpush1.bf16.msra.mxu0 %v7427_v32  ;;  %v7511_v32 = vld [vmem:[%s10749_s5 + $0x8] ss:$16 sps:$4 sm:$0xff]  }
  0xcd   :  { %775 = vmatprep.subr.bf16.mxu0 %v7435_v34  ;;  %v7514_v34 = vld [vmem:[%s10749_s5 + $0x28] ss:$16 sps:$4 sm:$0xff]  }
  0xce   :  { %2065 = vmatpush1.bf16.msra.mxu1 %v7442_v42  ;;  %v7526_v42 = vld [vmem:[%s10749_s5 + $0xa8] ss:$16 sps:$4 sm:$0xff]  }
  0xcf   :  { %2066 = vmatprep.subr.bf16.mxu1 %v7450_v44  ;;  %v7529_v44 = vld [vmem:[%s10749_s5 + $0xc8] ss:$16 sps:$4 sm:$0xff]  }
  0xd0   :  { %776 = vmatpush1.bf16.msra.mxu0 %v7433_v36  ;;  %v7517_v36 = vld [vmem:[%s10749_s5 + $0x48] ss:$16 sps:$4 sm:$0xff]  }
  0xd1   :  { %777 = vmatprep.subr.bf16.mxu0 %v7441_v38  ;;  %v7520_v38 = vld [vmem:[%s10749_s5 + $0x68] ss:$16 sps:$4 sm:$0xff]  }
  0xd2   :  { %2067 = vmatpush1.bf16.msra.mxu1 %v7448_v46  ;;  %v7628_v46 = vld [vmem:[%s10751_s7] ss:$16 sps:$4 sm:$0xff]  }
  0xd3   :  { %2068 = vmatprep.subr.bf16.mxu1 %v7456_v48  ;;  %v7532_v48 = vld [vmem:[%s10749_s5 + $0xe8] ss:$16 sps:$4 sm:$0xff]  }
  0xd4   :  { %778 = vmatpush1.bf16.msra.mxu0 %v7439_v40  ;;  %v7528_v40 = vld [vmem:[%s10749_s5 + $0xac] ss:$16 sps:$4 sm:$0xff]  }
  0xd5   :  { %779 = vmatprep.subr.bf16.mxu0 %v7447_v43  ;;  %v7531_v43 = vld [vmem:[%s10749_s5 + $0xcc] ss:$16 sps:$4 sm:$0xff]  }
  0xd6   :  { %2069 = vmatpush1.bf16.msra.mxu1 %v7454_v50  ;;  %v7634_v50 = vld [vmem:[%s10751_s7 + $0x20] ss:$16 sps:$4 sm:$0xff]  }
  0xd7   :  { %2070 = vmatprep.subr.bf16.mxu1 %v7462_v52  ;;  %v7535_v52 = vld [vmem:[%s10749_s5 + $0x108] ss:$16 sps:$4 sm:$0xff]  }
  0xd8   :  { %780 = vmatpush1.bf16.msra.mxu0 %v7445_v45  ;;  %v7534_v45 = vld [vmem:[%s10749_s5 + $0xec] ss:$16 sps:$4 sm:$0xff]  }
  0xd9   :  { %781 = vmatprep.subr.bf16.mxu0 %v7453_v47  ;;  %v7630_v47 = vld [vmem:[%s10751_s7 + $0x4] ss:$16 sps:$4 sm:$0xff]  }
  0xda   :  { %2071 = vmatpush1.bf16.msra.mxu1 %v7460_v55  ;;  %v7640_v55 = vld [vmem:[%s10751_s7 + $0x40] ss:$16 sps:$4 sm:$0xff]  }
  0xdb   :  { %2072 = vmatprep.subr.bf16.mxu1 %v7468_v57  ;;  %v7538_v57 = vld [vmem:[%s10749_s5 + $0x128] ss:$16 sps:$4 sm:$0xff]  }
  0xdc   :  { %782 = vmatpush1.bf16.msra.mxu0 %v7451_v49  ;;  %v7537_v49 = vld [vmem:[%s10749_s5 + $0x10c] ss:$16 sps:$4 sm:$0xff]  }
  0xdd   :  { %783 = vmatprep.subr.bf16.mxu0 %v7459_v51  ;;  %v7636_v51 = vld [vmem:[%s10751_s7 + $0x24] ss:$16 sps:$4 sm:$0xff]  }
  0xde   :  { %2073 = vmatpush1.bf16.msra.mxu1 %v7466_v59  ;;  %v7646_v59 = vld [vmem:[%s10751_s7 + $0x60] ss:$16 sps:$4 sm:$0xff]  }
  0xdf   :  { %2074 = vmatprep.subr.bf16.mxu1 %v7474_v61  ;;  %v7541_v61 = vld [vmem:[%s10749_s5 + $0x148] ss:$16 sps:$4 sm:$0xff]  }
  0xe0   :  { %784 = vmatpush1.bf16.msra.mxu0 %v7457_v54  ;;  %v7540_v54 = vld [vmem:[%s10749_s5 + $0x12c] ss:$16 sps:$4 sm:$0xff]  }
  0xe1   :  { %785 = vmatprep.subr.bf16.mxu0 %v7465_v56  ;;  %v7642_v56 = vld [vmem:[%s10751_s7 + $0x44] ss:$16 sps:$4 sm:$0xff]  }
  0xe2   :  { %2075 = vmatpush1.bf16.msra.mxu1 %v7472_v63  ;;  %v7652_v63 = vld [vmem:[%s10751_s7 + $0x80] ss:$16 sps:$4 sm:$0xff]  }
  0xe3   :  { %2076 = vmatprep.subr.bf16.mxu1 %v7480_v1  ;;  %v7544_v1 = vld [vmem:[%s10749_s5 + $0x168] ss:$16 sps:$4 sm:$0xff]  }
  0xe4   :  { %786 = vmatpush1.bf16.msra.mxu0 %v7463_v58  ;;  %v7543_v58 = vld [vmem:[%s10749_s5 + $0x14c] ss:$16 sps:$4 sm:$0xff]  }
  0xe5   :  { %787 = vmatprep.subr.bf16.mxu0 %v7471_v60  ;;  %v7648_v60 = vld [vmem:[%s10751_s7 + $0x64] ss:$16 sps:$4 sm:$0xff]  }
  0xe6   :  { %2077 = vmatpush1.bf16.msra.mxu1 %v7478_v3  ;;  %v7658_v3 = vld [vmem:[%s10751_s7 + $0xa0] ss:$16 sps:$4 sm:$0xff]  }
  0xe7   :  { %2078 = vmatprep.subr.bf16.mxu1 %v7486_v5  ;;  %v7547_v5 = vld [vmem:[%s10749_s5 + $0x188] ss:$16 sps:$4 sm:$0xff]  }
  0xe8   :  { %788 = vmatpush1.bf16.msra.mxu0 %v7469_v62  ;;  %v7546_v62 = vld [vmem:[%s10749_s5 + $0x16c] ss:$16 sps:$4 sm:$0xff]  }
  0xe9   :  { %789 = vmatprep.subr.bf16.mxu0 %v7477_v0  ;;  %v7654_v0 = vld [vmem:[%s10751_s7 + $0x84] ss:$16 sps:$4 sm:$0xff]  }
  0xea   :  { %2079 = vmatpush1.bf16.msra.mxu1 %v7484_v7  ;;  %v7664_v7 = vld [vmem:[%s10751_s7 + $0xc0] ss:$16 sps:$4 sm:$0xff]  }
  0xeb   :  { %2080 = vmatprep.subr.bf16.mxu1 %v7492_v9  ;;  %v7550_v9 = vld [vmem:[%s10749_s5 + $0x1a8] ss:$16 sps:$4 sm:$0xff]  }
  0xec   :  { %790 = vmatpush1.bf16.msra.mxu0 %v7475_v2  ;;  %v7549_v2 = vld [vmem:[%s10749_s5 + $0x18c] ss:$16 sps:$4 sm:$0xff]  }
  0xed   :  { %791 = vmatprep.subr.bf16.mxu0 %v7483_v4  ;;  %v7660_v4 = vld [vmem:[%s10751_s7 + $0xa4] ss:$16 sps:$4 sm:$0xff]  }
  0xee   :  { %2081 = vmatpush1.bf16.msra.mxu1 %v7490_v12  ;;  %v7670_v12 = vld [vmem:[%s10751_s7 + $0xe0] ss:$16 sps:$4 sm:$0xff]  }
  0xef   :  { %2082 = vmatprep.subr.bf16.mxu1 %v7498_v14  ;;  %v7553_v14 = vld [vmem:[%s10749_s5 + $0x1c8] ss:$16 sps:$4 sm:$0xff]  }
  0xf0   :  { %792 = vmatpush1.bf16.msra.mxu0 %v7481_v6  ;;  %v7552_v6 = vld [vmem:[%s10749_s5 + $0x1ac] ss:$16 sps:$4 sm:$0xff]  }
  0xf1   :  { %793 = vmatprep.subr.bf16.mxu0 %v7489_v8  ;;  %v7666_v8 = vld [vmem:[%s10751_s7 + $0xc4] ss:$16 sps:$4 sm:$0xff]  }
  0xf2   :  { %2083 = vmatpush1.bf16.msra.mxu1 %v7496_v16  ;;  %v7676_v16 = vld [vmem:[%s10751_s7 + $0x100] ss:$16 sps:$4 sm:$0xff]  }
  0xf3   :  { %2084 = vmatprep.subr.bf16.mxu1 %v7504_v18  ;;  %v7556_v18 = vld [vmem:[%s10749_s5 + $0x1e8] ss:$16 sps:$4 sm:$0xff]  }
  0xf4   :  { %794 = vmatpush1.bf16.msra.mxu0 %v7487_v10  ;;  %v7555_v10 = vld [vmem:[%s10749_s5 + $0x1cc] ss:$16 sps:$4 sm:$0xff]  }
  0xf5   :  { %795 = vmatprep.subr.bf16.mxu0 %v7495_v13  ;;  %v7672_v13 = vld [vmem:[%s10751_s7 + $0xe4] ss:$16 sps:$4 sm:$0xff]  }
  0xf6   :  { %2085 = vmatpush1.bf16.msra.mxu1 %v7502_v20  ;;  %v7682_v20 = vld [vmem:[%s10751_s7 + $0x120] ss:$16 sps:$4 sm:$0xff]  }
  0xf7   :  { %2086 = vmatprep.subr.bf16.mxu1 %v7510_v23  ;;  %v7559_v23 = vld [vmem:[%s10749_s5 + $0x208] ss:$16 sps:$4 sm:$0xff]  }
  0xf8   :  { %796 = vmatpush1.bf16.msra.mxu0 %v7493_v15  ;;  %v7558_v15 = vld [vmem:[%s10749_s5 + $0x1ec] ss:$16 sps:$4 sm:$0xff]  }
  0xf9   :  { %797 = vmatprep.subr.bf16.mxu0 %v7501_v17  ;;  %v7678_v17 = vld [vmem:[%s10751_s7 + $0x104] ss:$16 sps:$4 sm:$0xff]  }
  0xfa   :  { %2087 = vmatpush1.bf16.msra.mxu1 %v7508_v25  ;;  %v7687_v25 = vld [vmem:[%s10751_s7 + $0x144] ss:$16 sps:$4 sm:$0xff]  }
  0xfb   :  { %3058 = vmatprep.subr.bf16.mxu1 %v7630_v47  ;;  %v7700_v47 = vld [vmem:[%s10751_s7 + $0x1e0] ss:$16 sps:$4 sm:$0xff]  }
  0xfc   :  { %798 = vmatpush1.bf16.msra.mxu0 %v7499_v19  ;;  %v7561_v19 = vld [vmem:[%s10749_s5 + $0x20c] ss:$16 sps:$4 sm:$0xff]  }
  0xfd   :  { %799 = vmatprep.subr.bf16.mxu0 %v7507_v22  ;;  %2089 = vmatmul.mubr.bf16.vlgmr.msra.gmra.mrb[0].mxu1 %v9291_v31  ;;  %v7684_v22 = vld [vmem:[%s10751_s7 + $0x124] ss:$16 sps:$4 sm:$0xff]  }
  0xfe   :  { %3059 = vmatpush1.bf16.msra.mxu1 %v7628_v46  ;;  %v7577_v46 = vld [vmem:[%s10749_s5 + $0x2c8] ss:$16 sps:$4 sm:$0xff]  }
  0xff   :  { %3060 = vmatprep.subr.bf16.mxu1 %v7636_v51  ;;  %v7585_v51 = vld [vmem:[%s10749_s5 + $0x30c] ss:$16 sps:$4 sm:$0xff]  }
 0x100   :  { %800 = vmatpush1.bf16.msra.mxu0 %v7505_v24  ;;  %v7564_v24 = vld [vmem:[%s10749_s5 + $0x22c] ss:$16 sps:$4 sm:$0xff]  }
 0x101   :  { %2097 = vmatprep.subr.bf16.mxu0 %v7513_v28  ;;  %v7562_v28 = vld [vmem:[%s10749_s5 + $0x228] ss:$16 sps:$4 sm:$0xff]  }
 0x102   :  { %3061 = vmatpush1.bf16.msra.mxu1 %v7634_v50  ;;  %v7580_v50 = vld [vmem:[%s10749_s5 + $0x2e8] ss:$16 sps:$4 sm:$0xff]  }
 0x103   :  { %802 = vmatmul.mubr.bf16.vlgmr.msra.gmra.mrb[0].mxu0 %v109_v29  ;;  %3062 = vmatprep.subr.bf16.mxu1 %v7642_v56  ;;  %v7567_v29 = vld [vmem:[%s10749_s5 + $0x24c] ss:$16 sps:$4 sm:$0xff]  }
 0x104   :  { %2098 = vmatpush1.bf16.msra.mxu0 %v7511_v32  ;;  %2129 = vmatprep.mubr.bf16.mxu0 %v8817_v53  ;;  %v7525_v53 = vld [vmem:[%s10749_s5 + $0x8c] ss:$16 sps:$4 sm:$0xff]   ;;  %v7693_v32 = vld [vmem:[%s10751_s7 + $0x184] ss:$16 sps:$4 sm:$0xff]  }
 0x105   :  { %2099 = vmatprep.subr.bf16.mxu0 %v7516_v33  ;;  %v7565_v33 = vld [vmem:[%s10749_s5 + $0x248] ss:$16 sps:$4 sm:$0xff]   ;;  %v7591_v56 = vld [vmem:[%s10749_s5 + $0x34c] ss:$16 sps:$4 sm:$0xff]  }
 0x106   :  { %3063 = vmatpush1.bf16.msra.mxu1 %v7640_v55  ;;  %v7586_v55 = vld [vmem:[%s10749_s5 + $0x328] ss:$16 sps:$4 sm:$0xff]  }
 0x107   :  { %3064 = vmatprep.subr.bf16.mxu1 %v7648_v60  ;;  %v7597_v60 = vld [vmem:[%s10749_s5 + $0x38c] ss:$16 sps:$4 sm:$0xff]  }
 0x108   :  { %2100 = vmatpush1.bf16.msra.mxu0 %v7514_v34  ;;  %v7570_v34 = vld [vmem:[%s10749_s5 + $0x26c] ss:$16 sps:$4 sm:$0xff]  }
 0x109   :  { %2101 = vmatprep.subr.bf16.mxu0 %v7519_v35  ;;  %v7696_v35 = vld [vmem:[%s10751_s7 + $0x1a4] ss:$16 sps:$4 sm:$0xff]  }
 0x10a   :  { %3065 = vmatpush1.bf16.msra.mxu1 %v7646_v59  ;;  %v7592_v59 = vld [vmem:[%s10749_s5 + $0x368] ss:$16 sps:$4 sm:$0xff]  }
 0x10b   :  { %3066 = vmatprep.subr.bf16.mxu1 %v7654_v0  ;;  %v7603_v0 = vld [vmem:[%s10749_s5 + $0x3cc] ss:$16 sps:$4 sm:$0xff]  }
 0x10c   :  { %2102 = vmatpush1.bf16.msra.mxu0 %v7517_v36  ;;  %v7568_v36 = vld [vmem:[%s10749_s5 + $0x268] ss:$16 sps:$4 sm:$0xff]  }
 0x10d   :  { %2103 = vmatprep.subr.bf16.mxu0 %v7522_v37  ;;  %v7573_v37 = vld [vmem:[%s10749_s5 + $0x28c] ss:$16 sps:$4 sm:$0xff]  }
 0x10e   :  { %3067 = vmatpush1.bf16.msra.mxu1 %v7652_v63  ;;  %v7598_v63 = vld [vmem:[%s10749_s5 + $0x3a8] ss:$16 sps:$4 sm:$0xff]  }
 0x10f   :  { %3068 = vmatprep.subr.bf16.mxu1 %v7660_v4  ;;  %v7609_v4 = vld [vmem:[%s10749_s5 + $0x40c] ss:$16 sps:$4 sm:$0xff]  }
 0x110   :  { %2104 = vmatpush1.bf16.msra.mxu0 %v7520_v38  ;;  %v7694_v38 = vld [vmem:[%s10751_s7 + $0x1a0] ss:$16 sps:$4 sm:$0xff]  }
 0x111   :  { %2105 = vmatprep.subr.bf16.mxu0 %v7525_v53  ;;  %v7699_v53 = vld [vmem:[%s10751_s7 + $0x1c4] ss:$16 sps:$4 sm:$0xff]  }
 0x112   :  { %3069 = vmatpush1.bf16.msra.mxu1 %v7658_v3  ;;  %v7604_v3 = vld [vmem:[%s10749_s5 + $0x3e8] ss:$16 sps:$4 sm:$0xff]  }
 0x113   :  { %3070 = vmatprep.subr.bf16.mxu1 %v7666_v8  ;;  %v7615_v8 = vld [vmem:[%s10749_s5 + $0x44c] ss:$16 sps:$4 sm:$0xff]  }
 0x114   :  { %2106 = vmatpush1.bf16.msra.mxu0 %v7523_v39  ;;  %v7571_v39 = vld [vmem:[%s10749_s5 + $0x288] ss:$16 sps:$4 sm:$0xff]  }
 0x115   :  { %2107 = vmatprep.subr.bf16.mxu0 %v7528_v40  ;;  %v7576_v40 = vld [vmem:[%s10749_s5 + $0x2ac] ss:$16 sps:$4 sm:$0xff]  }
 0x116   :  { %3071 = vmatpush1.bf16.msra.mxu1 %v7664_v7  ;;  %v7610_v7 = vld [vmem:[%s10749_s5 + $0x428] ss:$16 sps:$4 sm:$0xff]  }
 0x117   :  { %3072 = vmatprep.subr.bf16.mxu1 %v7672_v13  ;;  %v7624_v13 = vld [vmem:[%s10749_s5 + $0x4ac] ss:$16 sps:$4 sm:$0xff]  }
 0x118   :  { %2108 = vmatpush1.bf16.msra.mxu0 %v7526_v42  ;;  %v7697_v42 = vld [vmem:[%s10751_s7 + $0x1c0] ss:$16 sps:$4 sm:$0xff]  }
 0x119   :  { %2109 = vmatprep.subr.bf16.mxu0 %v7531_v43  ;;  %v7574_v43 = vld [vmem:[%s10749_s5 + $0x2a8] ss:$16 sps:$4 sm:$0xff]  }
 0x11a   :  { %3073 = vmatpush1.bf16.msra.mxu1 %v7670_v12  ;;  %v7619_v12 = vld [vmem:[%s10749_s5 + $0x488] ss:$16 sps:$4 sm:$0xff]  }
 0x11b   :  { %3074 = vmatprep.subr.bf16.mxu1 %v7678_v17  ;;  %v7633_v17 = vld [vmem:[%s10749_s5 + $0x4ec] ss:$16 sps:$4 sm:$0xff]  }
 0x11c   :  { %2110 = vmatpush1.bf16.msra.mxu0 %v7529_v44  ;;  %v7579_v44 = vld [vmem:[%s10749_s5 + $0x2cc] ss:$16 sps:$4 sm:$0xff]  }
 0x11d   :  { %2111 = vmatprep.subr.bf16.mxu0 %v7534_v45  ;;  %v7702_v45 = vld [vmem:[%s10751_s7 + $0x1e4] ss:$16 sps:$4 sm:$0xff]  }
 0x11e   :  { %3075 = vmatpush1.bf16.msra.mxu1 %v7676_v16  ;;  %v7625_v16 = vld [vmem:[%s10749_s5 + $0x4c8] ss:$16 sps:$4 sm:$0xff]  }
 0x11f   :  { %3076 = vmatprep.subr.bf16.mxu1 %v7684_v22  ;;  %v7645_v22 = vld [vmem:[%s10749_s5 + $0x52c] ss:$16 sps:$4 sm:$0xff]  }
 0x120   :  { %2112 = vmatpush1.bf16.msra.mxu0 %v7532_v48  ;;  %v7582_v48 = vld [vmem:[%s10749_s5 + $0x2ec] ss:$16 sps:$4 sm:$0xff]  }
 0x121   :  { %2113 = vmatprep.subr.bf16.mxu0 %v7537_v49  ;;  %v7705_v49 = vld [vmem:[%s10751_s7 + $0x204] ss:$16 sps:$4 sm:$0xff]  }
 0x122   :  { %3077 = vmatpush1.bf16.msra.mxu1 %v7682_v20  ;;  %v7637_v20 = vld [vmem:[%s10749_s5 + $0x508] ss:$16 sps:$4 sm:$0xff]  }
 0x123   :  { %3078 = vmatprep.subr.bf16.mxu1 %v7687_v25  ;;  %v7649_v25 = vld [vmem:[%s10749_s5 + $0x548] ss:$16 sps:$4 sm:$0xff]  }
 0x124   :  { %2114 = vmatpush1.bf16.msra.mxu0 %v7535_v52  ;;  %v7583_v52 = vld [vmem:[%s10749_s5 + $0x308] ss:$16 sps:$4 sm:$0xff]  }
 0x125   :  { %2115 = vmatprep.subr.bf16.mxu0 %v7540_v54  ;;  %v7588_v54 = vld [vmem:[%s10749_s5 + $0x32c] ss:$16 sps:$4 sm:$0xff]  }
 0x126   :  { %3079 = vmatpush1.bf16.msra.mxu1 %v7685_v26  ;;  %v7657_v26 = vld [vmem:[%s10749_s5 + $0x56c] ss:$16 sps:$4 sm:$0xff]  }
 0x127   :  { %3080 = vmatprep.subr.bf16.mxu1 %v7690_v27  ;;  %v7655_v27 = vld [vmem:[%s10749_s5 + $0x568] ss:$16 sps:$4 sm:$0xff]  }
 0x128   :  { %2116 = vmatpush1.bf16.msra.mxu0 %v7538_v57  ;;  %v7589_v57 = vld [vmem:[%s10749_s5 + $0x348] ss:$16 sps:$4 sm:$0xff]  }
 0x129   :  { %2117 = vmatprep.subr.bf16.mxu0 %v7543_v58  ;;  %v7594_v58 = vld [vmem:[%s10749_s5 + $0x36c] ss:$16 sps:$4 sm:$0xff]  }
 0x12c   :  { %2118 = vmatpush1.bf16.msra.mxu0 %v7541_v61  ;;  %v7595_v61 = vld [vmem:[%s10749_s5 + $0x388] ss:$16 sps:$4 sm:$0xff]  }
 0x12d   :  { %2119 = vmatprep.subr.bf16.mxu0 %v7546_v62  ;;  %v7600_v62 = vld [vmem:[%s10749_s5 + $0x3ac] ss:$16 sps:$4 sm:$0xff]  }
 0x130   :  { %2120 = vmatpush1.bf16.msra.mxu0 %v7544_v1  ;;  %v7601_v1 = vld [vmem:[%s10749_s5 + $0x3c8] ss:$16 sps:$4 sm:$0xff]  }
 0x131   :  { %2121 = vmatprep.subr.bf16.mxu0 %v7549_v2  ;;  %v7606_v2 = vld [vmem:[%s10749_s5 + $0x3ec] ss:$16 sps:$4 sm:$0xff]  }
 0x134   :  { %2122 = vmatpush1.bf16.msra.mxu0 %v7547_v5  ;;  %v7607_v5 = vld [vmem:[%s10749_s5 + $0x408] ss:$16 sps:$4 sm:$0xff]  }
 0x135   :  { %2123 = vmatprep.subr.bf16.mxu0 %v7552_v6  ;;  %v7612_v6 = vld [vmem:[%s10749_s5 + $0x42c] ss:$16 sps:$4 sm:$0xff]  }
 0x138   :  { %2124 = vmatpush1.bf16.msra.mxu0 %v7550_v9  ;;  %v7613_v9 = vld [vmem:[%s10749_s5 + $0x448] ss:$16 sps:$4 sm:$0xff]  }
 0x139   :  { %2125 = vmatprep.subr.bf16.mxu0 %v7555_v10  ;;  %v7621_v10 = vld [vmem:[%s10749_s5 + $0x48c] ss:$16 sps:$4 sm:$0xff]  }
 0x13c   :  { %2126 = vmatpush1.bf16.msra.mxu0 %v7553_v14  ;;  %v7622_v14 = vld [vmem:[%s10749_s5 + $0x4a8] ss:$16 sps:$4 sm:$0xff]  }
 0x13d   :  { %2127 = vmatprep.subr.bf16.mxu0 %v7558_v15  ;;  %v7627_v15 = vld [vmem:[%s10749_s5 + $0x4cc] ss:$16 sps:$4 sm:$0xff]  }
 0x140   :  { %2128 = vmatpush1.bf16.msra.mxu0 %v7556_v18  ;;  %v7631_v18 = vld [vmem:[%s10749_s5 + $0x4e8] ss:$16 sps:$4 sm:$0xff]  }
 0x141   :  { %2138 = vmatprep.subr.bf16.mxu0 %v7561_v19  ;;  %v7639_v19 = vld [vmem:[%s10749_s5 + $0x50c] ss:$16 sps:$4 sm:$0xff]  }
 0x143   :  { %2130 = vmatmul.mubr.bf16.vlgmr.msra.gmra.mrb[4].mxu0 %v8880_v11  ;;  %v7688_v11 = vld [vmem:[%s10751_s7 + $0x160] ss:$16 sps:$4 sm:$0xff]  }
 0x144   :  { %2139 = vmatpush1.bf16.msra.mxu0 %v7559_v23  ;;  %2170 = vmatprep.mubr.bf16.mxu0 %v8967_v41  ;;  %v7691_v41 = vld [vmem:[%s10751_s7 + $0x180] ss:$16 sps:$4 sm:$0xff]   ;;  %v7643_v23 = vld [vmem:[%s10749_s5 + $0x528] ss:$16 sps:$4 sm:$0xff]  }
 0x145   :  { %2140 = vmatprep.subr.bf16.mxu0 %v7564_v24  ;;  %3081 = vmatpush1.bf16.msra.mxu1 %v7688_v11  ;;  %v7651_v24 = vld [vmem:[%s10749_s5 + $0x54c] ss:$16 sps:$4 sm:$0xff]  }
 0x146   :  { %3082 = vmatprep.subr.bf16.mxu1 %v7693_v32  ;;  %v7669_v11 = vld [vmem:[%s10749_s5 + $0x5ac] ss:$16 sps:$4 sm:$0xff]   ;;  %v7667_v32 = vld [vmem:[%s10749_s5 + $0x5a8] ss:$16 sps:$4 sm:$0xff]  }
 0x148   :  { %2141 = vmatpush1.bf16.msra.mxu0 %v7562_v28  ;;  %v7663_v28 = vld [vmem:[%s10749_s5 + $0x58c] ss:$16 sps:$4 sm:$0xff]  }
 0x149   :  { %2142 = vmatprep.subr.bf16.mxu0 %v7567_v29  ;;  %3083 = vmatpush1.bf16.msra.mxu1 %v7691_v41  ;;  %v7661_v29 = vld [vmem:[%s10749_s5 + $0x588] ss:$16 sps:$4 sm:$0xff]   ;;  %v7681_v41 = vld [vmem:[%s10749_s5 + $0x5ec] ss:$16 sps:$4 sm:$0xff]  }
 0x14a   :  { %3084 = vmatprep.subr.bf16.mxu1 %v7696_v35  ;;  %v7679_v35 = vld [vmem:[%s10749_s5 + $0x5e8] ss:$16 sps:$4 sm:$0xff]  }
 0x14c   :  { %2143 = vmatpush1.bf16.msra.mxu0 %v7565_v33  ;;  %v7675_v33 = vld [vmem:[%s10749_s5 + $0x5cc] ss:$16 sps:$4 sm:$0xff]  }
 0x14d   :  { %2144 = vmatprep.subr.bf16.mxu0 %v7570_v34  ;;  %3085 = vmatpush1.bf16.msra.mxu1 %v7694_v38  ;;  %v7673_v34 = vld [vmem:[%s10749_s5 + $0x5c8] ss:$16 sps:$4 sm:$0xff]   ;;  %v7714_v38 = vld [vmem:[%s10751_s7 + $0x22c] ss:$16 sps:$4 sm:$0xff]  }
 0x14e   :  { %3086 = vmatprep.subr.bf16.mxu1 %v7699_v53  ;;  %v7712_v53 = vld [vmem:[%s10751_s7 + $0x228] ss:$16 sps:$4 sm:$0xff]  }
 0x150   :  { %2145 = vmatpush1.bf16.msra.mxu0 %v7568_v36  ;;  %v7708_v36 = vld [vmem:[%s10751_s7 + $0x20c] ss:$16 sps:$4 sm:$0xff]  }
 0x151   :  { %2146 = vmatprep.subr.bf16.mxu0 %v7573_v37  ;;  %3087 = vmatpush1.bf16.msra.mxu1 %v7697_v42  ;;  %v7706_v37 = vld [vmem:[%s10751_s7 + $0x208] ss:$16 sps:$4 sm:$0xff]   ;;  %v7726_v42 = vld [vmem:[%s10751_s7 + $0x26c] ss:$16 sps:$4 sm:$0xff]  }
 0x152   :  { %3088 = vmatprep.subr.bf16.mxu1 %v7702_v45  ;;  %v7738_v45 = vld [vmem:[%s10751_s7 + $0x2ac] ss:$16 sps:$4 sm:$0xff]  }
 0x154   :  { %2147 = vmatpush1.bf16.msra.mxu0 %v7571_v39  ;;  %v7720_v39 = vld [vmem:[%s10751_s7 + $0x24c] ss:$16 sps:$4 sm:$0xff]  }
 0x155   :  { %2148 = vmatprep.subr.bf16.mxu0 %v7576_v40  ;;  %3089 = vmatpush1.bf16.msra.mxu1 %v7700_v47  ;;  %v7718_v40 = vld [vmem:[%s10751_s7 + $0x248] ss:$16 sps:$4 sm:$0xff]   ;;  %v7744_v47 = vld [vmem:[%s10751_s7 + $0x2cc] ss:$16 sps:$4 sm:$0xff]  }
 0x156   :  { %3099 = vmatprep.subr.bf16.mxu1 %v7705_v49 }
 0x158   :  { %2149 = vmatpush1.bf16.msra.mxu0 %v7574_v43  ;;  %v7732_v43 = vld [vmem:[%s10751_s7 + $0x28c] ss:$16 sps:$4 sm:$0xff]  }
 0x159   :  { %2150 = vmatprep.subr.bf16.mxu0 %v7579_v44  ;;  %v7730_v44 = vld [vmem:[%s10751_s7 + $0x288] ss:$16 sps:$4 sm:$0xff]  }
 0x15c   :  { %2151 = vmatpush1.bf16.msra.mxu0 %v7577_v46  ;;  %v7736_v46 = vld [vmem:[%s10751_s7 + $0x2a8] ss:$16 sps:$4 sm:$0xff]  }
 0x15d   :  { %2152 = vmatprep.subr.bf16.mxu0 %v7582_v48 }
 0x160   :  { %2153 = vmatpush1.bf16.msra.mxu0 %v7580_v50 }
 0x161   :  { %2154 = vmatprep.subr.bf16.mxu0 %v7585_v51 }
 0x164   :  { %2155 = vmatpush1.bf16.msra.mxu0 %v7583_v52 }
 0x165   :  { %2156 = vmatprep.subr.bf16.mxu0 %v7588_v54 }
 0x168   :  { %2157 = vmatpush1.bf16.msra.mxu0 %v7586_v55 }
 0x169   :  { %2158 = vmatprep.subr.bf16.mxu0 %v7591_v56 }
 0x16c   :  { %2159 = vmatpush1.bf16.msra.mxu0 %v7589_v57  ;;  %v7703_v57 = vld [vmem:[%s10751_s7 + $0x200] ss:$16 sps:$4 sm:$0xff]  }
 0x16d   :  { %2160 = vmatprep.subr.bf16.mxu0 %v7594_v58  ;;  %v7742_v58 = vld [vmem:[%s10751_s7 + $0x2c8] ss:$16 sps:$4 sm:$0xff]  }
 0x170   :  { %2161 = vmatpush1.bf16.msra.mxu0 %v7592_v59 }
 0x171   :  { %2162 = vmatprep.subr.bf16.mxu0 %v7597_v60 }
 0x174   :  { %2163 = vmatpush1.bf16.msra.mxu0 %v7595_v61  ;;  %v7711_v61 = vld [vmem:[%s10751_s7 + $0x224] ss:$16 sps:$4 sm:$0xff]  }
 0x175   :  { %2164 = vmatprep.subr.bf16.mxu0 %v7600_v62  ;;  %v7750_v62 = vld [vmem:[%s10751_s7 + $0x2ec] ss:$16 sps:$4 sm:$0xff]  }
 0x178   :  { %2165 = vmatpush1.bf16.msra.mxu0 %v7598_v63  ;;  %v7709_v63 = vld [vmem:[%s10751_s7 + $0x220] ss:$16 sps:$4 sm:$0xff]  }
 0x179   :  { %2166 = vmatprep.subr.bf16.mxu0 %v7603_v0  ;;  %v7748_v0 = vld [vmem:[%s10751_s7 + $0x2e8] ss:$16 sps:$4 sm:$0xff]  }
 0x17c   :  { %2167 = vmatpush1.bf16.msra.mxu0 %v7601_v1  ;;  %v7717_v1 = vld [vmem:[%s10751_s7 + $0x244] ss:$16 sps:$4 sm:$0xff]  }
 0x17d   :  { %2168 = vmatprep.subr.bf16.mxu0 %v7606_v2  ;;  %v7756_v2 = vld [vmem:[%s10751_s7 + $0x30c] ss:$16 sps:$4 sm:$0xff]  }
 0x180   :  { %2169 = vmatpush1.bf16.msra.mxu0 %v7604_v3  ;;  %v7715_v3 = vld [vmem:[%s10751_s7 + $0x240] ss:$16 sps:$4 sm:$0xff]  }
 0x181   :  { %2179 = vmatprep.subr.bf16.mxu0 %v7609_v4  ;;  %v7754_v4 = vld [vmem:[%s10751_s7 + $0x308] ss:$16 sps:$4 sm:$0xff]  }
 0x183   :  { %2171 = vmatmul.mubr.bf16.vlgmr.msra.gmra.mrb[4].mxu0 %v9090_v21  ;;  %v7618_v21 = vld [vmem:[%s10749_s5 + $0x46c] ss:$16 sps:$4 sm:$0xff]  }
 0x184   :  { %2180 = vmatpush1.bf16.msra.mxu0 %v7607_v5  ;;  %2211 = vmatprep.mubr.bf16.mxu0 %v9114_v30  ;;  %v7616_v30 = vld [vmem:[%s10749_s5 + $0x468] ss:$16 sps:$4 sm:$0xff]   ;;  %v7723_v5 = vld [vmem:[%s10751_s7 + $0x264] ss:$16 sps:$4 sm:$0xff]  }
 0x185   :  { %2181 = vmatprep.subr.bf16.mxu0 %v7612_v6  ;;  %v7762_v6 = vld [vmem:[%s10751_s7 + $0x32c] ss:$16 sps:$4 sm:$0xff]  }
 0x188   :  { %2182 = vmatpush1.bf16.msra.mxu0 %v7610_v7  ;;  %v7721_v7 = vld [vmem:[%s10751_s7 + $0x260] ss:$16 sps:$4 sm:$0xff]  }
 0x189   :  { %2183 = vmatprep.subr.bf16.mxu0 %v7615_v8  ;;  %v7760_v8 = vld [vmem:[%s10751_s7 + $0x328] ss:$16 sps:$4 sm:$0xff]  }
 0x18c   :  { %2184 = vmatpush1.bf16.msra.mxu0 %v7613_v9  ;;  %v7729_v9 = vld [vmem:[%s10751_s7 + $0x284] ss:$16 sps:$4 sm:$0xff]  }
 0x18d   :  { %2185 = vmatprep.subr.bf16.mxu0 %v7618_v21  ;;  %v7768_v21 = vld [vmem:[%s10751_s7 + $0x34c] ss:$16 sps:$4 sm:$0xff]  }
 0x190   :  { %2186 = vmatpush1.bf16.msra.mxu0 %v7616_v30  ;;  %v7727_v30 = vld [vmem:[%s10751_s7 + $0x280] ss:$16 sps:$4 sm:$0xff]  }
 0x191   :  { %2187 = vmatprep.subr.bf16.mxu0 %v7621_v10  ;;  %v7766_v10 = vld [vmem:[%s10751_s7 + $0x348] ss:$16 sps:$4 sm:$0xff]  }
 0x194   :  { %2188 = vmatpush1.bf16.msra.mxu0 %v7619_v12  ;;  %v7735_v12 = vld [vmem:[%s10751_s7 + $0x2a4] ss:$16 sps:$4 sm:$0xff]  }
 0x195   :  { %2189 = vmatprep.subr.bf16.mxu0 %v7624_v13  ;;  %v7774_v13 = vld [vmem:[%s10751_s7 + $0x36c] ss:$16 sps:$4 sm:$0xff]  }
 0x198   :  { %2190 = vmatpush1.bf16.msra.mxu0 %v7622_v14  ;;  %v7733_v14 = vld [vmem:[%s10751_s7 + $0x2a0] ss:$16 sps:$4 sm:$0xff]  }
 0x199   :  { %2191 = vmatprep.subr.bf16.mxu0 %v7627_v15  ;;  %v7772_v15 = vld [vmem:[%s10751_s7 + $0x368] ss:$16 sps:$4 sm:$0xff]  }
 0x19c   :  { %2192 = vmatpush1.bf16.msra.mxu0 %v7625_v16  ;;  %v7741_v16 = vld [vmem:[%s10751_s7 + $0x2c4] ss:$16 sps:$4 sm:$0xff]  }
 0x19d   :  { %2193 = vmatprep.subr.bf16.mxu0 %v7633_v17  ;;  %v7780_v17 = vld [vmem:[%s10751_s7 + $0x38c] ss:$16 sps:$4 sm:$0xff]  }
 0x1a0   :  { %2194 = vmatpush1.bf16.msra.mxu0 %v7631_v18  ;;  %v7739_v18 = vld [vmem:[%s10751_s7 + $0x2c0] ss:$16 sps:$4 sm:$0xff]  }
 0x1a1   :  { %2195 = vmatprep.subr.bf16.mxu0 %v7639_v19  ;;  %v7778_v19 = vld [vmem:[%s10751_s7 + $0x388] ss:$16 sps:$4 sm:$0xff]  }
 0x1a4   :  { %2196 = vmatpush1.bf16.msra.mxu0 %v7637_v20  ;;  %v7747_v20 = vld [vmem:[%s10751_s7 + $0x2e4] ss:$16 sps:$4 sm:$0xff]  }
 0x1a5   :  { %2197 = vmatprep.subr.bf16.mxu0 %v7645_v22  ;;  %v7786_v22 = vld [vmem:[%s10751_s7 + $0x3ac] ss:$16 sps:$4 sm:$0xff]  }
 0x1a8   :  { %2198 = vmatpush1.bf16.msra.mxu0 %v7643_v23  ;;  %v7745_v23 = vld [vmem:[%s10751_s7 + $0x2e0] ss:$16 sps:$4 sm:$0xff]  }
 0x1a9   :  { %2199 = vmatprep.subr.bf16.mxu0 %v7651_v24  ;;  %v7784_v24 = vld [vmem:[%s10751_s7 + $0x3a8] ss:$16 sps:$4 sm:$0xff]  }
 0x1ac   :  { %2200 = vmatpush1.bf16.msra.mxu0 %v7649_v25  ;;  %v7753_v25 = vld [vmem:[%s10751_s7 + $0x304] ss:$16 sps:$4 sm:$0xff]  }
 0x1ad   :  { %2201 = vmatprep.subr.bf16.mxu0 %v7657_v26  ;;  %v7792_v26 = vld [vmem:[%s10751_s7 + $0x3cc] ss:$16 sps:$4 sm:$0xff]  }
 0x1b0   :  { %2202 = vmatpush1.bf16.msra.mxu0 %v7655_v27  ;;  %v7751_v27 = vld [vmem:[%s10751_s7 + $0x300] ss:$16 sps:$4 sm:$0xff]  }
 0x1b1   :  { %2203 = vmatprep.subr.bf16.mxu0 %v7663_v28  ;;  %v7790_v28 = vld [vmem:[%s10751_s7 + $0x3c8] ss:$16 sps:$4 sm:$0xff]  }
 0x1b4   :  { %2204 = vmatpush1.bf16.msra.mxu0 %v7661_v29  ;;  %v7759_v29 = vld [vmem:[%s10751_s7 + $0x324] ss:$16 sps:$4 sm:$0xff]  }
 0x1b5   :  { %2205 = vmatprep.subr.bf16.mxu0 %v7669_v11  ;;  %v7757_v11 = vld [vmem:[%s10751_s7 + $0x320] ss:$16 sps:$4 sm:$0xff]  }
 0x1b8   :  { %2206 = vmatpush1.bf16.msra.mxu0 %v7667_v32  ;;  %v7765_v32 = vld [vmem:[%s10751_s7 + $0x344] ss:$16 sps:$4 sm:$0xff]  }
 0x1b9   :  { %2207 = vmatprep.subr.bf16.mxu0 %v7675_v33  ;;  %v7763_v33 = vld [vmem:[%s10751_s7 + $0x340] ss:$16 sps:$4 sm:$0xff]  }
 0x1bc   :  { %2208 = vmatpush1.bf16.msra.mxu0 %v7673_v34  ;;  %v7771_v34 = vld [vmem:[%s10751_s7 + $0x364] ss:$16 sps:$4 sm:$0xff]  }
 0x1bd   :  { %2209 = vmatprep.subr.bf16.mxu0 %v7681_v41  ;;  %v7769_v41 = vld [vmem:[%s10751_s7 + $0x360] ss:$16 sps:$4 sm:$0xff]  }
 0x1c0   :  { %2210 = vmatpush1.bf16.msra.mxu0 %v7679_v35  ;;  %v7777_v35 = vld [vmem:[%s10751_s7 + $0x384] ss:$16 sps:$4 sm:$0xff]  }
 0x1c1   :  { %3181 = vmatprep.subr.bf16.mxu0 %v7708_v36  ;;  %v7775_v36 = vld [vmem:[%s10751_s7 + $0x380] ss:$16 sps:$4 sm:$0xff]  }
 0x1c3   :  { %2212 = vmatmul.mubr.bf16.vlgmr.msra.gmra.mrb[4].mxu0 %v9291_v31  ;;  %v7724_v31 = vld [vmem:[%s10751_s7 + $0x268] ss:$16 sps:$4 sm:$0xff]  }
 0x1c4   :  { %3182 = vmatpush1.bf16.msra.mxu0 %v7706_v37  ;;  %v7783_v37 = vld [vmem:[%s10751_s7 + $0x3a4] ss:$16 sps:$4 sm:$0xff]  }
 0x1c5   :  { %3183 = vmatprep.subr.bf16.mxu0 %v7714_v38  ;;  %v7781_v38 = vld [vmem:[%s10751_s7 + $0x3a0] ss:$16 sps:$4 sm:$0xff]  }
 0x1c8   :  { %3184 = vmatpush1.bf16.msra.mxu0 %v7712_v53  ;;  %v7789_v53 = vld [vmem:[%s10751_s7 + $0x3c4] ss:$16 sps:$4 sm:$0xff]  }
 0x1c9   :  { %3185 = vmatprep.subr.bf16.mxu0 %v7720_v39  ;;  %v7787_v39 = vld [vmem:[%s10751_s7 + $0x3c0] ss:$16 sps:$4 sm:$0xff]  }
 0x1cc   :  { %3186 = vmatpush1.bf16.msra.mxu0 %v7718_v40  ;;  %v7795_v40 = vld [vmem:[%s10751_s7 + $0x3e4] ss:$16 sps:$4 sm:$0xff]  }
 0x1cd   :  { %3187 = vmatprep.subr.bf16.mxu0 %v7726_v42  ;;  %v7798_v42 = vld [vmem:[%s10751_s7 + $0x3ec] ss:$16 sps:$4 sm:$0xff]  }
 0x1d0   :  { %3188 = vmatpush1.bf16.msra.mxu0 %v7724_v31  ;;  %v2090_v49 = vpop.f32.mrb[0].mxu1  ;;  %v7793_v31 = vld [vmem:[%s10751_s7 + $0x3e0] ss:$16 sps:$4 sm:$0xff]  }
 0x1d1   :  { %3189 = vmatprep.subr.bf16.mxu0 %v7732_v43  ;;  %v9725_v50 = vpack.c.bf16 %v2090_v49, %v2090_v49  ;;  %v2092_v52 = vpop.f32.mrb[1].mxu1  ;;  %v7796_v43 = vld [vmem:[%s10751_s7 + $0x3e8] ss:$16 sps:$4 sm:$0xff]  }
 0x1d2   :  { %v9729_v54 = vpack.c.bf16 %v2092_v52, %v2092_v52  ;;  %v2094_v56 = vpop.f32.mrb[2].mxu1 }
 0x1d3   :  { %v2095_v60 = vpop.f32.mrb[3].mxu1  ;;  %v7802_v56 = vld [vmem:[%s10750_s6 + $0x8] ss:$16 sps:$4 sm:$0xff]  }
 0x1d4   :  { %3190 = vmatpush1.bf16.msra.mxu0 %v7730_v44  ;;  %3090 = vmatprep.mubr.bf16.mxu1 %v9729_v54  ;;  %v7801_v44 = vld [vmem:[%s10751_s7 + $0xc] ss:$16 sps:$4 sm:$0xff]  }
 0x1d5   :  { %3191 = vmatprep.subr.bf16.mxu0 %v7738_v45  ;;  %3091 = vmatmul.mubr.bf16.vlgmr.msra.gmra.mrb[4].mxu1 %v9725_v50  ;;  %v7804_v45 = vld [vmem:[%s10750_s6 + $0xc] ss:$16 sps:$4 sm:$0xff]  }
 0x1d6   :  { %v9723_v48 = vpop.f32.mrb[0].mxu0  ;;  %3100 = vmatpush1.bf16.msra.mxu1 %v7703_v57  ;;  %v7810_v60 = vld [vmem:[%s10750_s6 + $0x2c] ss:$16 sps:$4 sm:$0xff]  }
 0x1d7   :  { %v9727_v51 = vpop.f32.mrb[1].mxu0  ;;  %3101 = vmatprep.subr.bf16.mxu1 %v7711_v61 }
 0x1d8   :  { %v807_v55 = vpop.f32.mrb[2].mxu0  ;;  %3192 = vmatpush1.bf16.msra.mxu0 %v7736_v46  ;;  %v9903_v61 = vpack.c.bf16 %v9727_v51, %v9727_v51  ;;  %v7813_v51 = vld [vmem:[%s10751_s7 + $0x4c] ss:$16 sps:$4 sm:$0xff]  }
 0x1d9   :  { %v808_v59 = vpop.f32.mrb[3].mxu0  ;;  %3193 = vmatprep.subr.bf16.mxu0 %v7744_v47  ;;  %v7799_v55 = vld [vmem:[%s10751_s7 + $0x8] ss:$16 sps:$4 sm:$0xff]  }
 0x1da   :  { %3102 = vmatpush1.bf16.msra.mxu1 %v7709_v63  ;;  %v7807_v59 = vld [vmem:[%s10751_s7 + $0x2c] ss:$16 sps:$4 sm:$0xff]   ;;  %v7808_v63 = vld [vmem:[%s10750_s6 + $0x28] ss:$16 sps:$4 sm:$0xff]  }
 0x1db   :  { %3103 = vmatprep.subr.bf16.mxu1 %v7717_v1  ;;  %v7811_v1 = vld [vmem:[%s10751_s7 + $0x48] ss:$16 sps:$4 sm:$0xff]  }
 0x1dc   :  { %3194 = vmatpush1.bf16.msra.mxu0 %v7742_v58 }
 0x1dd   :  { %3195 = vmatprep.subr.bf16.mxu0 %v7750_v62  ;;  %v7805_v62 = vld [vmem:[%s10751_s7 + $0x28] ss:$16 sps:$4 sm:$0xff]  }
 0x1de   :  { %3104 = vmatpush1.bf16.msra.mxu1 %v7715_v3  ;;  %v7822_v3 = vld [vmem:[%s10750_s6 + $0x6c] ss:$16 sps:$4 sm:$0xff]  }
 0x1df   :  { %3105 = vmatprep.subr.bf16.mxu1 %v7723_v5  ;;  %v7820_v5 = vld [vmem:[%s10750_s6 + $0x68] ss:$16 sps:$4 sm:$0xff]  }
 0x1e0   :  { %3196 = vmatpush1.bf16.msra.mxu0 %v7748_v0  ;;  %v7816_v0 = vld [vmem:[%s10750_s6 + $0x4c] ss:$16 sps:$4 sm:$0xff]  }
 0x1e1   :  { %3197 = vmatprep.subr.bf16.mxu0 %v7756_v2  ;;  %v7819_v2 = vld [vmem:[%s10751_s7 + $0x6c] ss:$16 sps:$4 sm:$0xff]  }
 0x1e2   :  { %3106 = vmatpush1.bf16.msra.mxu1 %v7721_v7  ;;  %v7828_v7 = vld [vmem:[%s10750_s6 + $0x8c] ss:$16 sps:$4 sm:$0xff]  }
 0x1e3   :  { %3107 = vmatprep.subr.bf16.mxu1 %v7729_v9  ;;  %v7826_v9 = vld [vmem:[%s10750_s6 + $0x88] ss:$16 sps:$4 sm:$0xff]  }
 0x1e4   :  { %3198 = vmatpush1.bf16.msra.mxu0 %v7754_v4  ;;  %v7817_v4 = vld [vmem:[%s10751_s7 + $0x68] ss:$16 sps:$4 sm:$0xff]  }
 0x1e5   :  { %3199 = vmatprep.subr.bf16.mxu0 %v7762_v6  ;;  %v7825_v6 = vld [vmem:[%s10751_s7 + $0x8c] ss:$16 sps:$4 sm:$0xff]  }
 0x1e6   :  { %3108 = vmatpush1.bf16.msra.mxu1 %v7727_v30  ;;  %v7834_v30 = vld [vmem:[%s10750_s6 + $0xac] ss:$16 sps:$4 sm:$0xff]  }
 0x1e7   :  { %3109 = vmatprep.subr.bf16.mxu1 %v7735_v12  ;;  %v7832_v12 = vld [vmem:[%s10750_s6 + $0xa8] ss:$16 sps:$4 sm:$0xff]  }
 0x1e8   :  { %3200 = vmatpush1.bf16.msra.mxu0 %v7760_v8  ;;  %v7823_v8 = vld [vmem:[%s10751_s7 + $0x88] ss:$16 sps:$4 sm:$0xff]  }
 0x1e9   :  { %3201 = vmatprep.subr.bf16.mxu0 %v7768_v21  ;;  %v7831_v21 = vld [vmem:[%s10751_s7 + $0xac] ss:$16 sps:$4 sm:$0xff]  }
 0x1ea   :  { %3110 = vmatpush1.bf16.msra.mxu1 %v7733_v14  ;;  %v7840_v14 = vld [vmem:[%s10750_s6 + $0xcc] ss:$16 sps:$4 sm:$0xff]  }
 0x1eb   :  { %3111 = vmatprep.subr.bf16.mxu1 %v7741_v16 }
 0x1ec   :  { %3202 = vmatpush1.bf16.msra.mxu0 %v7766_v10  ;;  %v7829_v10 = vld [vmem:[%s10751_s7 + $0xa8] ss:$16 sps:$4 sm:$0xff]  }
 0x1ed   :  { %3203 = vmatprep.subr.bf16.mxu0 %v7774_v13  ;;  %v7837_v13 = vld [vmem:[%s10751_s7 + $0xcc] ss:$16 sps:$4 sm:$0xff]  }
 0x1ee   :  { %3112 = vmatpush1.bf16.msra.mxu1 %v7739_v18  ;;  %v7835_v18 = vld [vmem:[%s10751_s7 + $0xc8] ss:$16 sps:$4 sm:$0xff]  }
 0x1ef   :  { %3113 = vmatprep.subr.bf16.mxu1 %v7747_v20 }
 0x1f0   :  { %3204 = vmatpush1.bf16.msra.mxu0 %v7772_v15 }
 0x1f1   :  { %3205 = vmatprep.subr.bf16.mxu0 %v7780_v17 }
 0x1f2   :  { %3114 = vmatpush1.bf16.msra.mxu1 %v7745_v23  ;;  %v7846_v23 = vld [vmem:[%s10750_s6 + $0xec] ss:$16 sps:$4 sm:$0xff]  }
 0x1f3   :  { %3115 = vmatprep.subr.bf16.mxu1 %v7753_v25  ;;  %v7844_v25 = vld [vmem:[%s10750_s6 + $0xe8] ss:$16 sps:$4 sm:$0xff]  }
 0x1f4   :  { %3206 = vmatpush1.bf16.msra.mxu0 %v7778_v19  ;;  %v7838_v19 = vld [vmem:[%s10750_s6 + $0xc8] ss:$16 sps:$4 sm:$0xff]  }
 0x1f5   :  { %3207 = vmatprep.subr.bf16.mxu0 %v7786_v22  ;;  %v7843_v22 = vld [vmem:[%s10751_s7 + $0xec] ss:$16 sps:$4 sm:$0xff]  }
 0x1f6   :  { %3116 = vmatpush1.bf16.msra.mxu1 %v7751_v27  ;;  %v7852_v27 = vld [vmem:[%s10750_s6 + $0x10c] ss:$16 sps:$4 sm:$0xff]  }
 0x1f7   :  { %3117 = vmatprep.subr.bf16.mxu1 %v7759_v29  ;;  %v7850_v29 = vld [vmem:[%s10750_s6 + $0x108] ss:$16 sps:$4 sm:$0xff]  }
 0x1f8   :  { %3208 = vmatpush1.bf16.msra.mxu0 %v7784_v24  ;;  %v7841_v24 = vld [vmem:[%s10751_s7 + $0xe8] ss:$16 sps:$4 sm:$0xff]  }
 0x1f9   :  { %3209 = vmatprep.subr.bf16.mxu0 %v7792_v26  ;;  %v7849_v26 = vld [vmem:[%s10751_s7 + $0x10c] ss:$16 sps:$4 sm:$0xff]  }
 0x1fa   :  { %3118 = vmatpush1.bf16.msra.mxu1 %v7757_v11  ;;  %v7855_v11 = vld [vmem:[%s10751_s7 + $0x12c] ss:$16 sps:$4 sm:$0xff]  }
 0x1fb   :  { %3119 = vmatprep.subr.bf16.mxu1 %v7765_v32  ;;  %v7858_v32 = vld [vmem:[%s10750_s6 + $0x12c] ss:$16 sps:$4 sm:$0xff]  }
 0x1fc   :  { %3210 = vmatpush1.bf16.msra.mxu0 %v7790_v28  ;;  %v7847_v28 = vld [vmem:[%s10751_s7 + $0x108] ss:$16 sps:$4 sm:$0xff]  }
 0x1fd   :  { %3211 = vmatprep.subr.bf16.mxu0 %v7798_v42  ;;  %v7873_v42 = vld [vmem:[%s10751_s7 + $0x18c] ss:$16 sps:$4 sm:$0xff]  }
 0x1fe   :  { %3120 = vmatpush1.bf16.msra.mxu1 %v7763_v33  ;;  %v7853_v33 = vld [vmem:[%s10751_s7 + $0x128] ss:$16 sps:$4 sm:$0xff]  }
 0x1ff   :  { %3121 = vmatprep.subr.bf16.mxu1 %v7771_v34  ;;  %v7856_v34 = vld [vmem:[%s10750_s6 + $0x128] ss:$16 sps:$4 sm:$0xff]  }
 0x200   :  { %3212 = vmatpush1.bf16.msra.mxu0 %v7796_v43  ;;  %v7871_v43 = vld [vmem:[%s10751_s7 + $0x188] ss:$16 sps:$4 sm:$0xff]  }
 0x201   :  { %3583 = vmatprep.subr.bf16.mxu0 %v7804_v45  ;;  %v7879_v45 = vld [vmem:[%s10751_s7 + $0x1ac] ss:$16 sps:$4 sm:$0xff]  }
 0x202   :  { %3122 = vmatpush1.bf16.msra.mxu1 %v7769_v41  ;;  %v7861_v41 = vld [vmem:[%s10751_s7 + $0x14c] ss:$16 sps:$4 sm:$0xff]  }
 0x203   :  { %3123 = vmatprep.subr.bf16.mxu1 %v7777_v35  ;;  %v7864_v35 = vld [vmem:[%s10750_s6 + $0x14c] ss:$16 sps:$4 sm:$0xff]  }
 0x206   :  { %3124 = vmatpush1.bf16.msra.mxu1 %v7775_v36  ;;  %v7859_v36 = vld [vmem:[%s10751_s7 + $0x148] ss:$16 sps:$4 sm:$0xff]  }
 0x207   :  { %3125 = vmatprep.subr.bf16.mxu1 %v7783_v37  ;;  %v7862_v37 = vld [vmem:[%s10750_s6 + $0x148] ss:$16 sps:$4 sm:$0xff]  }
 0x20a   :  { %3126 = vmatpush1.bf16.msra.mxu1 %v7781_v38  ;;  %v7867_v38 = vld [vmem:[%s10751_s7 + $0x16c] ss:$16 sps:$4 sm:$0xff]  }
 0x20b   :  { %3127 = vmatprep.subr.bf16.mxu1 %v7789_v53  ;;  %v7870_v53 = vld [vmem:[%s10750_s6 + $0x16c] ss:$16 sps:$4 sm:$0xff]  }
 0x20e   :  { %3128 = vmatpush1.bf16.msra.mxu1 %v7787_v39  ;;  %v7865_v39 = vld [vmem:[%s10751_s7 + $0x168] ss:$16 sps:$4 sm:$0xff]  }
 0x20f   :  { %3129 = vmatprep.subr.bf16.mxu1 %v7795_v40  ;;  %v7868_v40 = vld [vmem:[%s10750_s6 + $0x168] ss:$16 sps:$4 sm:$0xff]  }
 0x212   :  { %3130 = vmatpush1.bf16.msra.mxu1 %v7793_v31  ;;  %v7876_v31 = vld [vmem:[%s10750_s6 + $0x18c] ss:$16 sps:$4 sm:$0xff]  }
 0x213   :  { %3140 = vmatprep.subr.bf16.mxu1 %v7801_v44  ;;  %v7874_v44 = vld [vmem:[%s10750_s6 + $0x188] ss:$16 sps:$4 sm:$0xff]  }
 0x296   :  { %v2213_v46 = vpop.f32.mrb[4].mxu0 }
 0x297   :  { %v2215_v47 = vpop.f32.mrb[5].mxu0  ;;  %v2288_v57 = vpack.c.bf16 %v2213_v46, %v2213_v46  ;;  %v7882_v46 = vld [vmem:[%s10750_s6 + $0x1ac] ss:$16 sps:$4 sm:$0xff]  }
 0x298   :  { %v2289_v49 = vpack.c.bf16 %v2215_v47, %v2215_v47  ;;  %v2217_v52 = vpop.f32.mrb[6].mxu0  ;;  %v7877_v47 = vld [vmem:[%s10751_s7 + $0x1a8] ss:$16 sps:$4 sm:$0xff]  }
 0x299   :  { %v2218_v58 = vpop.f32.mrb[7].mxu0  ;;  %v7885_v52 = vld [vmem:[%s10751_s7 + $0x1cc] ss:$16 sps:$4 sm:$0xff]  }
 0x29a   :  { %3131 = vmatprep.mubr.bf16.mxu1 %v2289_v49  ;;  %3213 = vmatprep.mubr.bf16.mxu0 %v2289_v49  ;;  %v7880_v49 = vld [vmem:[%s10750_s6 + $0x1a8] ss:$16 sps:$4 sm:$0xff]   ;;  %v7891_v58 = vld [vmem:[%s10751_s7 + $0x1ec] ss:$16 sps:$4 sm:$0xff]  }
 0x29b   :  { %3132 = vmatmul.mubr.bf16.vlgmr.msra.gmra.mrb[8].mxu1 %v2288_v57  ;;  %3214 = vmatmul.mubr.bf16.vlgmr.msra.gmra.mrb[8].mxu0 %v2288_v57  ;;  %v7886_v57 = vld [vmem:[%s10750_s6 + $0x1c8] ss:$16 sps:$4 sm:$0xff]  }
 0x29c   :  { %3141 = vmatpush1.bf16.msra.mxu1 %v7799_v55  ;;  %3584 = vmatpush1.bf16.msra.mxu0 %v7802_v56  ;;  %v7888_v55 = vld [vmem:[%s10750_s6 + $0x1cc] ss:$16 sps:$4 sm:$0xff]   ;;  %v7883_v56 = vld [vmem:[%s10751_s7 + $0x1c8] ss:$16 sps:$4 sm:$0xff]  }
 0x29d   :  { %3172 = vmatprep.mubr.bf16.mxu1 %v9729_v54  ;;  %3615 = vmatprep.mubr.bf16.mxu0 %v9903_v61  ;;  %v7814_v54 = vld [vmem:[%s10750_s6 + $0x48] ss:$16 sps:$4 sm:$0xff]  }
 0x29e   :  { %3142 = vmatprep.subr.bf16.mxu1 %v7807_v59  ;;  %3585 = vmatprep.subr.bf16.mxu0 %v7810_v60  ;;  %v7894_v59 = vld [vmem:[%s10750_s6 + $0x1ec] ss:$16 sps:$4 sm:$0xff]   ;;  %v7889_v60 = vld [vmem:[%s10751_s7 + $0x1e8] ss:$16 sps:$4 sm:$0xff]  }
 0x2a0   :  { %3143 = vmatpush1.bf16.msra.mxu1 %v7805_v62  ;;  %3586 = vmatpush1.bf16.msra.mxu0 %v7808_v63  ;;  %v7892_v62 = vld [vmem:[%s10750_s6 + $0x1e8] ss:$16 sps:$4 sm:$0xff]   ;;  %v7897_v63 = vld [vmem:[%s10750_s6 + $0x4] ss:$16 sps:$4 sm:$0xff]  }
 0x2a1   :  { %3144 = vmatprep.subr.bf16.mxu1 %v7813_v51  ;;  %3587 = vmatprep.subr.bf16.mxu0 %v7816_v0  ;;  %v7895_v51 = vld [vmem:[%s10750_s6] ss:$16 sps:$4 sm:$0xff]   ;;  %v10093_v0 = vpack.c.bf16 %v9723_v48, %v9723_v48  ;;  %v7903_v48 = vld [vmem:[%s10750_s6 + $0x44] ss:$16 sps:$4 sm:$0xff]  }
 0x2a4   :  { %3145 = vmatpush1.bf16.msra.mxu1 %v7811_v1  ;;  %3588 = vmatpush1.bf16.msra.mxu0 %v7814_v54  ;;  %v7900_v1 = vld [vmem:[%s10750_s6 + $0x24] ss:$16 sps:$4 sm:$0xff]   ;;  %v7898_v54 = vld [vmem:[%s10750_s6 + $0x20] ss:$16 sps:$4 sm:$0xff]  }
 0x2a5   :  { %3146 = vmatprep.subr.bf16.mxu1 %v7819_v2  ;;  %3589 = vmatprep.subr.bf16.mxu0 %v7822_v3  ;;  %v7901_v2 = vld [vmem:[%s10750_s6 + $0x40] ss:$16 sps:$4 sm:$0xff]   ;;  %v7909_v3 = vld [vmem:[%s10750_s6 + $0x84] ss:$16 sps:$4 sm:$0xff]  }
 0x2a8   :  { %3147 = vmatpush1.bf16.msra.mxu1 %v7817_v4  ;;  %3590 = vmatpush1.bf16.msra.mxu0 %v7820_v5  ;;  %v9967_v15 = vpop.f32.mrb[4].mxu1  ;;  %v7907_v4 = vld [vmem:[%s10750_s6 + $0x80] ss:$16 sps:$4 sm:$0xff]   ;;  %v7912_v5 = vld [vmem:[%s10750_s6 + $0xa4] ss:$16 sps:$4 sm:$0xff]  }
 0x2a9   :  { %3148 = vmatprep.subr.bf16.mxu1 %v7825_v6  ;;  %3591 = vmatprep.subr.bf16.mxu0 %v7828_v7  ;;  %v9969_v16 = vpop.f32.mrb[5].mxu1  ;;  %v7910_v6 = vld [vmem:[%s10750_s6 + $0xa0] ss:$16 sps:$4 sm:$0xff]   ;;  %v7915_v7 = vld [vmem:[%s10750_s6 + $0xc4] ss:$16 sps:$4 sm:$0xff]  }
 0x2aa   :  { %v3096_v17 = vpop.f32.mrb[6].mxu1 }
 0x2ab   :  { %v3097_v20 = vpop.f32.mrb[7].mxu1  ;;  %v7951_v17 = vld [vmem:[%s10756_s12 + $0x44] ss:$16 sps:$4 sm:$0xff]  }
 0x2ac   :  { %3149 = vmatpush1.bf16.msra.mxu1 %v7823_v8  ;;  %3592 = vmatpush1.bf16.msra.mxu0 %v7826_v9  ;;  %v7913_v8 = vld [vmem:[%s10750_s6 + $0xc0] ss:$16 sps:$4 sm:$0xff]   ;;  %v7918_v9 = vld [vmem:[%s10750_s6 + $0xe4] ss:$16 sps:$4 sm:$0xff]  }
 0x2ad   :  { %3150 = vmatprep.subr.bf16.mxu1 %v7831_v21  ;;  %3593 = vmatprep.subr.bf16.mxu0 %v7834_v30  ;;  %v7943_v21 = vld [vmem:[%s10756_s12] ss:$16 sps:$4 sm:$0xff]   ;;  %v7945_v30 = vld [vmem:[%s10756_s12 + $0x4] ss:$16 sps:$4 sm:$0xff]  }
 0x2ae   :  { %v7924_v20 = vld [vmem:[%s10750_s6 + $0x124] ss:$16 sps:$4 sm:$0xff]  }
 0x2b0   :  { %3151 = vmatpush1.bf16.msra.mxu1 %v7829_v10  ;;  %3594 = vmatpush1.bf16.msra.mxu0 %v7832_v12  ;;  %v7948_v10 = vld [vmem:[%s10756_s12 + $0x24] ss:$16 sps:$4 sm:$0xff]   ;;  %v7916_v12 = vld [vmem:[%s10750_s6 + $0xe0] ss:$16 sps:$4 sm:$0xff]  }
 0x2b1   :  { %3152 = vmatprep.subr.bf16.mxu1 %v7837_v13  ;;  %3595 = vmatprep.subr.bf16.mxu0 %v7840_v14  ;;  %v7946_v13 = vld [vmem:[%s10756_s12 + $0x20] ss:$16 sps:$4 sm:$0xff]   ;;  %v7921_v14 = vld [vmem:[%s10750_s6 + $0x104] ss:$16 sps:$4 sm:$0xff]  }
 0x2b4   :  { %3153 = vmatpush1.bf16.msra.mxu1 %v7835_v18  ;;  %3596 = vmatpush1.bf16.msra.mxu0 %v7838_v19  ;;  %v7919_v18 = vld [vmem:[%s10750_s6 + $0x100] ss:$16 sps:$4 sm:$0xff]  }
 0x2b5   :  { %3154 = vmatprep.subr.bf16.mxu1 %v7843_v22  ;;  %3597 = vmatprep.subr.bf16.mxu0 %v7846_v23  ;;  %v7949_v19 = vld [vmem:[%s10756_s12 + $0x40] ss:$16 sps:$4 sm:$0xff]   ;;  %v7954_v22 = vld [vmem:[%s10756_s12 + $0x64] ss:$16 sps:$4 sm:$0xff]  }
 0x2b6   :  { %v7922_v23 = vld [vmem:[%s10750_s6 + $0x120] ss:$16 sps:$4 sm:$0xff]  }
 0x2b8   :  { %3155 = vmatpush1.bf16.msra.mxu1 %v7841_v24  ;;  %3598 = vmatpush1.bf16.msra.mxu0 %v7844_v25  ;;  %v7952_v24 = vld [vmem:[%s10756_s12 + $0x60] ss:$16 sps:$4 sm:$0xff]   ;;  %v7927_v25 = vld [vmem:[%s10750_s6 + $0x144] ss:$16 sps:$4 sm:$0xff]  }
 0x2b9   :  { %3156 = vmatprep.subr.bf16.mxu1 %v7849_v26  ;;  %3599 = vmatprep.subr.bf16.mxu0 %v7852_v27  ;;  %v7957_v26 = vld [vmem:[%s10756_s12 + $0x84] ss:$16 sps:$4 sm:$0xff]   ;;  %v7925_v27 = vld [vmem:[%s10750_s6 + $0x140] ss:$16 sps:$4 sm:$0xff]  }
 0x2bc   :  { %3157 = vmatpush1.bf16.msra.mxu1 %v7847_v28  ;;  %3600 = vmatpush1.bf16.msra.mxu0 %v7850_v29  ;;  %v7955_v28 = vld [vmem:[%s10756_s12 + $0x80] ss:$16 sps:$4 sm:$0xff]   ;;  %v7930_v29 = vld [vmem:[%s10750_s6 + $0x164] ss:$16 sps:$4 sm:$0xff]  }
 0x2bd   :  { %3158 = vmatprep.subr.bf16.mxu1 %v7855_v11  ;;  %3601 = vmatprep.subr.bf16.mxu0 %v7858_v32  ;;  %v7960_v11 = vld [vmem:[%s10756_s12 + $0xa4] ss:$16 sps:$4 sm:$0xff]   ;;  %v7928_v32 = vld [vmem:[%s10750_s6 + $0x160] ss:$16 sps:$4 sm:$0xff]  }
 0x2c0   :  { %3159 = vmatpush1.bf16.msra.mxu1 %v7853_v33  ;;  %3602 = vmatpush1.bf16.msra.mxu0 %v7856_v34  ;;  %v7958_v33 = vld [vmem:[%s10756_s12 + $0xa0] ss:$16 sps:$4 sm:$0xff]   ;;  %v7933_v34 = vld [vmem:[%s10750_s6 + $0x184] ss:$16 sps:$4 sm:$0xff]  }
 0x2c1   :  { %3160 = vmatprep.subr.bf16.mxu1 %v7861_v41  ;;  %3603 = vmatprep.subr.bf16.mxu0 %v7864_v35  ;;  %v7963_v41 = vld [vmem:[%s10756_s12 + $0xc4] ss:$16 sps:$4 sm:$0xff]   ;;  %v7931_v35 = vld [vmem:[%s10750_s6 + $0x180] ss:$16 sps:$4 sm:$0xff]  }
 0x2c4   :  { %3161 = vmatpush1.bf16.msra.mxu1 %v7859_v36  ;;  %3604 = vmatpush1.bf16.msra.mxu0 %v7862_v37  ;;  %v7961_v36 = vld [vmem:[%s10756_s12 + $0xc0] ss:$16 sps:$4 sm:$0xff]   ;;  %v7936_v37 = vld [vmem:[%s10750_s6 + $0x1a4] ss:$16 sps:$4 sm:$0xff]  }
 0x2c5   :  { %3162 = vmatprep.subr.bf16.mxu1 %v7867_v38  ;;  %3605 = vmatprep.subr.bf16.mxu0 %v7870_v53  ;;  %v7966_v38 = vld [vmem:[%s10756_s12 + $0xe4] ss:$16 sps:$4 sm:$0xff]   ;;  %v7934_v53 = vld [vmem:[%s10750_s6 + $0x1a0] ss:$16 sps:$4 sm:$0xff]  }
 0x2c8   :  { %3163 = vmatpush1.bf16.msra.mxu1 %v7865_v39  ;;  %3606 = vmatpush1.bf16.msra.mxu0 %v7868_v40  ;;  %v7964_v39 = vld [vmem:[%s10756_s12 + $0xe0] ss:$16 sps:$4 sm:$0xff]   ;;  %v7939_v40 = vld [vmem:[%s10750_s6 + $0x1c4] ss:$16 sps:$4 sm:$0xff]  }
 0x2c9   :  { %3164 = vmatprep.subr.bf16.mxu1 %v7873_v42  ;;  %3607 = vmatprep.subr.bf16.mxu0 %v7876_v31  ;;  %v7937_v42 = vld [vmem:[%s10750_s6 + $0x1c0] ss:$16 sps:$4 sm:$0xff]   ;;  %v7942_v31 = vld [vmem:[%s10750_s6 + $0x1e4] ss:$16 sps:$4 sm:$0xff]  }
 0x2cc   :  { %3165 = vmatpush1.bf16.msra.mxu1 %v7871_v43  ;;  %3608 = vmatpush1.bf16.msra.mxu0 %v7874_v44  ;;  %v7940_v43 = vld [vmem:[%s10750_s6 + $0x1e0] ss:$16 sps:$4 sm:$0xff]   ;;  %v7969_v44 = vld [vmem:[%s10756_s12 + $0x104] ss:$16 sps:$4 sm:$0xff]  }
 0x2cd   :  { %3166 = vmatprep.subr.bf16.mxu1 %v7879_v45  ;;  %3609 = vmatprep.subr.bf16.mxu0 %v7882_v46  ;;  %v7967_v45 = vld [vmem:[%s10756_s12 + $0x100] ss:$16 sps:$4 sm:$0xff]   ;;  %v7972_v46 = vld [vmem:[%s10756_s12 + $0x124] ss:$16 sps:$4 sm:$0xff]  }
 0x2d0   :  { %3167 = vmatpush1.bf16.msra.mxu1 %v7877_v47  ;;  %3610 = vmatpush1.bf16.msra.mxu0 %v7880_v49  ;;  %v7970_v47 = vld [vmem:[%s10756_s12 + $0x120] ss:$16 sps:$4 sm:$0xff]   ;;  %v7975_v49 = vld [vmem:[%s10756_s12 + $0x144] ss:$16 sps:$4 sm:$0xff]  }
 0x2d1   :  { %3168 = vmatprep.subr.bf16.mxu1 %v7885_v52  ;;  %3611 = vmatprep.subr.bf16.mxu0 %v7888_v55  ;;  %v7973_v52 = vld [vmem:[%s10756_s12 + $0x140] ss:$16 sps:$4 sm:$0xff]   ;;  %v7978_v55 = vld [vmem:[%s10756_s12 + $0x164] ss:$16 sps:$4 sm:$0xff]  }
 0x2d4   :  { %3169 = vmatpush1.bf16.msra.mxu1 %v7883_v56  ;;  %3612 = vmatpush1.bf16.msra.mxu0 %v7886_v57  ;;  %v7976_v56 = vld [vmem:[%s10756_s12 + $0x160] ss:$16 sps:$4 sm:$0xff]   ;;  %v7981_v57 = vld [vmem:[%s10756_s12 + $0x184] ss:$16 sps:$4 sm:$0xff]  }
 0x2d5   :  { %3170 = vmatprep.subr.bf16.mxu1 %v7891_v58  ;;  %3613 = vmatprep.subr.bf16.mxu0 %v7894_v59  ;;  %v7991_v58 = vld [vmem:[#allocation2] ss:$8 sps:$4 sm:$0xff]   ;;  %v7993_v59 = vld [vmem:[#allocation2 + $0x4] ss:$8 sps:$4 sm:$0xff]  }
 0x2d8   :  { %3171 = vmatpush1.bf16.msra.mxu1 %v7889_v60  ;;  %3614 = vmatpush1.bf16.msra.mxu0 %v7892_v62  ;;  %v4237_v60 = vld [vmem:[%s10778_s27 + $0x8] sm:$0xff]  ;;  %v7979_v62 = vld [vmem:[%s10756_s12 + $0x180] ss:$16 sps:$4 sm:$0xff]  }
 0x2d9   :  { %3542 = vmatprep.subr.bf16.mxu1 %v7897_v63  ;;  %5012 = vmatprep.subr.bf16.mxu0 %v7945_v30  ;;  %v10270_v63 = vpack.c.bf16 %v4237_v60, %v4237_v60  ;;  %v8023_v30 = vld [vmem:[#allocation2 + $0x54] ss:$8 sps:$4 sm:$0xff]  }
 0x2da   :  { %v8059_v60 = vld [vmem:[#allocation2 + $0xb4] ss:$8 sps:$4 sm:$0xff]  }
 0x2db   :  { %3173 = vmatmul.mubr.bf16.vlgmr.msra.gmra.mrb[12].mxu1 %v9725_v50  ;;  %3616 = vmatmul.mubr.bf16.vlgmr.msra.gmra.mrb[12].mxu0 %v10093_v0  ;;  %v7906_v50 = vld [vmem:[%s10750_s6 + $0x64] ss:$16 sps:$4 sm:$0xff]  }
 0x2dc   :  { %3543 = vmatpush1.bf16.msra.mxu1 %v7895_v51  ;;  %3574 = vmatprep.mubr.bf16.mxu1 %v9903_v61  ;;  %v7904_v61 = vld [vmem:[%s10750_s6 + $0x60] ss:$16 sps:$4 sm:$0xff]   ;;  %v7999_v51 = vld [vmem:[#allocation2 + $0x14] ss:$8 sps:$4 sm:$0xff]   ;;  %s10779_s6 = sld [smem:[#allocation11_spill]] }
 0x2dd   :  { %3544 = vmatprep.subr.bf16.mxu1 %v7900_v1  ;;  %5013 = vmatpush1.bf16.msra.mxu0 %v7943_v21  ;;  %v7997_v1 = vld [vmem:[#allocation2 + $0x10] ss:$8 sps:$4 sm:$0xff]   ;;  %v8015_v21 = vld [vmem:[#allocation2 + $0x40] ss:$8 sps:$4 sm:$0xff]  }
 0x2de   :  { %5014 = vmatprep.subr.bf16.mxu0 %v7948_v10  ;;  %5044 = vmatprep.mubr.bf16.mxu0 %v10270_v63 }
 0x2e0   :  { %3545 = vmatpush1.bf16.msra.mxu1 %v7898_v54  ;;  %v8005_v54 = vld [vmem:[#allocation2 + $0x24] ss:$8 sps:$4 sm:$0xff]  }
 0x2e1   :  { %3546 = vmatprep.subr.bf16.mxu1 %v7903_v48  ;;  %5015 = vmatpush1.bf16.msra.mxu0 %v7946_v13  ;;  %v7982_v48 = vld [vmem:[%s10756_s12 + $0x1a0] ss:$16 sps:$4 sm:$0xff]   ;;  %v8002_v13 = vld [vmem:[%s10756_s12 + $0x224] ss:$16 sps:$4 sm:$0xff]  }
 0x2e2   :  { %5016 = vmatprep.subr.bf16.mxu0 %v7951_v17  ;;  %v8029_v17 = vld [vmem:[#allocation2 + $0x64] ss:$8 sps:$4 sm:$0xff]  }
 0x2e4   :  { %3547 = vmatpush1.bf16.msra.mxu1 %v7901_v2  ;;  %v7987_v2 = vld [vmem:[%s10756_s12 + $0x1c4] ss:$16 sps:$4 sm:$0xff]  }
 0x2e5   :  { %3548 = vmatprep.subr.bf16.mxu1 %v7906_v50  ;;  %5017 = vmatpush1.bf16.msra.mxu0 %v7949_v19  ;;  %v8003_v50 = vld [vmem:[#allocation2 + $0x20] ss:$8 sps:$4 sm:$0xff]   ;;  %v8008_v19 = vld [vmem:[%s10756_s12 + $0x244] ss:$16 sps:$4 sm:$0xff]  }
 0x2e6   :  { %5018 = vmatprep.subr.bf16.mxu0 %v7954_v22  ;;  %v8035_v22 = vld [vmem:[#allocation2 + $0x74] ss:$8 sps:$4 sm:$0xff]  }
 0x2e8   :  { %3549 = vmatpush1.bf16.msra.mxu1 %v7904_v61  ;;  %v8011_v61 = vld [vmem:[#allocation2 + $0x34] ss:$8 sps:$4 sm:$0xff]  }
 0x2e9   :  { %3550 = vmatprep.subr.bf16.mxu1 %v7909_v3  ;;  %5019 = vmatpush1.bf16.msra.mxu0 %v7952_v24  ;;  %v7985_v3 = vld [vmem:[%s10756_s12 + $0x1c0] ss:$16 sps:$4 sm:$0xff]   ;;  %v8014_v24 = vld [vmem:[%s10756_s12 + $0x264] ss:$16 sps:$4 sm:$0xff]  }
 0x2ea   :  { %5020 = vmatprep.subr.bf16.mxu0 %v7957_v26  ;;  %v8012_v26 = vld [vmem:[%s10756_s12 + $0x260] ss:$16 sps:$4 sm:$0xff]  }
 0x2ec   :  { %3551 = vmatpush1.bf16.msra.mxu1 %v7907_v4  ;;  %v7990_v4 = vld [vmem:[%s10756_s12 + $0x1e4] ss:$16 sps:$4 sm:$0xff]  }
 0x2ed   :  { %3552 = vmatprep.subr.bf16.mxu1 %v7912_v5  ;;  %5021 = vmatpush1.bf16.msra.mxu0 %v7955_v28  ;;  %v8009_v5 = vld [vmem:[#allocation2 + $0x30] ss:$8 sps:$4 sm:$0xff]  }
 0x2ee   :  { %5022 = vmatprep.subr.bf16.mxu0 %v7960_v11  ;;  %v8018_v28 = vld [vmem:[%s10756_s12 + $0x280] ss:$16 sps:$4 sm:$0xff]  }
 0x2ef   :  { %v8024_v11 = vld [vmem:[%s10756_s12 + $0x2a0] ss:$16 sps:$4 sm:$0xff]  }
 0x2f0   :  { %3553 = vmatpush1.bf16.msra.mxu1 %v7910_v6  ;;  %v8017_v6 = vld [vmem:[#allocation2 + $0x44] ss:$8 sps:$4 sm:$0xff]  }
 0x2f1   :  { %3554 = vmatprep.subr.bf16.mxu1 %v7915_v7  ;;  %5023 = vmatpush1.bf16.msra.mxu0 %v7958_v33  ;;  %v7988_v7 = vld [vmem:[%s10756_s12 + $0x1e0] ss:$16 sps:$4 sm:$0xff]  }
 0x2f2   :  { %5024 = vmatprep.subr.bf16.mxu0 %v7963_v41  ;;  %v8030_v33 = vld [vmem:[%s10756_s12 + $0x2c0] ss:$16 sps:$4 sm:$0xff]  }
 0x2f3   :  { %v8036_v41 = vld [vmem:[%s10756_s12 + $0x2e0] ss:$16 sps:$4 sm:$0xff]  }
 0x2f4   :  { %3555 = vmatpush1.bf16.msra.mxu1 %v7913_v8  ;;  %v4236_v8 = vld [vmem:[%s10778_s27] sm:$0xff] }
 0x2f5   :  { %3556 = vmatprep.subr.bf16.mxu1 %v7918_v9  ;;  %5025 = vmatpush1.bf16.msra.mxu0 %v7961_v36  ;;  %v7996_v9 = vld [vmem:[%s10756_s12 + $0x204] ss:$16 sps:$4 sm:$0xff]   ;;  %v10297_v10 = vpack.c.bf16 %v4236_v8, %v4236_v8  ;;  %v8078_v8 = vld [vmem:[%s10756_s12 + $0x3c0] ss:$16 sps:$4 sm:$0xff]  }
 0x2f6   :  { %5026 = vmatprep.subr.bf16.mxu0 %v7966_v38  ;;  %v8039_v38 = vld [vmem:[#allocation2 + $0x80] ss:$8 sps:$4 sm:$0xff]  }
 0x2f8   :  { %3557 = vmatpush1.bf16.msra.mxu1 %v7916_v12  ;;  %v7994_v12 = vld [vmem:[%s10756_s12 + $0x200] ss:$16 sps:$4 sm:$0xff]  }
 0x2f9   :  { %3558 = vmatprep.subr.bf16.mxu1 %v7921_v14  ;;  %5027 = vmatpush1.bf16.msra.mxu0 %v7964_v39  ;;  %v8021_v14 = vld [vmem:[#allocation2 + $0x50] ss:$8 sps:$4 sm:$0xff]  }
 0x2fa   :  { %5028 = vmatprep.subr.bf16.mxu0 %v7969_v44 }
 0x2fc   :  { %3559 = vmatpush1.bf16.msra.mxu1 %v7919_v18  ;;  %v8000_v18 = vld [vmem:[%s10756_s12 + $0x220] ss:$16 sps:$4 sm:$0xff]  }
 0x2fd   :  { %3560 = vmatprep.subr.bf16.mxu1 %v7924_v20  ;;  %5029 = vmatpush1.bf16.msra.mxu0 %v7967_v45  ;;  %v8027_v20 = vld [vmem:[#allocation2 + $0x60] ss:$8 sps:$4 sm:$0xff]  }
 0x2fe   :  { %5030 = vmatprep.subr.bf16.mxu0 %v7972_v46  ;;  %v8042_v45 = vld [vmem:[%s10756_s12 + $0x300] ss:$16 sps:$4 sm:$0xff]  }
 0x300   :  { %3561 = vmatpush1.bf16.msra.mxu1 %v7922_v23  ;;  %v8006_v23 = vld [vmem:[%s10756_s12 + $0x240] ss:$16 sps:$4 sm:$0xff]  }
 0x301   :  { %3562 = vmatprep.subr.bf16.mxu1 %v7927_v25  ;;  %5031 = vmatpush1.bf16.msra.mxu0 %v7970_v47  ;;  %v8033_v25 = vld [vmem:[#allocation2 + $0x70] ss:$8 sps:$4 sm:$0xff]   ;;  %v8047_v47 = vld [vmem:[#allocation2 + $0x94] ss:$8 sps:$4 sm:$0xff]  }
 0x302   :  { %5032 = vmatprep.subr.bf16.mxu0 %v7975_v49  ;;  %v8045_v49 = vld [vmem:[#allocation2 + $0x90] ss:$8 sps:$4 sm:$0xff]  }
 0x304   :  { %3563 = vmatpush1.bf16.msra.mxu1 %v7925_v27  ;;  %v8020_v27 = vld [vmem:[%s10756_s12 + $0x284] ss:$16 sps:$4 sm:$0xff]  }
 0x305   :  { %3564 = vmatprep.subr.bf16.mxu1 %v7930_v29  ;;  %5033 = vmatpush1.bf16.msra.mxu0 %v7973_v52  ;;  %v8026_v29 = vld [vmem:[%s10756_s12 + $0x2a4] ss:$16 sps:$4 sm:$0xff]  }
 0x306   :  { %5034 = vmatprep.subr.bf16.mxu0 %v7978_v55  ;;  %v8050_v52 = vld [vmem:[%s10756_s12 + $0x324] ss:$16 sps:$4 sm:$0xff]  }
 0x307   :  { %v8053_v55 = vld [vmem:[#allocation2 + $0xa4] ss:$8 sps:$4 sm:$0xff]  }
 0x308   :  { %3565 = vmatpush1.bf16.msra.mxu1 %v7928_v32  ;;  %v8032_v32 = vld [vmem:[%s10756_s12 + $0x2c4] ss:$16 sps:$4 sm:$0xff]  }
 0x309   :  { %3566 = vmatprep.subr.bf16.mxu1 %v7933_v34  ;;  %5035 = vmatpush1.bf16.msra.mxu0 %v7976_v56  ;;  %v8038_v34 = vld [vmem:[%s10756_s12 + $0x2e4] ss:$16 sps:$4 sm:$0xff]   ;;  %v8051_v56 = vld [vmem:[#allocation2 + $0xa0] ss:$8 sps:$4 sm:$0xff]  }
 0x30a   :  { %5036 = vmatprep.subr.bf16.mxu0 %v7981_v57  ;;  %v8054_v57 = vld [vmem:[%s10756_s12 + $0x340] ss:$16 sps:$4 sm:$0xff]  }
 0x30c   :  { %3567 = vmatpush1.bf16.msra.mxu1 %v7931_v35  ;;  %v8041_v35 = vld [vmem:[#allocation2 + $0x84] ss:$8 sps:$4 sm:$0xff]  }
 0x30d   :  { %3568 = vmatprep.subr.bf16.mxu1 %v7936_v37  ;;  %5037 = vmatpush1.bf16.msra.mxu0 %v7979_v62  ;;  %v8062_v62 = vld [vmem:[%s10756_s12 + $0x364] ss:$16 sps:$4 sm:$0xff]  }
 0x310   :  { %3569 = vmatpush1.bf16.msra.mxu1 %v7934_v53 }
 0x311   :  { %3570 = vmatprep.subr.bf16.mxu1 %v7939_v40 }
 0x314   :  { %3571 = vmatpush1.bf16.msra.mxu1 %v7937_v42  ;;  %v8044_v42 = vld [vmem:[%s10756_s12 + $0x304] ss:$16 sps:$4 sm:$0xff]  }
 0x315   :  { %3572 = vmatprep.subr.bf16.mxu1 %v7942_v31 }
 0x318   :  { %3573 = vmatpush1.bf16.msra.mxu1 %v7940_v43 }
 0x319   :  { %4086 = vmatprep.subr.bf16.mxu1 %v7993_v59  ;;  %v8057_v59 = vld [vmem:[#allocation2 + $0xb0] ss:$8 sps:$4 sm:$0xff]  }
 0x31b   :  { %3575 = vmatmul.mubr.bf16.vlgmr.msra.gmra.mrb[16].mxu1 %v10093_v0  ;;  %v7984_v0 = vld [vmem:[%s10756_s12 + $0x1a4] ss:$16 sps:$4 sm:$0xff]  }
 0x31c   :  { %4087 = vmatpush1.bf16.msra.mxu1 %v7991_v58  ;;  %5038 = vmatprep.subr.bf16.mxu0 %v7984_v0  ;;  %v8056_v58 = vld [vmem:[%s10756_s12 + $0x344] ss:$16 sps:$4 sm:$0xff]   ;;  %v8060_v0 = vld [vmem:[%s10756_s12 + $0x360] ss:$16 sps:$4 sm:$0xff]  }
 0x31d   :  { %4088 = vmatprep.subr.bf16.mxu1 %v7999_v51  ;;  %5039 = vmatpush1.bf16.msra.mxu0 %v7982_v48  ;;  %v8065_v51 = vld [vmem:[#allocation2 + $0xc4] ss:$8 sps:$4 sm:$0xff]   ;;  %v8071_v48 = vld [vmem:[#allocation2 + $0xd4] ss:$8 sps:$4 sm:$0xff]  }
 0x31e   :  { %5040 = vmatprep.subr.bf16.mxu0 %v7987_v2  ;;  %v8066_v2 = vld [vmem:[%s10756_s12 + $0x380] ss:$16 sps:$4 sm:$0xff]  }
 0x320   :  { %4089 = vmatpush1.bf16.msra.mxu1 %v7997_v1  ;;  %v8068_v1 = vld [vmem:[%s10756_s12 + $0x384] ss:$16 sps:$4 sm:$0xff]  }
 0x321   :  { %4090 = vmatprep.subr.bf16.mxu1 %v8005_v54  ;;  %5041 = vmatpush1.bf16.msra.mxu0 %v7985_v3  ;;  %v8063_v54 = vld [vmem:[#allocation2 + $0xc0] ss:$8 sps:$4 sm:$0xff]   ;;  %v8077_v3 = vld [vmem:[#allocation2 + $0xe4] ss:$8 sps:$4 sm:$0xff]  }
 0x322   :  { %5042 = vmatprep.subr.bf16.mxu0 %v7990_v4  ;;  %v8072_v4 = vld [vmem:[%s10756_s12 + $0x3a0] ss:$16 sps:$4 sm:$0xff]  }
 0x324   :  { %4091 = vmatpush1.bf16.msra.mxu1 %v8003_v50  ;;  %v8074_v50 = vld [vmem:[%s10756_s12 + $0x3a4] ss:$16 sps:$4 sm:$0xff]  }
 0x325   :  { %4092 = vmatprep.subr.bf16.mxu1 %v8011_v61  ;;  %5043 = vmatpush1.bf16.msra.mxu0 %v7988_v7  ;;  %v8069_v61 = vld [vmem:[#allocation2 + $0xd0] ss:$8 sps:$4 sm:$0xff]   ;;  %v8083_v7 = vld [vmem:[#allocation2 + $0xf4] ss:$8 sps:$4 sm:$0xff]  }
 0x326   :  { %5053 = vmatprep.subr.bf16.mxu0 %v7996_v9  ;;  %v8086_v9 = vld [vmem:[%s10756_s12 + $0x3e4] ss:$16 sps:$4 sm:$0xff]  }
 0x328   :  { %4093 = vmatpush1.bf16.msra.mxu1 %v8009_v5  ;;  %5045 = vmatmul.mubr.bf16.vlgmr.msra.gmra.mrb[16].mxu0 %v10297_v10  ;;  %v8080_v5 = vld [vmem:[%s10756_s12 + $0x3c4] ss:$16 sps:$4 sm:$0xff]  }
 0x329   :  { %4094 = vmatprep.subr.bf16.mxu1 %v8017_v6  ;;  %5054 = vmatpush1.bf16.msra.mxu0 %v7994_v12  ;;  %v8075_v6 = vld [vmem:[#allocation2 + $0xe0] ss:$8 sps:$4 sm:$0xff]   ;;  %v8089_v12 = vld [vmem:[#allocation2 + $0x104] ss:$8 sps:$4 sm:$0xff]  }
 0x32a   :  { %5055 = vmatprep.subr.bf16.mxu0 %v8002_v13  ;;  %v4239_v13 = vld [vmem:[%s10778_s27 + $0x18] sm:$0xff] }
 0x32c   :  { %4095 = vmatpush1.bf16.msra.mxu1 %v8015_v21  ;;  %v8081_v21 = vld [vmem:[#allocation2 + $0xf0] ss:$8 sps:$4 sm:$0xff]  }
 0x32d   :  { %4096 = vmatprep.subr.bf16.mxu1 %v8023_v30  ;;  %5056 = vmatpush1.bf16.msra.mxu0 %v8000_v18  ;;  %v8084_v30 = vld [vmem:[%s10756_s12 + $0x3e0] ss:$16 sps:$4 sm:$0xff]  }
 0x32e   :  { %5057 = vmatprep.subr.bf16.mxu0 %v8008_v19  ;;  %v4238_v18 = vld [vmem:[%s10778_s27 + $0x10] sm:$0xff]  ;;  %v8090_v19 = vld [vmem:[%s10756_s12 + $0x208] ss:$16 sps:$4 sm:$0xff]  }
 0x330   :  { %4097 = vmatpush1.bf16.msra.mxu1 %v8021_v14  ;;  %v4243_v14 = vpack.c.bf16 %v4239_v13, %v4239_v13 }
 0x331   :  { %4098 = vmatprep.subr.bf16.mxu1 %v8029_v17  ;;  %5058 = vmatpush1.bf16.msra.mxu0 %v8006_v23  ;;  %v8092_v17 = vld [vmem:[%s10756_s12 + $0x20c] ss:$16 sps:$4 sm:$0xff]   ;;  %v8096_v23 = vld [vmem:[%s10756_s12 + $0x228] ss:$16 sps:$4 sm:$0xff]  }
 0x332   :  { %5059 = vmatprep.subr.bf16.mxu0 %v8014_v24  ;;  %5085 = vmatprep.mubr.bf16.mxu0 %v4243_v14  ;;  %v8104_v24 = vld [vmem:[%s10756_s12 + $0x24c] ss:$16 sps:$4 sm:$0xff]  }
 0x334   :  { %4099 = vmatpush1.bf16.msra.mxu1 %v8027_v20  ;;  %v10415_v20 = vpack.c.bf16 %v4238_v18, %v4238_v18 }
 0x335   :  { %4100 = vmatprep.subr.bf16.mxu1 %v8035_v22  ;;  %5060 = vmatpush1.bf16.msra.mxu0 %v8012_v26  ;;  %v8098_v22 = vld [vmem:[%s10756_s12 + $0x22c] ss:$16 sps:$4 sm:$0xff]  }
 0x336   :  { %5061 = vmatprep.subr.bf16.mxu0 %v8020_v27  ;;  %v8110_v26 = vld [vmem:[%s10756_s12 + $0x26c] ss:$16 sps:$4 sm:$0xff]   ;;  %v8108_v27 = vld [vmem:[%s10756_s12 + $0x268] ss:$16 sps:$4 sm:$0xff]  }
 0x338   :  { %4101 = vmatpush1.bf16.msra.mxu1 %v8033_v25  ;;  %v8102_v25 = vld [vmem:[%s10756_s12 + $0x248] ss:$16 sps:$4 sm:$0xff]  }
 0x339   :  { %5062 = vmatpush1.bf16.msra.mxu0 %v8018_v28  ;;  %4102 = vmatprep.subr.bf16.mxu1 %v8041_v35  ;;  %v8116_v28 = vld [vmem:[%s10756_s12 + $0x28c] ss:$16 sps:$4 sm:$0xff]   ;;  %v8126_v35 = vld [vmem:[%s10756_s12 + $0x2c8] ss:$16 sps:$4 sm:$0xff]  }
 0x33a   :  { %5063 = vmatprep.subr.bf16.mxu0 %v8026_v29  ;;  %v8114_v29 = vld [vmem:[%s10756_s12 + $0x288] ss:$16 sps:$4 sm:$0xff]  }
 0x33c   :  { %4103 = vmatpush1.bf16.msra.mxu1 %v8039_v38  ;;  %v10460_v38 = vld [vmem:[%s10752_s8] sm:$0xf] }
 0x33d   :  { %5064 = vmatpush1.bf16.msra.mxu0 %v8024_v11  ;;  %4104 = vmatprep.subr.bf16.mxu1 %v8047_v47  ;;  %v3626_v11 = vlaneseq }
 0x33e   :  { %5065 = vmatprep.subr.bf16.mxu0 %v8032_v32  ;;  %v8122_v32 = vld [vmem:[%s10756_s12 + $0x2ac] ss:$16 sps:$4 sm:$0xff]  }
 0x340   :  { %4105 = vmatpush1.bf16.msra.mxu1 %v8045_v49 }
 0x341   :  { %5066 = vmatpush1.bf16.msra.mxu0 %v8030_v33  ;;  %4106 = vmatprep.subr.bf16.mxu1 %v8053_v55  ;;  %v8120_v33 = vld [vmem:[%s10756_s12 + $0x2a8] ss:$16 sps:$4 sm:$0xff]   ;;  %v8140_v55 = vld [vmem:[%s10756_s12 + $0x30c] ss:$16 sps:$4 sm:$0xff]  }
 0x342   :  { %5067 = vmatprep.subr.bf16.mxu0 %v8038_v34  ;;  %v10448_v34 = vshrl.u32 %v3626_v11, 7 }
 0x344   :  { %4107 = vmatpush1.bf16.msra.mxu1 %v8051_v56  ;;  %v3640_v13 = vsub.s32 3, %v10448_v34 }
 0x345   :  { %5068 = vmatpush1.bf16.msra.mxu0 %v8036_v41  ;;  %4108 = vmatprep.subr.bf16.mxu1 %v8059_v60  ;;  %v8128_v41 = vld [vmem:[%s10756_s12 + $0x2cc] ss:$16 sps:$4 sm:$0xff]  }
 0x346   :  { %5069 = vmatprep.subr.bf16.mxu0 %v8044_v42  ;;  %v8132_v42 = vld [vmem:[%s10756_s12 + $0x2e8] ss:$16 sps:$4 sm:$0xff]   ;;  %v3641_v18 = vrot.slane %v10460_v38, %v3640_v13 }
 0x348   :  { %4109 = vmatpush1.bf16.msra.mxu1 %v8057_v59 }
 0x349   :  { %5070 = vmatpush1.bf16.msra.mxu0 %v8042_v45  ;;  %4110 = vmatprep.subr.bf16.mxu1 %v8065_v51  ;;  %v8152_v51 = vld [vmem:[%s10756_s12 + $0x34c] ss:$16 sps:$4 sm:$0xff]  }
 0x34a   :  { %5071 = vmatprep.subr.bf16.mxu0 %v8050_v52 }
 0x34c   :  { %4111 = vmatpush1.bf16.msra.mxu1 %v8063_v54  ;;  %v8156_v54 = vld [vmem:[%s10756_s12 + $0x368] ss:$16 sps:$4 sm:$0xff]  }
 0x34d   :  { %4112 = vmatprep.subr.bf16.mxu1 %v8071_v48  ;;  %v8164_v48 = vld [vmem:[%s10756_s12 + $0x38c] ss:$16 sps:$4 sm:$0xff]  }
 0x350   :  { %4113 = vmatpush1.bf16.msra.mxu1 %v8069_v61  ;;  %v8168_v61 = vld [vmem:[%s10756_s12 + $0x3a8] ss:$16 sps:$4 sm:$0xff]  }
 0x351   :  { %4114 = vmatprep.subr.bf16.mxu1 %v8077_v3  ;;  %v8176_v3 = vld [vmem:[%s10756_s12 + $0x3cc] ss:$16 sps:$4 sm:$0xff]  }
 0x354   :  { %4115 = vmatpush1.bf16.msra.mxu1 %v8075_v6  ;;  %v8180_v6 = vld [vmem:[%s10756_s12 + $0x3e8] ss:$16 sps:$4 sm:$0xff]  }
 0x355   :  { %4116 = vmatprep.subr.bf16.mxu1 %v8083_v7  ;;  %v8186_v7 = vld [vmem:[#allocation4 + $0x8] ss:$16 sps:$4 sm:$0xff]  }
 0x358   :  { %4117 = vmatpush1.bf16.msra.mxu1 %v8081_v21  ;;  %v8194_v21 = vld [vmem:[#allocation4 + $0x2c] ss:$16 sps:$4 sm:$0xff]  }
 0x359   :  { %4127 = vmatprep.subr.bf16.mxu1 %v8089_v12  ;;  %v8200_v12 = vld [vmem:[#allocation4 + $0x4c] ss:$16 sps:$4 sm:$0xff]  }
 0x36e   :  { %v3133_v36 = vpop.f32.mrb[8].mxu1  ;;  %v10345_v37 = vpop.f32.mrb[8].mxu0 }
 0x36f   :  { %v10348_v53 = vadd.f32 %v3133_v36, %v9967_v15  ;;  %v3135_v39 = vpop.f32.mrb[9].mxu1  ;;  %v10350_v40 = vpop.f32.mrb[9].mxu0  ;;  %v3636_v36 = vsub.s32 2, %v10448_v34 }
 0x370   :  { %v10356_v31 = vadd.f32 %v3135_v39, %v9969_v16  ;;  %v3137_v43 = vpop.f32.mrb[10].mxu1  ;;  %v3219_v44 = vpop.f32.mrb[10].mxu0  ;;  %v8048_v16 = vld [vmem:[%s10756_s12 + $0x320] ss:$16 sps:$4 sm:$0xff]   ;;  %v8134_v39 = vld [vmem:[%s10756_s12 + $0x2ec] ss:$16 sps:$4 sm:$0xff]  }
 0x371   :  { %v3138_v15 = vpop.f32.mrb[11].mxu1  ;;  %v3220_v46 = vpop.f32.mrb[11].mxu0  ;;  %5072 = vmatpush1.bf16.msra.mxu0 %v8048_v16 }
 0x372   :  { %5073 = vmatprep.subr.bf16.mxu0 %v8056_v58  ;;  %v3637_v15 = vrot.slane %v10460_v38, %v3636_v36 }
 0x375   :  { %5074 = vmatpush1.bf16.msra.mxu0 %v8054_v57 }
 0x376   :  { %5075 = vmatprep.subr.bf16.mxu0 %v8062_v62  ;;  %v8144_v62 = vld [vmem:[%s10756_s12 + $0x328] ss:$16 sps:$4 sm:$0xff]  }
 0x379   :  { %5076 = vmatpush1.bf16.msra.mxu0 %v8060_v0  ;;  %v8150_v0 = vld [vmem:[%s10756_s12 + $0x348] ss:$16 sps:$4 sm:$0xff]  }
 0x37a   :  { %5077 = vmatprep.subr.bf16.mxu0 %v8068_v1  ;;  %v8158_v1 = vld [vmem:[%s10756_s12 + $0x36c] ss:$16 sps:$4 sm:$0xff]  }
 0x37d   :  { %5078 = vmatpush1.bf16.msra.mxu0 %v8066_v2  ;;  %v8162_v2 = vld [vmem:[%s10756_s12 + $0x388] ss:$16 sps:$4 sm:$0xff]  }
 0x37e   :  { %5079 = vmatprep.subr.bf16.mxu0 %v8074_v50  ;;  %v8170_v50 = vld [vmem:[%s10756_s12 + $0x3ac] ss:$16 sps:$4 sm:$0xff]  }
 0x381   :  { %5080 = vmatpush1.bf16.msra.mxu0 %v8072_v4  ;;  %v8174_v4 = vld [vmem:[%s10756_s12 + $0x3c8] ss:$16 sps:$4 sm:$0xff]  }
 0x382   :  { %5081 = vmatprep.subr.bf16.mxu0 %v8080_v5  ;;  %v8182_v5 = vld [vmem:[%s10756_s12 + $0x3ec] ss:$16 sps:$4 sm:$0xff]  }
 0x385   :  { %5082 = vmatpush1.bf16.msra.mxu0 %v8078_v8  ;;  %v8188_v8 = vld [vmem:[#allocation4 + $0xc] ss:$16 sps:$4 sm:$0xff]  }
 0x386   :  { %5083 = vmatprep.subr.bf16.mxu0 %v8086_v9  ;;  %v8192_v9 = vld [vmem:[#allocation4 + $0x28] ss:$16 sps:$4 sm:$0xff]  }
 0x389   :  { %5084 = vmatpush1.bf16.msra.mxu0 %v8084_v30  ;;  %v8198_v30 = vld [vmem:[#allocation4 + $0x48] ss:$16 sps:$4 sm:$0xff]  }
 0x38a   :  { %5135 = vmatprep.subr.bf16.mxu0 %v8092_v17  ;;  %v8206_v17 = vld [vmem:[#allocation4 + $0x6c] ss:$16 sps:$4 sm:$0xff]  }
 0x38c   :  { %5086 = vmatmul.mubr.bf16.vlgmr.msra.gmra.mrb[20].mxu0 %v10415_v20 }
 0x38d   :  { %5136 = vmatpush1.bf16.msra.mxu0 %v8090_v19  ;;  %5167 = vmatprep.mubr.bf16.mxu0 %v4243_v14  ;;  %v8204_v14 = vld [vmem:[#allocation4 + $0x68] ss:$16 sps:$4 sm:$0xff]  }
 0x38e   :  { %5137 = vmatprep.subr.bf16.mxu0 %v8098_v22  ;;  %v8210_v19 = vld [vmem:[#allocation4 + $0x88] ss:$16 sps:$4 sm:$0xff]  }
 0x391   :  { %5138 = vmatpush1.bf16.msra.mxu0 %v8096_v23  ;;  %v8216_v23 = vld [vmem:[#allocation4 + $0xa8] ss:$16 sps:$4 sm:$0xff]  }
 0x392   :  { %5139 = vmatprep.subr.bf16.mxu0 %v8104_v24  ;;  %v8218_v24 = vld [vmem:[#allocation4 + $0xac] ss:$16 sps:$4 sm:$0xff]  }
 0x395   :  { %5140 = vmatpush1.bf16.msra.mxu0 %v8102_v25 }
 0x396   :  { %5141 = vmatprep.subr.bf16.mxu0 %v8110_v26  ;;  %v10532_v26 = vsub.s32 0, %v10448_v34 }
 0x399   :  { %5142 = vmatpush1.bf16.msra.mxu0 %v8108_v27  ;;  %v8222_v27 = vld [vmem:[#allocation4 + $0xc8] ss:$16 sps:$4 sm:$0xff]  }
 0x39a   :  { %5143 = vmatprep.subr.bf16.mxu0 %v8116_v28  ;;  %v8224_v28 = vld [vmem:[#allocation4 + $0xcc] ss:$16 sps:$4 sm:$0xff]  }
 0x39d   :  { %5144 = vmatpush1.bf16.msra.mxu0 %v8114_v29  ;;  %v10535_v29 = vsub.s32 1, %v10448_v34 }
 0x39e   :  { %5145 = vmatprep.subr.bf16.mxu0 %v8122_v32  ;;  %v3629_v32 = vrot.slane %v10460_v38, %v10532_v26 }
 0x3a1   :  { %5146 = vmatpush1.bf16.msra.mxu0 %v8120_v33  ;;  %v8228_v33 = vld [vmem:[#allocation4 + $0xe8] ss:$16 sps:$4 sm:$0xff]  }
 0x3a2   :  { %5147 = vmatprep.subr.bf16.mxu0 %v8128_v41  ;;  %v8230_v41 = vld [vmem:[#allocation4 + $0xec] ss:$16 sps:$4 sm:$0xff]  }
 0x3a5   :  { %5148 = vmatpush1.bf16.msra.mxu0 %v8126_v35 }
 0x3a6   :  { %5149 = vmatprep.subr.bf16.mxu0 %v8134_v39  ;;  %v3633_v39 = vrot.slane %v10460_v38, %v10535_v29 }
 0x3a9   :  { %5150 = vmatpush1.bf16.msra.mxu0 %v8132_v42 }
 0x3aa   :  { %5151 = vmatprep.subr.bf16.mxu0 %v8140_v55 }
 0x3ae   :  { %v3174_v43 = vpop.f32.mrb[12].mxu1  ;;  %v3617_v44 = vpop.f32.mrb[12].mxu0 }
 0x3af   :  { %v3216_v45 = vadd.f32 %v10345_v37, %v3174_v43  ;;  %v3176_v46 = vpop.f32.mrb[13].mxu1  ;;  %v3619_v47 = vpop.f32.mrb[13].mxu0  ;;  %v8138_v37 = vld [vmem:[%s10756_s12 + $0x308] ss:$16 sps:$4 sm:$0xff]  }
 0x3b0   :  { %v3218_v49 = vadd.f32 %v10350_v40, %v3176_v46  ;;  %v3178_v52 = vpop.f32.mrb[14].mxu1  ;;  %v3621_v16 = vpop.f32.mrb[14].mxu0  ;;  %5152 = vmatpush1.bf16.msra.mxu0 %v8138_v37  ;;  %v8146_v40 = vld [vmem:[%s10756_s12 + $0x32c] ss:$16 sps:$4 sm:$0xff]  }
 0x3b1   :  { %v3618_v56 = vadd.f32 %v3617_v44, %v3216_v45  ;;  %v3179_v57 = vpop.f32.mrb[15].mxu1  ;;  %v3622_v58 = vpop.f32.mrb[15].mxu0  ;;  %5153 = vmatprep.subr.bf16.mxu0 %v8146_v40  ;;  %v8236_v52 = vld [vmem:[#allocation4 + $0x10c] ss:$16 sps:$4 sm:$0xff]  }
 0x3b2   :  { %v3620_v59 = vadd.f32 %v3619_v47, %v3218_v49  ;;  %v8234_v49 = vld [vmem:[#allocation4 + $0x108] ss:$16 sps:$4 sm:$0xff]  }
 0x3b3   :  { %v10479_v60 = vadd.f32 %v3637_v15, %v3618_v56  ;;  %v8240_v58 = vld [vmem:[#allocation4 + $0x128] ss:$16 sps:$4 sm:$0xff]  }
 0x3b4   :  { %5154 = vmatpush1.bf16.msra.mxu0 %v8144_v62  ;;  %v10528_v22 = vadd.f32 %v3641_v18, %v3620_v59  ;;  %v8270_v18 = vld [vmem:[#allocation4 + $0x1c8] ss:$16 sps:$4 sm:$0xff]  }
 0x3b5   :  { %5155 = vmatprep.subr.bf16.mxu0 %v8152_v51  ;;  %v8246_v51 = vld [vmem:[#allocation4 + $0x148] ss:$16 sps:$4 sm:$0xff]  }
 0x3b6   :  { %v3657_v25 = vmul.f32 0.044715, %v10528_v22 }
 0x3b8   :  { %5156 = vmatpush1.bf16.msra.mxu0 %v8150_v0  ;;  %v3661_v11 = vmul.f32 %v3657_v25, %v10528_v22  ;;  %v8248_v0 = vld [vmem:[#allocation4 + $0x14c] ss:$16 sps:$4 sm:$0xff]  }
 0x3b9   :  { %5157 = vmatprep.subr.bf16.mxu0 %v8158_v1 }
 0x3ba   :  { %v3665_v42 = vmul.f32 %v3661_v11, %v10528_v22  ;;  %v8278_v11 = vld [vmem:[#allocation4 + $0x1ec] ss:$16 sps:$4 sm:$0xff]  }
 0x3bc   :  { %5158 = vmatpush1.bf16.msra.mxu0 %v8156_v54  ;;  %v3669_v55 = vadd.f32 %v3665_v42, %v10528_v22  ;;  %v8093_v42 = vld [vmem:[#allocation2 + $0x110] ss:$8 sps:$4 sm:$0xff]  }
 0x3bd   :  { %5159 = vmatprep.subr.bf16.mxu0 %v8164_v48 }
 0x3be   :  { %v3673_v59 = vmul.f32 0.7978846, %v3669_v55  ;;  %v8125_v55 = vld [vmem:[#allocation2 + $0x164] ss:$8 sps:$4 sm:$0xff]  }
 0x3c0   :  { %5160 = vmatpush1.bf16.msra.mxu0 %v8162_v2  ;;  %8423 = vtanh.f32 %v3673_v59  ;;  %v8252_v2 = vld [vmem:[#allocation4 + $0x168] ss:$16 sps:$4 sm:$0xff]  }
 0x3c1   :  { %5161 = vmatprep.subr.bf16.mxu0 %v8170_v50  ;;  %v8254_v50 = vld [vmem:[#allocation4 + $0x16c] ss:$16 sps:$4 sm:$0xff]  }
 0x3c4   :  { %5162 = vmatpush1.bf16.msra.mxu0 %v8168_v61  ;;  %v8258_v61 = vld [vmem:[#allocation4 + $0x188] ss:$16 sps:$4 sm:$0xff]  }
 0x3c5   :  { %5163 = vmatprep.subr.bf16.mxu0 %v8176_v3  ;;  %v8260_v3 = vld [vmem:[#allocation4 + $0x18c] ss:$16 sps:$4 sm:$0xff]  }
 0x3c8   :  { %5164 = vmatpush1.bf16.msra.mxu0 %v8174_v4 }
 0x3c9   :  { %5165 = vmatprep.subr.bf16.mxu0 %v8182_v5  ;;  %v8264_v5 = vld [vmem:[#allocation4 + $0x1a8] ss:$16 sps:$4 sm:$0xff]  }
 0x3ca   :  { %v8424_v4 = vpop.eup %8423 }
 0x3cc   :  { %5166 = vmatpush1.bf16.msra.mxu0 %v8180_v6  ;;  %v8266_v6 = vld [vmem:[#allocation4 + $0x1ac] ss:$16 sps:$4 sm:$0xff]  }
 0x3cd   :  { %5537 = vmatprep.subr.bf16.mxu0 %v8188_v8  ;;  %v3681_v8 = vadd.f32 1.0, %v8424_v4  ;;  %v8165_v4 = vld [vmem:[#allocation2 + $0x1d0] ss:$8 sps:$4 sm:$0xff]  }
 0x3cf   :  { %5168 = vmatmul.mubr.bf16.vlgmr.msra.gmra.mrb[24].mxu0 %v10415_v20  ;;  %v8212_v20 = vld [vmem:[#allocation4 + $0x8c] ss:$16 sps:$4 sm:$0xff]  }
 0x3d0   :  { %5538 = vmatpush1.bf16.msra.mxu0 %v8186_v7 }
 0x3d1   :  { %5539 = vmatprep.subr.bf16.mxu0 %v8194_v21 }
 0x3d4   :  { %5540 = vmatpush1.bf16.msra.mxu0 %v8192_v9 }
 0x3d5   :  { %5541 = vmatprep.subr.bf16.mxu0 %v8200_v12  ;;  %v3653_v12 = vmul.f32 0.5, %v10528_v22  ;;  %v4169_v22 = vld [vmem:[%s10779_s6 + $0x8] sm:$0xff] }
 0x3d8   :  { %5542 = vmatpush1.bf16.msra.mxu0 %v8198_v30 }
 0x3d9   :  { %5543 = vmatprep.subr.bf16.mxu0 %v8206_v17 }
 0x3dc   :  { %5544 = vmatpush1.bf16.msra.mxu0 %v8204_v14 }
 0x3dd   :  { %5545 = vmatprep.subr.bf16.mxu0 %v8212_v20 }
 0x3e0   :  { %5546 = vmatpush1.bf16.msra.mxu0 %v8210_v19  ;;  %v8272_v19 = vld [vmem:[#allocation4 + $0x1cc] ss:$16 sps:$4 sm:$0xff]  }
 0x3e1   :  { %5547 = vmatprep.subr.bf16.mxu0 %v8218_v24  ;;  %v3685_v24 = vmul.f32 %v3681_v8, %v3653_v12  ;;  %v8179_v8 = vld [vmem:[#allocation2 + $0x1f4] ss:$8 sps:$4 sm:$0xff]  }
 0x3e4   :  { %5548 = vmatpush1.bf16.msra.mxu0 %v8216_v23 }
 0x3e5   :  { %5549 = vmatprep.subr.bf16.mxu0 %v8224_v28  ;;  %v8276_v28 = vld [vmem:[#allocation4 + $0x1e8] ss:$16 sps:$4 sm:$0xff]  }
 0x3e8   :  { %5550 = vmatpush1.bf16.msra.mxu0 %v8222_v27  ;;  %v8087_v27 = vld [vmem:[#allocation2 + $0x100] ss:$8 sps:$4 sm:$0xff]  }
 0x3e9   :  { %5551 = vmatprep.subr.bf16.mxu0 %v8230_v41  ;;  %v3689_v41 = vpack.c.bf16 %v3685_v24, %v3685_v24  ;;  %v8197_v24 = vld [vmem:[%s10756_s12 + $0x4c] ss:$16 sps:$4 sm:$0xff]  }
 0x3ec   :  { %5552 = vmatpush1.bf16.msra.mxu0 %v8228_v33  ;;  %v8095_v33 = vld [vmem:[#allocation2 + $0x114] ss:$8 sps:$4 sm:$0xff]  }
 0x3ed   :  { %5553 = vmatprep.subr.bf16.mxu0 %v8236_v52  ;;  %v8119_v52 = vld [vmem:[#allocation2 + $0x154] ss:$8 sps:$4 sm:$0xff]  }
 0x3ee   :  { %v3576_v35 = vpop.f32.mrb[16].mxu1 }
 0x3ef   :  { %v3577_v43 = vadd.f32 %v3576_v35, %v10348_v53  ;;  %v3578_v44 = vpop.f32.mrb[17].mxu1  ;;  %v8242_v53 = vld [vmem:[#allocation4 + $0x12c] ss:$16 sps:$4 sm:$0xff]   ;;  %v10550_v35 = vpack.c.bf16 %v4169_v22, %v4169_v22  ;;  %v8213_v22 = vld [vmem:[%s10756_s12 + $0xa8] ss:$16 sps:$4 sm:$0xff]  }
 0x3f0   :  { %v3579_v45 = vadd.f32 %v3578_v44, %v10356_v31  ;;  %v3580_v15 = vpop.f32.mrb[18].mxu1  ;;  %5554 = vmatpush1.bf16.msra.mxu0 %v8234_v49  ;;  %v8101_v44 = vld [vmem:[#allocation2 + $0x124] ss:$8 sps:$4 sm:$0xff]   ;;  %v8111_v49 = vld [vmem:[#allocation2 + $0x140] ss:$8 sps:$4 sm:$0xff]  }
 0x3f1   :  { %v3646_v46 = vadd.f32 %v3629_v32, %v3577_v43  ;;  %v3581_v47 = vpop.f32.mrb[19].mxu1  ;;  %5555 = vmatprep.subr.bf16.mxu0 %v8242_v53  ;;  %5569 = vmatprep.mubr.bf16.mxu0 %v10550_v35  ;;  %v8107_v15 = vld [vmem:[#allocation2 + $0x134] ss:$8 sps:$4 sm:$0xff]   ;;  %v8129_v53 = vld [vmem:[#allocation2 + $0x170] ss:$8 sps:$4 sm:$0xff]  }
 0x3f2   :  { %v3647_v16 = vadd.f32 %v3633_v39, %v3579_v45  ;;  %v4168_v39 = vld [vmem:[%s10779_s6] sm:$0xff] }
 0x3f3   :  { %v3654_v56 = vmul.f32 0.044715, %v3646_v46  ;;  %v3650_v21 = vmul.f32 0.5, %v3646_v46  ;;  %v10555_v43 = vpack.c.bf16 %v4168_v39, %v4168_v39  ;;  %v8099_v45 = vld [vmem:[#allocation2 + $0x120] ss:$8 sps:$4 sm:$0xff]  }
 0x3f4   :  { %v3655_v38 = vmul.f32 0.044715, %v3647_v16  ;;  %5556 = vmatpush1.bf16.msra.mxu0 %v8240_v58  ;;  %v3651_v14 = vmul.f32 0.5, %v3647_v16  ;;  %v8113_v47 = vld [vmem:[#allocation2 + $0x144] ss:$8 sps:$4 sm:$0xff]  }
 0x3f5   :  { %v3658_v57 = vmul.f32 %v3654_v56, %v3646_v46  ;;  %5557 = vmatprep.subr.bf16.mxu0 %v8248_v0  ;;  %v3656_v56 = vmul.f32 0.044715, %v10479_v60  ;;  %v8149_v0 = vld [vmem:[#allocation2 + $0x1a4] ss:$8 sps:$4 sm:$0xff]  }
 0x3f6   :  { %v3659_v37 = vmul.f32 %v3655_v38, %v3647_v16  ;;  %v8123_v38 = vld [vmem:[#allocation2 + $0x160] ss:$8 sps:$4 sm:$0xff]   ;;  %v8221_v39 = vld [vmem:[%s10756_s12 + $0xcc] ss:$16 sps:$4 sm:$0xff]  }
 0x3f7   :  { %v3662_v40 = vmul.f32 %v3658_v57, %v3646_v46  ;;  %v8131_v57 = vld [vmem:[#allocation2 + $0x174] ss:$8 sps:$4 sm:$0xff]   ;;  %v3660_v58 = vmul.f32 %v3656_v56, %v10479_v60  ;;  %v8243_v56 = vld [vmem:[%s10756_s12 + $0x148] ss:$16 sps:$4 sm:$0xff]  }
 0x3f8   :  { %v3663_v31 = vmul.f32 %v3659_v37, %v3647_v16  ;;  %5558 = vmatpush1.bf16.msra.mxu0 %v8246_v51  ;;  %v8137_v37 = vld [vmem:[#allocation2 + $0x184] ss:$8 sps:$4 sm:$0xff]  }
 0x3f9   :  { %v3666_v62 = vadd.f32 %v3662_v40, %v3646_v46  ;;  %5559 = vmatprep.subr.bf16.mxu0 %v8254_v50  ;;  %v8105_v46 = vld [vmem:[#allocation2 + $0x130] ss:$8 sps:$4 sm:$0xff]   ;;  %v3664_v59 = vmul.f32 %v3660_v58, %v10479_v60  ;;  %v8135_v40 = vld [vmem:[#allocation2 + $0x180] ss:$8 sps:$4 sm:$0xff]   ;;  %v8161_v50 = vld [vmem:[#allocation2 + $0x1c4] ss:$8 sps:$4 sm:$0xff]  }
 0x3fa   :  { %v3667_v1 = vadd.f32 %v3663_v31, %v3647_v16  ;;  %v8117_v16 = vld [vmem:[#allocation2 + $0x150] ss:$8 sps:$4 sm:$0xff]   ;;  %v8143_v31 = vld [vmem:[#allocation2 + $0x194] ss:$8 sps:$4 sm:$0xff]  }
 0x3fb   :  { %v3670_v54 = vmul.f32 0.7978846, %v3666_v62  ;;  %v8141_v62 = vld [vmem:[#allocation2 + $0x190] ss:$8 sps:$4 sm:$0xff]   ;;  %v3668_v51 = vadd.f32 %v3664_v59, %v10479_v60  ;;  %v8257_v58 = vld [vmem:[%s10756_s12 + $0x18c] ss:$16 sps:$4 sm:$0xff]  }
 0x3fc   :  { %v3671_v48 = vmul.f32 0.7978846, %v3667_v1  ;;  %5560 = vmatpush1.bf16.msra.mxu0 %v8252_v2  ;;  %v8147_v1 = vld [vmem:[#allocation2 + $0x1a0] ss:$8 sps:$4 sm:$0xff]   ;;  %v8153_v2 = vld [vmem:[#allocation2 + $0x1b0] ss:$8 sps:$4 sm:$0xff]  }
 0x3fd   :  { %8425 = vtanh.f32 %v3670_v54  ;;  %5561 = vmatprep.subr.bf16.mxu0 %v8260_v3  ;;  %v3672_v54 = vmul.f32 0.7978846, %v3668_v51  ;;  %v8167_v3 = vld [vmem:[#allocation2 + $0x1d4] ss:$8 sps:$4 sm:$0xff]   ;;  %v8261_v59 = vld [vmem:[%s10756_s12 + $0x1a8] ss:$16 sps:$4 sm:$0xff]  }
 0x3fe   :  { %8427 = vtanh.f32 %v3671_v48  ;;  %v8155_v48 = vld [vmem:[#allocation2 + $0x1b4] ss:$8 sps:$4 sm:$0xff]   ;;  %v8273_v51 = vld [vmem:[%s10756_s12 + $0x1e8] ss:$16 sps:$4 sm:$0xff]  }
 0x3ff   :  { %8429 = vtanh.f32 %v3672_v54  ;;  %v8284_v54 = vld [vmem:[#allocation4 + $0x24] ss:$16 sps:$4 sm:$0xff]  }
 0x400   :  { %5562 = vmatpush1.bf16.msra.mxu0 %v8258_v61  ;;  %v8159_v61 = vld [vmem:[#allocation2 + $0x1c0] ss:$8 sps:$4 sm:$0xff]  }
 0x401   :  { %5563 = vmatprep.subr.bf16.mxu0 %v8266_v6 }
 0x404   :  { %5564 = vmatpush1.bf16.msra.mxu0 %v8264_v5  ;;  %v8173_v5 = vld [vmem:[#allocation2 + $0x1e4] ss:$8 sps:$4 sm:$0xff]  }
 0x405   :  { %5565 = vmatprep.subr.bf16.mxu0 %v8272_v19  ;;  %v8191_v19 = vld [vmem:[%s10756_s12 + $0x2c] ss:$16 sps:$4 sm:$0xff]  }
 0x407   :  { %v8426_v7 = vpop.eup %8425 }
 0x408   :  { %v8428_v9 = vpop.eup %8427  ;;  %v3678_v30 = vadd.f32 1.0, %v8426_v7  ;;  %5566 = vmatpush1.bf16.msra.mxu0 %v8270_v18  ;;  %v8171_v7 = vld [vmem:[#allocation2 + $0x1e0] ss:$8 sps:$4 sm:$0xff]  }
 0x409   :  { %v3679_v17 = vadd.f32 1.0, %v8428_v9  ;;  %5567 = vmatprep.subr.bf16.mxu0 %v8278_v11  ;;  %v8430_v6 = vpop.eup %8429  ;;  %v8203_v11 = vld [vmem:[%s10756_s12 + $0x6c] ss:$16 sps:$4 sm:$0xff]  }
 0x40a   :  { %v3682_v20 = vmul.f32 %v3678_v30, %v3650_v21  ;;  %v3680_v9 = vadd.f32 1.0, %v8430_v6  ;;  %v3652_v21 = vmul.f32 0.5, %v10479_v60  ;;  %v8177_v30 = vld [vmem:[#allocation2 + $0x1f0] ss:$8 sps:$4 sm:$0xff]   ;;  %v5046_v60 = vpop.f32.mrb[16].mxu0 }
 0x40b   :  { %v3683_v23 = vmul.f32 %v3679_v17, %v3651_v14  ;;  %v8185_v14 = vld [vmem:[%s10756_s12 + $0xc] ss:$16 sps:$4 sm:$0xff]   ;;  %v8183_v17 = vld [vmem:[%s10756_s12 + $0x8] ss:$16 sps:$4 sm:$0xff]   ;;  %v8296_v6 = vld [vmem:[#allocation4 + $0xa4] ss:$16 sps:$4 sm:$0xff]  }
 0x40c   :  { %v3686_v32 = vpack.c.bf16 %v3682_v20, %v3682_v20  ;;  %5568 = vmatpush1.bf16.msra.mxu0 %v8276_v28  ;;  %v3684_v12 = vmul.f32 %v3680_v9, %v3652_v21  ;;  %v8189_v20 = vld [vmem:[%s10756_s12 + $0x28] ss:$16 sps:$4 sm:$0xff]  }
 0x40d   :  { %v3687_v25 = vpack.c.bf16 %v3683_v23, %v3683_v23  ;;  %v10577_v23 = vpop.f32.mrb[17].mxu0  ;;  %v8195_v28 = vld [vmem:[%s10756_s12 + $0x48] ss:$16 sps:$4 sm:$0xff]  }
 0x40e   :  { %v3688_v18 = vpack.c.bf16 %v3684_v12, %v3684_v12 }
 0x40f   :  { %4118 = vmatprep.mubr.bf16.mxu1 %v3687_v25  ;;  %5570 = vmatmul.mubr.bf16.vlgmr.msra.gmra.mrb[28].mxu0 %v10555_v43  ;;  %v5050_v25 = vpop.f32.mrb[18].mxu0 }
 0x410   :  { %4119 = vmatmul.mubr.bf16.vlgmr.msra.gmra.mrb[20].mxu1 %v3686_v32  ;;  %v8209_v32 = vld [vmem:[%s10756_s12 + $0x8c] ss:$16 sps:$4 sm:$0xff]   ;;  %v8308_v25 = vld [vmem:[#allocation4 + $0x124] ss:$16 sps:$4 sm:$0xff]  }
 0x411   :  { %4128 = vmatpush1.bf16.msra.mxu1 %v8087_v27  ;;  %4159 = vmatprep.mubr.bf16.mxu1 %v3689_v41  ;;  %v5051_v27 = vpop.f32.mrb[19].mxu0  ;;  %v8215_v41 = vld [vmem:[%s10756_s12 + $0xac] ss:$16 sps:$4 sm:$0xff]  }
 0x412   :  { %4129 = vmatprep.subr.bf16.mxu1 %v8095_v33  ;;  %v8207_v33 = vld [vmem:[%s10756_s12 + $0x88] ss:$16 sps:$4 sm:$0xff]   ;;  %v8311_v27 = vld [vmem:[#allocation4 + $0x144] ss:$16 sps:$4 sm:$0xff]  }
 0x415   :  { %4130 = vmatpush1.bf16.msra.mxu1 %v8093_v42  ;;  %v8219_v42 = vld [vmem:[%s10756_s12 + $0xc8] ss:$16 sps:$4 sm:$0xff]  }
 0x416   :  { %4131 = vmatprep.subr.bf16.mxu1 %v8101_v44  ;;  %v8227_v44 = vld [vmem:[%s10756_s12 + $0xec] ss:$16 sps:$4 sm:$0xff]  }
 0x419   :  { %4132 = vmatpush1.bf16.msra.mxu1 %v8099_v45 }
 0x41a   :  { %4133 = vmatprep.subr.bf16.mxu1 %v8107_v15 }
 0x41d   :  { %4134 = vmatpush1.bf16.msra.mxu1 %v8105_v46  ;;  %v8225_v46 = vld [vmem:[%s10756_s12 + $0xe8] ss:$16 sps:$4 sm:$0xff]  }
 0x41e   :  { %4135 = vmatprep.subr.bf16.mxu1 %v8113_v47  ;;  %v8233_v47 = vld [vmem:[%s10756_s12 + $0x10c] ss:$16 sps:$4 sm:$0xff]  }
 0x421   :  { %4136 = vmatpush1.bf16.msra.mxu1 %v8111_v49  ;;  %v8231_v49 = vld [vmem:[%s10756_s12 + $0x108] ss:$16 sps:$4 sm:$0xff]  }
 0x422   :  { %4137 = vmatprep.subr.bf16.mxu1 %v8119_v52  ;;  %v8239_v52 = vld [vmem:[%s10756_s12 + $0x12c] ss:$16 sps:$4 sm:$0xff]  }
 0x425   :  { %4138 = vmatpush1.bf16.msra.mxu1 %v8117_v16  ;;  %v8237_v16 = vld [vmem:[%s10756_s12 + $0x128] ss:$16 sps:$4 sm:$0xff]  }
 0x426   :  { %4139 = vmatprep.subr.bf16.mxu1 %v8125_v55  ;;  %v8245_v55 = vld [vmem:[%s10756_s12 + $0x14c] ss:$16 sps:$4 sm:$0xff]  }
 0x429   :  { %4140 = vmatpush1.bf16.msra.mxu1 %v8123_v38  ;;  %v8251_v38 = vld [vmem:[%s10756_s12 + $0x16c] ss:$16 sps:$4 sm:$0xff]  }
 0x42a   :  { %4141 = vmatprep.subr.bf16.mxu1 %v8131_v57  ;;  %v8249_v57 = vld [vmem:[%s10756_s12 + $0x168] ss:$16 sps:$4 sm:$0xff]  }
 0x42d   :  { %4142 = vmatpush1.bf16.msra.mxu1 %v8129_v53  ;;  %v8255_v53 = vld [vmem:[%s10756_s12 + $0x188] ss:$16 sps:$4 sm:$0xff]  }
 0x42e   :  { %4143 = vmatprep.subr.bf16.mxu1 %v8137_v37  ;;  %v8263_v37 = vld [vmem:[%s10756_s12 + $0x1ac] ss:$16 sps:$4 sm:$0xff]  }
 0x431   :  { %4144 = vmatpush1.bf16.msra.mxu1 %v8135_v40  ;;  %v8269_v40 = vld [vmem:[%s10756_s12 + $0x1cc] ss:$16 sps:$4 sm:$0xff]  }
 0x432   :  { %4145 = vmatprep.subr.bf16.mxu1 %v8143_v31  ;;  %v8267_v31 = vld [vmem:[%s10756_s12 + $0x1c8] ss:$16 sps:$4 sm:$0xff]  }
 0x435   :  { %4146 = vmatpush1.bf16.msra.mxu1 %v8141_v62  ;;  %v8275_v62 = vld [vmem:[%s10756_s12 + $0x1ec] ss:$16 sps:$4 sm:$0xff]  }
 0x436   :  { %4147 = vmatprep.subr.bf16.mxu1 %v8149_v0  ;;  %v8281_v0 = vld [vmem:[#allocation4 + $0x4] ss:$16 sps:$4 sm:$0xff]  }
 0x439   :  { %4148 = vmatpush1.bf16.msra.mxu1 %v8147_v1  ;;  %v8279_v1 = vld [vmem:[#allocation4] ss:$16 sps:$4 sm:$0xff]  }
 0x43a   :  { %4149 = vmatprep.subr.bf16.mxu1 %v8155_v48  ;;  %v8282_v48 = vld [vmem:[#allocation4 + $0x20] ss:$16 sps:$4 sm:$0xff]  }
 0x43d   :  { %4150 = vmatpush1.bf16.msra.mxu1 %v8153_v2  ;;  %v8287_v2 = vld [vmem:[#allocation4 + $0x44] ss:$16 sps:$4 sm:$0xff]  }
 0x43e   :  { %4151 = vmatprep.subr.bf16.mxu1 %v8161_v50  ;;  %v8285_v50 = vld [vmem:[#allocation4 + $0x40] ss:$16 sps:$4 sm:$0xff]  }
 0x441   :  { %4152 = vmatpush1.bf16.msra.mxu1 %v8159_v61  ;;  %v8290_v61 = vld [vmem:[#allocation4 + $0x64] ss:$16 sps:$4 sm:$0xff]  }
 0x442   :  { %4153 = vmatprep.subr.bf16.mxu1 %v8167_v3  ;;  %v8288_v3 = vld [vmem:[#allocation4 + $0x60] ss:$16 sps:$4 sm:$0xff]  }
 0x445   :  { %4154 = vmatpush1.bf16.msra.mxu1 %v8165_v4  ;;  %v8293_v4 = vld [vmem:[#allocation4 + $0x84] ss:$16 sps:$4 sm:$0xff]  }
 0x446   :  { %4155 = vmatprep.subr.bf16.mxu1 %v8173_v5  ;;  %v8291_v5 = vld [vmem:[#allocation4 + $0x80] ss:$16 sps:$4 sm:$0xff]  }
 0x449   :  { %4156 = vmatpush1.bf16.msra.mxu1 %v8171_v7  ;;  %v8299_v7 = vld [vmem:[#allocation4 + $0xc4] ss:$16 sps:$4 sm:$0xff]  }
 0x44a   :  { %4157 = vmatprep.subr.bf16.mxu1 %v8179_v8 }
 0x44d   :  { %4158 = vmatpush1.bf16.msra.mxu1 %v8177_v30  ;;  %v8302_v30 = vld [vmem:[#allocation4 + $0xe4] ss:$16 sps:$4 sm:$0xff]  }
 0x44e   :  { %5094 = vmatprep.subr.bf16.mxu1 %v8185_v14 }
 0x450   :  { %4160 = vmatmul.mubr.bf16.vlgmr.msra.gmra.mrb[20].mxu1 %v3688_v18  ;;  %v8300_v18 = vld [vmem:[#allocation4 + $0xe0] ss:$16 sps:$4 sm:$0xff]  }
 0x451   :  { %5095 = vmatpush1.bf16.msra.mxu1 %v8183_v17  ;;  %5126 = vmatprep.mubr.bf16.mxu1 %v10270_v63  ;;  %v8201_v63 = vld [vmem:[%s10756_s12 + $0x68] ss:$16 sps:$4 sm:$0xff]  }
 0x452   :  { %5096 = vmatprep.subr.bf16.mxu1 %v8191_v19 }
 0x455   :  { %5097 = vmatpush1.bf16.msra.mxu1 %v8189_v20 }
 0x456   :  { %5098 = vmatprep.subr.bf16.mxu1 %v8197_v24  ;;  %v8303_v24 = vld [vmem:[#allocation4 + $0x100] ss:$16 sps:$4 sm:$0xff]  }
 0x459   :  { %5099 = vmatpush1.bf16.msra.mxu1 %v8195_v28  ;;  %v8309_v28 = vld [vmem:[#allocation4 + $0x140] ss:$16 sps:$4 sm:$0xff]  }
 0x45a   :  { %5100 = vmatprep.subr.bf16.mxu1 %v8203_v11  ;;  %v8314_v11 = vld [vmem:[#allocation4 + $0x164] ss:$16 sps:$4 sm:$0xff]  }
 0x45d   :  { %5101 = vmatpush1.bf16.msra.mxu1 %v8201_v63  ;;  %v8312_v63 = vld [vmem:[#allocation4 + $0x160] ss:$16 sps:$4 sm:$0xff]  }
 0x45e   :  { %5102 = vmatprep.subr.bf16.mxu1 %v8209_v32  ;;  %v8317_v32 = vld [vmem:[#allocation4 + $0x184] ss:$16 sps:$4 sm:$0xff]  }
 0x45f   :  { %v5087_v45 = vpop.f32.mrb[20].mxu0 }
 0x460   :  { %v10612_v15 = vadd.f32 %v5087_v45, %v5046_v60  ;;  %v5089_v8 = vpop.f32.mrb[21].mxu0  ;;  %v8305_v60 = vld [vmem:[#allocation4 + $0x104] ss:$16 sps:$4 sm:$0xff]   ;;  %v8324_v45 = vld [vmem:[#allocation4 + $0x1e0] ss:$16 sps:$4 sm:$0xff]  }
 0x461   :  { %5103 = vmatpush1.bf16.msra.mxu1 %v8207_v33  ;;  %v10668_v9 = vadd.f32 %v5089_v8, %v10577_v23  ;;  %v5091_v21 = vpop.f32.mrb[22].mxu0  ;;  %v8306_v23 = vld [vmem:[#allocation4 + $0x120] ss:$16 sps:$4 sm:$0xff]   ;;  %v8356_v8 = vld [vmem:[#allocation6 + $0x94] ss:$8 sps:$4 sm:$0xff]  }
 0x462   :  { %5104 = vmatprep.subr.bf16.mxu1 %v8215_v41  ;;  %v5092_v12 = vpop.f32.mrb[23].mxu0  ;;  %v8315_v33 = vld [vmem:[#allocation4 + $0x180] ss:$16 sps:$4 sm:$0xff]   ;;  %v8320_v41 = vld [vmem:[#allocation4 + $0x1a4] ss:$16 sps:$4 sm:$0xff]  }
 0x463   :  { %v8359_v21 = vld [vmem:[#allocation6 + $0xa4] ss:$8 sps:$4 sm:$0xff]   ;;  %v8362_v12 = vld [vmem:[#allocation6 + $0xb4] ss:$8 sps:$4 sm:$0xff]  }
 0x465   :  { %5105 = vmatpush1.bf16.msra.mxu1 %v8213_v22  ;;  %v8318_v22 = vld [vmem:[#allocation4 + $0x1a0] ss:$16 sps:$4 sm:$0xff]  }
 0x466   :  { %5106 = vmatprep.subr.bf16.mxu1 %v8221_v39  ;;  %v8323_v39 = vld [vmem:[#allocation4 + $0x1c4] ss:$16 sps:$4 sm:$0xff]  }
 0x469   :  { %5107 = vmatpush1.bf16.msra.mxu1 %v8219_v42  ;;  %v8321_v42 = vld [vmem:[#allocation4 + $0x1c0] ss:$16 sps:$4 sm:$0xff]  }
 0x46a   :  { %5108 = vmatprep.subr.bf16.mxu1 %v8227_v44  ;;  %v8326_v44 = vld [vmem:[#allocation4 + $0x1e4] ss:$16 sps:$4 sm:$0xff]  }
 0x46d   :  { %5109 = vmatpush1.bf16.msra.mxu1 %v8225_v46 }
 0x46e   :  { %5110 = vmatprep.subr.bf16.mxu1 %v8233_v47 }
 0x471   :  { %5111 = vmatpush1.bf16.msra.mxu1 %v8231_v49 }
 0x472   :  { %5112 = vmatprep.subr.bf16.mxu1 %v8239_v52 }
 0x475   :  { %5113 = vmatpush1.bf16.msra.mxu1 %v8237_v16  ;;  %v8327_v16 = vld [vmem:[#allocation6] ss:$8 sps:$4 sm:$0xff]  }
 0x476   :  { %5114 = vmatprep.subr.bf16.mxu1 %v8245_v55  ;;  %v8329_v55 = vld [vmem:[#allocation6 + $0x4] ss:$8 sps:$4 sm:$0xff]  }
 0x479   :  { %5115 = vmatpush1.bf16.msra.mxu1 %v8243_v56  ;;  %v8332_v56 = vld [vmem:[#allocation6 + $0x14] ss:$8 sps:$4 sm:$0xff]  }
 0x47a   :  { %5116 = vmatprep.subr.bf16.mxu1 %v8251_v38  ;;  %v8330_v38 = vld [vmem:[#allocation6 + $0x10] ss:$8 sps:$4 sm:$0xff]  }
 0x47d   :  { %5117 = vmatpush1.bf16.msra.mxu1 %v8249_v57  ;;  %v8335_v57 = vld [vmem:[#allocation6 + $0x24] ss:$8 sps:$4 sm:$0xff]  }
 0x47e   :  { %5118 = vmatprep.subr.bf16.mxu1 %v8257_v58  ;;  %v8333_v58 = vld [vmem:[#allocation6 + $0x20] ss:$8 sps:$4 sm:$0xff]  }
 0x481   :  { %5119 = vmatpush1.bf16.msra.mxu1 %v8255_v53  ;;  %v8338_v53 = vld [vmem:[#allocation6 + $0x34] ss:$8 sps:$4 sm:$0xff]  }
 0x482   :  { %5120 = vmatprep.subr.bf16.mxu1 %v8263_v37  ;;  %v8341_v37 = vld [vmem:[#allocation6 + $0x44] ss:$8 sps:$4 sm:$0xff]  }
 0x485   :  { %5121 = vmatpush1.bf16.msra.mxu1 %v8261_v59  ;;  %v8339_v59 = vld [vmem:[#allocation6 + $0x40] ss:$8 sps:$4 sm:$0xff]  }
 0x486   :  { %5122 = vmatprep.subr.bf16.mxu1 %v8269_v40  ;;  %v8344_v40 = vld [vmem:[#allocation6 + $0x54] ss:$8 sps:$4 sm:$0xff]  }
 0x489   :  { %5123 = vmatpush1.bf16.msra.mxu1 %v8267_v31  ;;  %v8342_v31 = vld [vmem:[#allocation6 + $0x50] ss:$8 sps:$4 sm:$0xff]  }
 0x48a   :  { %5124 = vmatprep.subr.bf16.mxu1 %v8275_v62  ;;  %v8347_v62 = vld [vmem:[#allocation6 + $0x64] ss:$8 sps:$4 sm:$0xff]  }
 0x48d   :  { %5125 = vmatpush1.bf16.msra.mxu1 %v8273_v51  ;;  %v8345_v51 = vld [vmem:[#allocation6 + $0x60] ss:$8 sps:$4 sm:$0xff]  }
 0x48e   :  { %5496 = vmatprep.subr.bf16.mxu1 %v8281_v0  ;;  %v8350_v0 = vld [vmem:[#allocation6 + $0x74] ss:$8 sps:$4 sm:$0xff]  }
 0x490   :  { %5127 = vmatmul.mubr.bf16.vlgmr.msra.gmra.mrb[24].mxu1 %v10297_v10  ;;  %v8294_v10 = vld [vmem:[#allocation4 + $0xa0] ss:$16 sps:$4 sm:$0xff]  }
 0x491   :  { %5497 = vmatpush1.bf16.msra.mxu1 %v8279_v1  ;;  %5528 = vmatprep.mubr.bf16.mxu1 %v10550_v35  ;;  %v8297_v35 = vld [vmem:[#allocation4 + $0xc0] ss:$16 sps:$4 sm:$0xff]  }
 0x492   :  { %5498 = vmatprep.subr.bf16.mxu1 %v8284_v54  ;;  %v8348_v1 = vld [vmem:[#allocation6 + $0x70] ss:$8 sps:$4 sm:$0xff]   ;;  %v3754_v54 = vld [vmem:[%s10754_s10] sm:$0x3] }
 0x495   :  { %5499 = vmatpush1.bf16.msra.mxu1 %v8282_v48  ;;  %v3759_v48 = vrot.slane %v3754_v54, %v10532_v26 }
 0x496   :  { %5500 = vmatprep.subr.bf16.mxu1 %v8287_v2  ;;  %v3763_v2 = vrot.slane %v3754_v54, %v10535_v29 }
 0x499   :  { %5501 = vmatpush1.bf16.msra.mxu1 %v8285_v50 }
 0x49a   :  { %5502 = vmatprep.subr.bf16.mxu1 %v8290_v61  ;;  %v8353_v61 = vld [vmem:[#allocation6 + $0x84] ss:$8 sps:$4 sm:$0xff]  }
 0x49d   :  { %5503 = vmatpush1.bf16.msra.mxu1 %v8288_v3 }
 0x49e   :  { %5504 = vmatprep.subr.bf16.mxu1 %v8293_v4 }
 0x4a1   :  { %5505 = vmatpush1.bf16.msra.mxu1 %v8291_v5  ;;  %v8351_v5 = vld [vmem:[#allocation6 + $0x80] ss:$8 sps:$4 sm:$0xff]  }
 0x4a2   :  { %5506 = vmatprep.subr.bf16.mxu1 %v8296_v6  ;;  %v10670_v14 = vpop.f32.mrb[24].mxu0 }
 0x4a3   :  { %v10672_v17 = vpop.f32.mrb[25].mxu0 }
 0x4a4   :  { %v5173_v19 = vpop.f32.mrb[26].mxu0 }
 0x4a5   :  { %5507 = vmatpush1.bf16.msra.mxu1 %v8294_v10  ;;  %v5174_v20 = vpop.f32.mrb[27].mxu0  ;;  %v8365_v19 = vld [vmem:[#allocation6 + $0xc4] ss:$8 sps:$4 sm:$0xff]  }
 0x4a6   :  { %5508 = vmatprep.subr.bf16.mxu1 %v8299_v7  ;;  %v8368_v20 = vld [vmem:[#allocation6 + $0xd4] ss:$8 sps:$4 sm:$0xff]  }
 0x4a9   :  { %5509 = vmatpush1.bf16.msra.mxu1 %v8297_v35  ;;  %v8354_v35 = vld [vmem:[#allocation6 + $0x90] ss:$8 sps:$4 sm:$0xff]  }
 0x4aa   :  { %5510 = vmatprep.subr.bf16.mxu1 %v8302_v30  ;;  %v8357_v30 = vld [vmem:[#allocation6 + $0xa0] ss:$8 sps:$4 sm:$0xff]  }
 0x4ad   :  { %5511 = vmatpush1.bf16.msra.mxu1 %v8300_v18  ;;  %v8360_v18 = vld [vmem:[#allocation6 + $0xb0] ss:$8 sps:$4 sm:$0xff]  }
 0x4ae   :  { %5512 = vmatprep.subr.bf16.mxu1 %v8305_v60  ;;  %v8363_v60 = vld [vmem:[#allocation6 + $0xc0] ss:$8 sps:$4 sm:$0xff]  }
 0x4b1   :  { %5513 = vmatpush1.bf16.msra.mxu1 %v8303_v24  ;;  %v8366_v24 = vld [vmem:[#allocation6 + $0xd0] ss:$8 sps:$4 sm:$0xff]  }
 0x4b2   :  { %5514 = vmatprep.subr.bf16.mxu1 %v8308_v25  ;;  %v8371_v25 = vld [vmem:[#allocation6 + $0xe4] ss:$8 sps:$4 sm:$0xff]  }
 0x4b5   :  { %5515 = vmatpush1.bf16.msra.mxu1 %v8306_v23  ;;  %v8369_v23 = vld [vmem:[#allocation6 + $0xe0] ss:$8 sps:$4 sm:$0xff]  }
 0x4b6   :  { %5516 = vmatprep.subr.bf16.mxu1 %v8311_v27  ;;  %v8374_v27 = vld [vmem:[#allocation6 + $0xf4] ss:$8 sps:$4 sm:$0xff]  }
 0x4b9   :  { %5517 = vmatpush1.bf16.msra.mxu1 %v8309_v28  ;;  %v8372_v28 = vld [vmem:[#allocation6 + $0xf0] ss:$8 sps:$4 sm:$0xff]  }
 0x4ba   :  { %5518 = vmatprep.subr.bf16.mxu1 %v8314_v11  ;;  %v8377_v11 = vld [vmem:[#allocation6 + $0x104] ss:$8 sps:$4 sm:$0xff]  }
 0x4bd   :  { %5519 = vmatpush1.bf16.msra.mxu1 %v8312_v63  ;;  %v5578_v63 = vld [vmem:[%s10757_s13] sm:$0xf] }
 0x4be   :  { %5520 = vmatprep.subr.bf16.mxu1 %v8317_v32 }
 0x4c1   :  { %5521 = vmatpush1.bf16.msra.mxu1 %v8315_v33 }
 0x4c2   :  { %5522 = vmatprep.subr.bf16.mxu1 %v8320_v41 }
 0x4c5   :  { %5523 = vmatpush1.bf16.msra.mxu1 %v8318_v22  ;;  %v5591_v22 = vrot.slane %v5578_v63, %v3636_v36  ;;  %v5587_v36 = vrot.slane %v5578_v63, %v10535_v29 }
 0x4c6   :  { %5524 = vmatprep.subr.bf16.mxu1 %v8323_v39 }
 0x4c9   :  { %5525 = vmatpush1.bf16.msra.mxu1 %v8321_v42 }
 0x4ca   :  { %5526 = vmatprep.subr.bf16.mxu1 %v8326_v44 }
 0x4cd   :  { %5527 = vmatpush1.bf16.msra.mxu1 %v8324_v45 }
 0x4ce   :  { %6040 = vmatprep.subr.bf16.mxu1 %v8329_v55 }
 0x4d0   :  { %5529 = vmatmul.mubr.bf16.vlgmr.msra.gmra.mrb[28].mxu1 %v10555_v43  ;;  %v8336_v43 = vld [vmem:[#allocation6 + $0x30] ss:$8 sps:$4 sm:$0xff]  }
 0x4d1   :  { %6041 = vmatpush1.bf16.msra.mxu1 %v8327_v16  ;;  %v5595_v16 = vrot.slane %v5578_v63, %v3640_v13 }
 0x4d2   :  { %6042 = vmatprep.subr.bf16.mxu1 %v8332_v56 }
 0x4d5   :  { %6043 = vmatpush1.bf16.msra.mxu1 %v8330_v38  ;;  %v5583_v38 = vrot.slane %v5578_v63, %v10532_v26  ;;  %v8389_v63 = vld [vmem:[#allocation6 + $0x144] ss:$8 sps:$4 sm:$0xff]  }
 0x4d6   :  { %6044 = vmatprep.subr.bf16.mxu1 %v8335_v57 }
 0x4d9   :  { %6045 = vmatpush1.bf16.msra.mxu1 %v8333_v58 }
 0x4da   :  { %6046 = vmatprep.subr.bf16.mxu1 %v8338_v53 }
 0x4dd   :  { %6047 = vmatpush1.bf16.msra.mxu1 %v8336_v43 }
 0x4de   :  { %6048 = vmatprep.subr.bf16.mxu1 %v8341_v37 }
 0x4e1   :  { %6049 = vmatpush1.bf16.msra.mxu1 %v8339_v59 }
 0x4e2   :  { %v10675_v46 = vpop.f32.mrb[28].mxu0  ;;  %6050 = vmatprep.subr.bf16.mxu1 %v8344_v40 }
 0x4e3   :  { %v10677_v47 = vpop.f32.mrb[29].mxu0 }
 0x4e4   :  { %v5575_v49 = vpop.f32.mrb[30].mxu0 }
 0x4e5   :  { %v5576_v52 = vpop.f32.mrb[31].mxu0  ;;  %6051 = vmatpush1.bf16.msra.mxu1 %v8342_v31 }
 0x4e6   :  { %6052 = vmatprep.subr.bf16.mxu1 %v8347_v62 }
 0x4e9   :  { %6053 = vmatpush1.bf16.msra.mxu1 %v8345_v51 }
 0x4ea   :  { %6054 = vmatprep.subr.bf16.mxu1 %v8350_v0 }
 0x4ed   :  { %6055 = vmatpush1.bf16.msra.mxu1 %v8348_v1 }
 0x4ee   :  { %6056 = vmatprep.subr.bf16.mxu1 %v8353_v61 }
 0x4f1   :  { %6057 = vmatpush1.bf16.msra.mxu1 %v8351_v5 }
 0x4f2   :  { %6058 = vmatprep.subr.bf16.mxu1 %v8356_v8 }
 0x4f5   :  { %6059 = vmatpush1.bf16.msra.mxu1 %v8354_v35 }
 0x4f6   :  { %6060 = vmatprep.subr.bf16.mxu1 %v8359_v21 }
 0x4f9   :  { %6061 = vmatpush1.bf16.msra.mxu1 %v8357_v30 }
 0x4fa   :  { %6062 = vmatprep.subr.bf16.mxu1 %v8362_v12 }
 0x4fd   :  { %6063 = vmatpush1.bf16.msra.mxu1 %v8360_v18 }
 0x4fe   :  { %6064 = vmatprep.subr.bf16.mxu1 %v8365_v19  ;;  %v8375_v19 = vld [vmem:[#allocation6 + $0x100] ss:$8 sps:$4 sm:$0xff]  }
 0x501   :  { %6065 = vmatpush1.bf16.msra.mxu1 %v8363_v60 }
 0x502   :  { %6066 = vmatprep.subr.bf16.mxu1 %v8368_v20  ;;  %v8380_v20 = vld [vmem:[#allocation6 + $0x114] ss:$8 sps:$4 sm:$0xff]  }
 0x505   :  { %6067 = vmatpush1.bf16.msra.mxu1 %v8366_v24 }
 0x506   :  { %6068 = vmatprep.subr.bf16.mxu1 %v8371_v25  ;;  %v8378_v25 = vld [vmem:[#allocation6 + $0x110] ss:$8 sps:$4 sm:$0xff]  }
 0x509   :  { %6069 = vmatpush1.bf16.msra.mxu1 %v8369_v23  ;;  %v8383_v23 = vld [vmem:[#allocation6 + $0x124] ss:$8 sps:$4 sm:$0xff]  }
 0x50a   :  { %6070 = vmatprep.subr.bf16.mxu1 %v8374_v27  ;;  %v8381_v27 = vld [vmem:[#allocation6 + $0x120] ss:$8 sps:$4 sm:$0xff]  }
 0x50d   :  { %6071 = vmatpush1.bf16.msra.mxu1 %v8372_v28  ;;  %v8386_v28 = vld [vmem:[#allocation6 + $0x134] ss:$8 sps:$4 sm:$0xff]  }
 0x50e   :  { %6081 = vmatprep.subr.bf16.mxu1 %v8377_v11  ;;  %v8384_v11 = vld [vmem:[#allocation6 + $0x130] ss:$8 sps:$4 sm:$0xff]  }
 0x523   :  { %v4161_v50 = vpop.f32.mrb[20].mxu1 }
 0x524   :  { %v10684_v3 = vadd.f32 %v4161_v50, %v3759_v48  ;;  %v4163_v4 = vpop.f32.mrb[21].mxu1 }
 0x525   :  { %v10686_v6 = vadd.f32 %v4163_v4, %v3763_v2  ;;  %v4165_v10 = vpop.f32.mrb[22].mxu1 }
 0x526   :  { %6122 = vst [vmem:[%s10760_s16] sm:$0xff] %v10684_v3  ;;  %v4166_v7 = vpop.f32.mrb[23].mxu1 }
 0x527   :  { %6123 = vst [vmem:[%s10760_s16 + $0x8] sm:$0xff] %v10686_v6 }
 0x563   :  { %v5128_v32 = vpop.f32.mrb[24].mxu1 }
 0x564   :  { %v5170_v33 = vadd.f32 %v10670_v14, %v5128_v32  ;;  %v5130_v41 = vpop.f32.mrb[25].mxu1  ;;  %v8387_v32 = vld [vmem:[#allocation6 + $0x140] ss:$8 sps:$4 sm:$0xff]  }
 0x565   :  { %v5172_v39 = vadd.f32 %v10672_v17, %v5130_v41  ;;  %v5132_v42 = vpop.f32.mrb[26].mxu1  ;;  %v8390_v41 = vld [vmem:[#allocation6 + $0x150] ss:$8 sps:$4 sm:$0xff]  }
 0x566   :  { %v5572_v44 = vadd.f32 %v10675_v46, %v5170_v33  ;;  %v5133_v45 = vpop.f32.mrb[27].mxu1  ;;  %v8392_v33 = vld [vmem:[#allocation6 + $0x154] ss:$8 sps:$4 sm:$0xff]   ;;  %v8393_v42 = vld [vmem:[#allocation6 + $0x160] ss:$8 sps:$4 sm:$0xff]  }
 0x567   :  { %v5574_v49 = vadd.f32 %v10677_v47, %v5172_v39 }
 0x568   :  { %v10705_v52 = vadd.f32 %v5591_v22, %v5572_v44  ;;  %v8395_v22 = vld [vmem:[#allocation6 + $0x164] ss:$8 sps:$4 sm:$0xff]   ;;  %v8398_v44 = vld [vmem:[#allocation6 + $0x174] ss:$8 sps:$4 sm:$0xff]  }
 0x569   :  { %v5603_v55 = vadd.f32 %v5595_v16, %v5574_v49  ;;  %v8396_v49 = vld [vmem:[#allocation6 + $0x170] ss:$8 sps:$4 sm:$0xff]   ;;  %v8401_v16 = vld [vmem:[#allocation6 + $0x184] ss:$8 sps:$4 sm:$0xff]  }
 0x56a   :  { %v5610_v39 = vmul.f32 0.044715, %v10705_v52 }
 0x56b   :  { %v5611_v56 = vmul.f32 0.044715, %v5603_v55  ;;  %v5607_v35 = vmul.f32 0.5, %v5603_v55 }
 0x56c   :  { %v5614_v45 = vmul.f32 %v5610_v39, %v10705_v52 }
 0x56d   :  { %v5615_v14 = vmul.f32 %v5611_v56, %v5603_v55  ;;  %v8399_v56 = vld [vmem:[#allocation6 + $0x180] ss:$8 sps:$4 sm:$0xff]  }
 0x56f   :  { %v5619_v17 = vmul.f32 %v5615_v14, %v5603_v55  ;;  %v8404_v14 = vld [vmem:[#allocation6 + $0x194] ss:$8 sps:$4 sm:$0xff]  }
 0x571   :  { %v5623_v34 = vadd.f32 %v5619_v17, %v5603_v55  ;;  %v5618_v55 = vmul.f32 %v5614_v45, %v10705_v52  ;;  %v8405_v17 = vld [vmem:[#allocation6 + $0x1a0] ss:$8 sps:$4 sm:$0xff]  }
 0x573   :  { %v5627_v51 = vmul.f32 0.7978846, %v5623_v34  ;;  %v8419_v34 = vld [vmem:[#allocation6 + $0x1e4] ss:$8 sps:$4 sm:$0xff]  }
 0x575   :  { %8431 = vtanh.f32 %v5627_v51  ;;  %v5606_v51 = vmul.f32 0.5, %v10705_v52 }
 0x5a3   :  { %v5530_v57 = vpop.f32.mrb[28].mxu1 }
 0x5a4   :  { %v5531_v58 = vadd.f32 %v5530_v57, %v10612_v15  ;;  %v5532_v46 = vpop.f32.mrb[29].mxu1  ;;  %v5622_v57 = vadd.f32 %v5618_v55, %v10705_v52 }
 0x5a5   :  { %v5533_v53 = vadd.f32 %v5532_v46, %v10668_v9  ;;  %v5534_v47 = vpop.f32.mrb[30].mxu1  ;;  %v8432_v9 = vpop.eup %8431  ;;  %v8410_v46 = vld [vmem:[#allocation6 + $0x1b4] ss:$8 sps:$4 sm:$0xff]  }
 0x5a6   :  { %v5600_v43 = vadd.f32 %v5583_v38, %v5531_v58  ;;  %v5535_v37 = vpop.f32.mrb[31].mxu1  ;;  %v5635_v61 = vadd.f32 1.0, %v8432_v9  ;;  %v8402_v38 = vld [vmem:[#allocation6 + $0x190] ss:$8 sps:$4 sm:$0xff]   ;;  %v5626_v58 = vmul.f32 0.7978846, %v5622_v57 }
 0x5a7   :  { %v5601_v59 = vadd.f32 %v5587_v36, %v5533_v53  ;;  %v8407_v36 = vld [vmem:[#allocation6 + $0x1a4] ss:$8 sps:$4 sm:$0xff]   ;;  %v8408_v53 = vld [vmem:[#allocation6 + $0x1b0] ss:$8 sps:$4 sm:$0xff]   ;;  %v8416_v37 = vld [vmem:[#allocation6 + $0x1d4] ss:$8 sps:$4 sm:$0xff]  }
 0x5a8   :  { %v5608_v13 = vmul.f32 0.044715, %v5600_v43  ;;  %v5604_v5 = vmul.f32 0.5, %v5600_v43  ;;  %v5639_v12 = vmul.f32 %v5635_v61, %v5607_v35  ;;  %v8413_v47 = vld [vmem:[#allocation6 + $0x1c4] ss:$8 sps:$4 sm:$0xff]  }
 0x5a9   :  { %v5609_v40 = vmul.f32 0.044715, %v5601_v59  ;;  %v5605_v7 = vmul.f32 0.5, %v5601_v59 }
 0x5aa   :  { %v5612_v31 = vmul.f32 %v5608_v13, %v5600_v43  ;;  %v5643_v24 = vpack.c.bf16 %v5639_v12, %v5639_v12 }
 0x5ab   :  { %v5613_v62 = vmul.f32 %v5609_v40, %v5601_v59  ;;  %v8417_v40 = vld [vmem:[#allocation6 + $0x1e0] ss:$8 sps:$4 sm:$0xff]  }
 0x5ac   :  { %v5616_v0 = vmul.f32 %v5612_v31, %v5600_v43  ;;  %v8422_v31 = vld [vmem:[#allocation6 + $0x1f4] ss:$8 sps:$4 sm:$0xff]  }
 0x5ad   :  { %v5617_v1 = vmul.f32 %v5613_v62, %v5601_v59 }
 0x5ae   :  { %v5620_v54 = vadd.f32 %v5616_v0, %v5600_v43  ;;  %v8411_v43 = vld [vmem:[#allocation6 + $0x1c0] ss:$8 sps:$4 sm:$0xff]   ;;  %v8420_v0 = vld [vmem:[#allocation6 + $0x1f0] ss:$8 sps:$4 sm:$0xff]  }
 0x5af   :  { %v5621_v48 = vadd.f32 %v5617_v1, %v5601_v59  ;;  %v8414_v59 = vld [vmem:[#allocation6 + $0x1d0] ss:$8 sps:$4 sm:$0xff]  }
 0x5b0   :  { %v5624_v2 = vmul.f32 0.7978846, %v5620_v54 }
 0x5b1   :  { %v5625_v15 = vmul.f32 0.7978846, %v5621_v48  ;;  %v5708_v48 = vld [vmem:[%s10759_s15] sm:$0x3] }
 0x5b2   :  { %8433 = vtanh.f32 %v5624_v2  ;;  %v5713_v2 = vrot.slane %v5708_v48, %v10532_v26  ;;  %v6126_v26 = vmul.f32 %v10684_v3, %v10684_v3 }
 0x5b3   :  { %8435 = vtanh.f32 %v5625_v15  ;;  %v5717_v15 = vrot.slane %v5708_v48, %v10535_v29  ;;  %v6127_v29 = vmul.f32 %v10686_v6, %v10686_v6 }
 0x5b4   :  { %8437 = vtanh.f32 %v5626_v58 }
 0x5b5   :  { %v6128_v35 = vadd.f32 %v6127_v29, %v6126_v26 }
 0x5bc   :  { %v8434_v50 = vpop.eup %8433 }
 0x5bd   :  { %v8436_v4 = vpop.eup %8435  ;;  %v5632_v10 = vadd.f32 1.0, %v8434_v50 }
 0x5be   :  { %v5633_v8 = vadd.f32 1.0, %v8436_v4  ;;  %v8438_v13 = vpop.eup %8437 }
 0x5bf   :  { %v5636_v21 = vmul.f32 %v5632_v10, %v5604_v5  ;;  %v5634_v62 = vadd.f32 1.0, %v8438_v13 }
 0x5c0   :  { %v5637_v30 = vmul.f32 %v5633_v8, %v5605_v7 }
 0x5c1   :  { %v5640_v60 = vpack.c.bf16 %v5636_v21, %v5636_v21  ;;  %v5638_v1 = vmul.f32 %v5634_v62, %v5606_v51 }
 0x5c2   :  { %v5641_v18 = vpack.c.bf16 %v5637_v30, %v5637_v30 }
 0x5c3   :  { %v5642_v54 = vpack.c.bf16 %v5638_v1, %v5638_v1 }
 0x5c4   :  { %6072 = vmatprep.mubr.bf16.mxu1 %v5641_v18 }
 0x5c5   :  { %6073 = vmatmul.mubr.bf16.vlgmr.msra.gmra.mrb[32].mxu1 %v5640_v60 }
 0x5c6   :  { %6082 = vmatpush1.bf16.msra.mxu1 %v8375_v19  ;;  %6113 = vmatprep.mubr.bf16.mxu1 %v5643_v24 }
 0x5c7   :  { %6083 = vmatprep.subr.bf16.mxu1 %v8380_v20 }
 0x5ca   :  { %6084 = vmatpush1.bf16.msra.mxu1 %v8378_v25 }
 0x5cb   :  { %6085 = vmatprep.subr.bf16.mxu1 %v8383_v23 }
 0x5ce   :  { %6086 = vmatpush1.bf16.msra.mxu1 %v8381_v27 }
 0x5cf   :  { %6087 = vmatprep.subr.bf16.mxu1 %v8386_v28 }
 0x5d2   :  { %6088 = vmatpush1.bf16.msra.mxu1 %v8384_v11 }
 0x5d3   :  { %6089 = vmatprep.subr.bf16.mxu1 %v8389_v63 }
 0x5d6   :  { %6090 = vmatpush1.bf16.msra.mxu1 %v8387_v32 }
 0x5d7   :  { %6091 = vmatprep.subr.bf16.mxu1 %v8392_v33 }
 0x5da   :  { %6092 = vmatpush1.bf16.msra.mxu1 %v8390_v41 }
 0x5db   :  { %6093 = vmatprep.subr.bf16.mxu1 %v8395_v22 }
 0x5de   :  { %6094 = vmatpush1.bf16.msra.mxu1 %v8393_v42 }
 0x5df   :  { %6095 = vmatprep.subr.bf16.mxu1 %v8398_v44 }
 0x5e2   :  { %6096 = vmatpush1.bf16.msra.mxu1 %v8396_v49 }
 0x5e3   :  { %6097 = vmatprep.subr.bf16.mxu1 %v8401_v16 }
 0x5e6   :  { %6098 = vmatpush1.bf16.msra.mxu1 %v8399_v56 }
 0x5e7   :  { %6099 = vmatprep.subr.bf16.mxu1 %v8404_v14 }
 0x5ea   :  { %6100 = vmatpush1.bf16.msra.mxu1 %v8402_v38 }
 0x5eb   :  { %6101 = vmatprep.subr.bf16.mxu1 %v8407_v36 }
 0x5ee   :  { %6102 = vmatpush1.bf16.msra.mxu1 %v8405_v17 }
 0x5ef   :  { %6103 = vmatprep.subr.bf16.mxu1 %v8410_v46 }
 0x5f2   :  { %6104 = vmatpush1.bf16.msra.mxu1 %v8408_v53 }
 0x5f3   :  { %6105 = vmatprep.subr.bf16.mxu1 %v8413_v47 }
 0x5f6   :  { %6106 = vmatpush1.bf16.msra.mxu1 %v8411_v43 }
 0x5f7   :  { %6107 = vmatprep.subr.bf16.mxu1 %v8416_v37 }
 0x5fa   :  { %6108 = vmatpush1.bf16.msra.mxu1 %v8414_v59 }
 0x5fb   :  { %6109 = vmatprep.subr.bf16.mxu1 %v8419_v34 }
 0x5fe   :  { %6110 = vmatpush1.bf16.msra.mxu1 %v8417_v40 }
 0x5ff   :  { %6111 = vmatprep.subr.bf16.mxu1 %v8422_v31 }
 0x602   :  { %6112 = vmatpush1.bf16.msra.mxu1 %v8420_v0 }
 0x605   :  { %6114 = vmatmul.mubr.bf16.vlgmr.msra.gmra.mrb[32].mxu1 %v5642_v54 }
 0x6d8   :  { %v6115_v9 = vpop.f32.mrb[32].mxu1 }
 0x6d9   :  { %v7182_v50 = vadd.f32 %v6115_v9, %v5713_v2  ;;  %v6117_v61 = vpop.f32.mrb[33].mxu1 }
 0x6da   :  { %v7183_v4 = vadd.f32 %v6117_v61, %v5717_v15  ;;  %v6119_v52 = vpop.f32.mrb[34].mxu1 }
 0x6db   :  { %6124 = vst [vmem:[%s10761_s17] sm:$0xff] %v7182_v50  ;;  %v6120_v5 = vpop.f32.mrb[35].mxu1  ;;  %v6135_v10 = vmul.f32 %v7182_v50, %v7182_v50 }
 0x6dc   :  { %6125 = vst [vmem:[%s10761_s17 + $0x8] sm:$0xff] %v7183_v4  ;;  %v6136_v7 = vmul.f32 %v7183_v4, %v7183_v4 }
 0x6de   :  { %v6137_v8 = vadd.f32 %v6136_v7, %v6135_v10 }
 0x6e0   :  { %6138 = vadd.xlane.f32.xlu0 %v6137_v8 }
 0x6e4   :  { %6129 = vadd.xlane.f32.xlu0 %v6128_v35 }
 0x76d   :  { %v6139_v21 = vpop.xlane.xlu0 %6138 }
 0x76e   :  { %v6140_v30 = vmax.f32 %v6139_v21, 1e-24 }
 0x770   :  { %8439 = vrsqrt.f32 %v6140_v30 }
 0x771   :  { %v6130_v12 = vpop.xlane.xlu0 %6129 }
 0x772   :  { %v6131_v18 = vmax.f32 %v6130_v12, 1e-24 }
 0x774   :  { %8441 = vrsqrt.f32 %v6131_v18 }
 0x77a   :  { %v8440_v19 = vpop.eup %8439 }
 0x77b   :  { %v6143_v60 = vmul.f32 %v8440_v19, %v7183_v4  ;;  %v6142_v20 = vmul.f32 %v8440_v19, %v7182_v50 }
 0x77d   :  { %6144 = vmatprep.subr.mxu0 %v6143_v60 }
 0x77e   :  { %v8442_v24 = vpop.eup %8441  ;;  %6145 = vmatpush1.xpose.msra.mxu0 %v6142_v20 }
 0x77f   :  { %v6134_v25 = vmul.f32 %v8442_v24, %v10686_v6  ;;  %v6133_v23 = vmul.f32 %v8442_v24, %v10684_v3 }
 0x781   :  { %6208 = vmatprep.mubr.f32.mxu0 %v6134_v25  ;;  %6216 = vmatprep.subr.mxu0 %v6134_v25 }
 0x782   :  { %6209 = vmatmul.mubr.f32.vlgmr.msra.gmra.mrb[32].mxu0 %v6133_v23 }
 0x783   :  { %6217 = vmatpush1.xpose.msra.mxu0 %v6133_v23  ;;  %6280 = vmatprep.mubr.f32.mxu0 %v6134_v25 }
 0x784   :  { %6287 = vmatprep.subr.mxu0 %v6143_v60 }
 0x786   :  { %6281 = vmatmul.mubr.f32.vlgmr.msra.gmra.mrb[34].mxu0 %v6133_v23 }
 0x787   :  { %6288 = vmatpush1.xpose.msra.mxu0 %v6142_v20  ;;  %6351 = vmatprep.mubr.f32.mxu0 %v6143_v60 }
 0x78a   :  { %6352 = vmatmul.mubr.f32.vlgmr.msra.gmra.mrb[36].mxu0 %v6142_v20 }
 0x855   :  { %v6210_v27 = vpop.f32.mrb[32].mxu0 }
 0x856   :  { %6215 = vst.msk [vmem:[%s10762_s18] sm:$0xff] %vm6214_vm0, %v6210_v27  ;;  %v6212_v28 = vpop.f32.mrb[33].mxu0 }
 0x859   :  { %v6282_v6 = vpop.f32.mrb[34].mxu0 }
 0x85a   :  { %6286 = vst.msk [vmem:[%s10763_s19] sm:$0xff] %vm6214_vm0, %v6282_v6  ;;  %v6284_v3 = vpop.f32.mrb[35].mxu0 }
 0x85d   :  { %v6353_v11 = vpop.f32.mrb[36].mxu0 }
 0x85e   :  { %6357 = vst.msk [vmem:[%s10764_s20] sm:$0xff] %vm6214_vm0, %v6353_v11  ;;  %v6355_v63 = vpop.f32.mrb[37].mxu0 }
 0x85f   :  { %6378 = vsyncpa [#allocation3], 1 }
 0x860   :  { %6379 = vsyncpa [#allocation5], 1 }

</bundles_post_ra>
